<compile_context>
chip_gen: v5e
topology: v5e:2x2
jax: 0.10.0
libtpu: 0.0.40
codegen_flags: <defaults>
</compile_context>

<pallas_src>
import math
import numpy as np
import jax
import jax.numpy as jnp
from jax import lax
from jax.experimental import pallas as pl
from jax.experimental.pallas import tpu as pltpu


_OFF = 8        # aligned sublane offset of the interior inside padded VMEM scratches
_BN_EPS = 1e-5


# ----------------------------------------------------------------------------
# In-kernel helpers
# ----------------------------------------------------------------------------
def _zero_halo(ref, H, W):
    """Zero only the halo cells a 3x3 tap window can read (rows 0 / H+1 and
    columns _OFF-1 / _OFF+W).  The interior is fully overwritten every grid
    step, so no full-slab clear is needed (and this stays correct if the batch
    grid axis is split across cores)."""
    Wp, C = ref.shape[1], ref.shape[2]
    z_row = jnp.zeros((1, Wp, C), ref.dtype)
    z_col = jnp.zeros((H + 2, 1, C), ref.dtype)
    ref[0:1, :, :] = z_row
    ref[H + 1:H + 2, :, :] = z_row
    ref[:, _OFF - 1:_OFF, :] = z_col
    ref[:, _OFF + W:_OFF + W + 1, :] = z_col


def _conv3x3_im2col(pad_ref, w_ref, H, W):
    """3x3 conv as a single im2col MXU matmul.

    pad_ref : (H+2, W+9, C) bf16, zero halo around interior at [1:H+1, _OFF:_OFF+W]
    w_ref   : (9*C, Cout)   bf16, rows ordered (dy, dx, cin) row-major (HWIO reshape)
    returns : (H*W, Cout)   f32
    """
    C = pad_ref.shape[-1]
    taps = []
    for dy in range(3):
        for dx in range(3):
            taps.append(
                pad_ref[dy:dy + H, _OFF - 1 + dx:_OFF - 1 + dx + W, :]
                .reshape(H * W, C))
    cols = jnp.concatenate(taps, axis=-1)                       # (H*W, 9*C) bf16
    return jnp.dot(cols, w_ref[...], preferred_element_type=jnp.float32)


# ----------------------------------------------------------------------------
# Fused IDA-step kernel:
#   proj(conv3x3 + BN + ReLU) -> fixed x2 bilinear up -> +skip -> node(conv3x3+BN+ReLU)
# ----------------------------------------------------------------------------
def _ida_step_kernel(x_ref, skip_ref, wp_ref, sp_ref, bp_ref,
                     wn_ref, sn_ref, bn_ref, o_ref,
                     xpad_ref, tpad_ref, spad_ref):
    Hi, Wi = x_ref.shape[1], x_ref.shape[2]
    Ho, Wo, Cout = o_ref.shape[1], o_ref.shape[2], o_ref.shape[3]

    # --- proj: 3x3 conv (single im2col dot) + folded BN + ReLU ----------------
    _zero_halo(xpad_ref, Hi, Wi)
    xpad_ref[1:Hi + 1, _OFF:_OFF + Wi, :] = x_ref[0]            # bf16, no cast
    acc_p = _conv3x3_im2col(xpad_ref, wp_ref, Hi, Wi)           # (Hi*Wi, Cout) f32
    t = jnp.maximum(acc_p * sp_ref[...] + bp_ref[...], 0.0)
    t3 = t.reshape(Hi, Wi, Cout)

    # --- fixed x2 bilinear depthwise ConvTranspose2d (k=4, s=2, p=1) ----------
    # Evaluated via its 4 polyphase taps (0.5625 / 0.1875 / 0.0625); the +/-1
    # shifted views come from a zero-haloed VMEM scratch; shared terms hoisted.
    _zero_halo(tpad_ref, Hi, Wi)
    tpad_ref[1:Hi + 1, _OFF:_OFF + Wi, :] = t3

    ctr = 0.5625 * t3
    up = 0.1875 * tpad_ref[0:Hi, _OFF:_OFF + Wi, :]
    dn = 0.1875 * tpad_ref[2:Hi + 2, _OFF:_OFF + Wi, :]
    lf = 0.1875 * tpad_ref[1:Hi + 1, _OFF - 1:_OFF - 1 + Wi, :]
    rt = 0.1875 * tpad_ref[1:Hi + 1, _OFF + 1:_OFF + 1 + Wi, :]
    ul = 0.0625 * tpad_ref[0:Hi, _OFF - 1:_OFF - 1 + Wi, :]
    ur = 0.0625 * tpad_ref[0:Hi, _OFF + 1:_OFF + 1 + Wi, :]
    dl = 0.0625 * tpad_ref[2:Hi + 2, _OFF - 1:_OFF - 1 + Wi, :]
    dr = 0.0625 * tpad_ref[2:Hi + 2, _OFF + 1:_OFF + 1 + Wi, :]

    p00 = ctr + up + lf + ul      # output row 2y,   column 2x
    p01 = ctr + up + rt + ur      # output row 2y,   column 2x+1
    p10 = ctr + dn + lf + dl      # output row 2y+1, column 2x
    p11 = ctr + dn + rt + dr      # output row 2y+1, column 2x+1

    # In-register interleave (columns, then rows) -> one contiguous store into the
    # node-conv scratch.  No strided stores anywhere.
    row_e = jnp.stack([p00, p01], axis=2).reshape(Hi, Wo, Cout)   # even output rows
    row_o = jnp.stack([p10, p11], axis=2).reshape(Hi, Wo, Cout)   # odd  output rows
    u2 = jnp.stack([row_e, row_o], axis=1).reshape(Ho, Wo, Cout)

    # --- skip-add fused into the node conv's input (stays in VMEM) ------------
    s = u2 + skip_ref[0].astype(jnp.float32)
    _zero_halo(spad_ref, Ho, Wo)
    spad_ref[1:Ho + 1, _OFF:_OFF + Wo, :] = s.astype(spad_ref.dtype)

    # --- node: 3x3 conv (single im2col dot) + folded BN + ReLU ----------------
    acc_n = _conv3x3_im2col(spad_ref, wn_ref, Ho, Wo)            # (Ho*Wo, Cout) f32
    y = jnp.maximum(acc_n * sn_ref[...] + bn_ref[...], 0.0)
    o_ref[...] = y.reshape(1, Ho, Wo, Cout).astype(o_ref.dtype)


# ----------------------------------------------------------------------------
# Pallas wrapper
# ----------------------------------------------------------------------------
def ida_step(x, skip, wp, sp, bp, wn, sn, bn):
    """One IDAUp step:  node( up2(proj(x)) + skip )  with everything in one kernel."""
    N, Hi, Wi, Cin = x.shape
    Cout = wp.shape[-1]
    Ho, Wo = 2 * Hi, 2 * Wi
    assert skip.shape == (N, Ho, Wo, Cout), (skip.shape, x.shape, Cout)

    wp2 = wp.reshape(9 * Cin, Cout).astype(jnp.bfloat16)
    wn2 = wn.reshape(9 * Cout, Cout).astype(jnp.bfloat16)
    sp2 = sp.reshape(1, Cout).astype(jnp.float32)
    bp2 = bp.reshape(1, Cout).astype(jnp.float32)
    sn2 = sn.reshape(1, Cout).astype(jnp.float32)
    bn2 = bn.reshape(1, Cout).astype(jnp.float32)

    flops = 2 * 9 * N * (Hi * Wi * Cin * Cout + Ho * Wo * Cout * Cout)
    bytes_accessed = (2 * N * (Hi * Wi * Cin + 2 * Ho * Wo * Cout)   # x, skip, out (bf16)
                      + 2 * (wp2.size + wn2.size) + 4 * 4 * Cout)

    return pl.pallas_call(
        _ida_step_kernel,
        out_shape=jax.ShapeDtypeStruct((N, Ho, Wo, Cout), jnp.bfloat16),
        grid=(N,),
        in_specs=[
            pl.BlockSpec((1, Hi, Wi, Cin), lambda n: (n, 0, 0, 0)),
            pl.BlockSpec((1, Ho, Wo, Cout), lambda n: (n, 0, 0, 0)),
            pl.BlockSpec((9 * Cin, Cout), lambda n: (0, 0)),
            pl.BlockSpec((1, Cout), lambda n: (0, 0)),
            pl.BlockSpec((1, Cout), lambda n: (0, 0)),
            pl.BlockSpec((9 * Cout, Cout), lambda n: (0, 0)),
            pl.BlockSpec((1, Cout), lambda n: (0, 0)),
            pl.BlockSpec((1, Cout), lambda n: (0, 0)),
        ],
        out_specs=pl.BlockSpec((1, Ho, Wo, Cout), lambda n: (n, 0, 0, 0)),
        scratch_shapes=[
            pltpu.VMEM((Hi + 2, Wi + 9, Cin), jnp.bfloat16),    # padded proj input
            pltpu.VMEM((Hi + 2, Wi + 9, Cout), jnp.float32),    # padded proj output (f32 taps)
            pltpu.VMEM((Ho + 2, Wo + 9, Cout), jnp.bfloat16),   # padded node input
        ],
        compiler_params=pltpu.CompilerParams(
            dimension_semantics=("parallel",),
            vmem_limit_bytes=64 * 1024 * 1024),
        cost_estimate=pl.CostEstimate(flops=int(flops), transcendentals=0,
                                      bytes_accessed=int(bytes_accessed)),
    )(x.astype(jnp.bfloat16), skip.astype(jnp.bfloat16),
      wp2, sp2, bp2, wn2, sn2, bn2)


# ----------------------------------------------------------------------------
# Parameter construction (deterministic, in-script) & forward orchestration
# ----------------------------------------------------------------------------
def init_deform_conv(key, chi, cho):
    """DeformConv(chi, cho): DCN 3x3 (zero-offset equivalent) + BN(eval) + ReLU."""
    kw, kb, kg, kbt, km, kv = jax.random.split(key, 6)
    w = jax.random.normal(kw, (3, 3, chi, cho), jnp.float32) / np.sqrt(9.0 * chi)
    b = 0.1 * jax.random.normal(kb, (cho,), jnp.float32)
    gamma = 1.0 + 0.1 * jax.random.normal(kg, (cho,), jnp.float32)
    beta = 0.1 * jax.random.normal(kbt, (cho,), jnp.float32)
    mean = 0.1 * jax.random.normal(km, (cho,), jnp.float32)
    var = 1.0 + 0.1 * jax.random.uniform(kv, (cho,), jnp.float32)
    scale = gamma / jnp.sqrt(var + _BN_EPS)
    bias = (b - mean) * scale + beta
    return {"w": w.astype(jnp.bfloat16), "scale": scale, "bias": bias}


def init_idaup(key, o, channels, up_f):
    p = {}
    keys = jax.random.split(key, 2 * (len(channels) - 1))
    for i in range(1, len(channels)):
        c = int(channels[i])
        p[f"proj_{i}"] = init_deform_conv(keys[2 * (i - 1)], c, o)
        p[f"node_{i}"] = init_deform_conv(keys[2 * (i - 1) + 1], o, o)
        p[f"f_{i}"] = int(up_f[i])
    return p


def init_dlaup(key, startp, channels, scales):
    channels = list(channels)
    in_channels = list(channels)
    scales = np.array(scales, dtype=int)
    params = {"startp": startp}
    keys = jax.random.split(key, len(channels) - 1)
    for i in range(len(channels) - 1):
        j = -i - 2
        params[f"ida_{i}"] = init_idaup(
            keys[i], channels[j], in_channels[j:], list(scales[j:] // scales[j]))
        scales[j + 1:] = scales[j]
        in_channels[j + 1:] = [channels[j] for _ in channels[j + 1:]]
    return params


def idaup_apply(p, layers, startp, endp):
    for i in range(startp + 1, endp):
        k = i - startp
        # DLAUp only ever instantiates x2 upsampling stages.
        assert int(p[f"f_{k}"]) == 2, p[f"f_{k}"]
        pj = p[f"proj_{k}"]
        nd = p[f"node_{k}"]
        layers[i] = ida_step(layers[i], layers[i - 1],
                             pj["w"], pj["scale"], pj["bias"],
                             nd["w"], nd["scale"], nd["bias"])


def dlaup_apply(params, layers):
    startp = params["startp"]
    out = [layers[-1]]
    for i in range(len(layers) - startp - 1):
        idaup_apply(params[f"ida_{i}"], layers, len(layers) - i - 2, len(layers))
        out.insert(0, layers[-1])
    return out


# ----------------------------------------------------------------------------
# Pure-JAX reference (f32) for correctness check of the Pallas kernel
# ----------------------------------------------------------------------------
def _ref_conv(x, w, scale, bias):
    y = lax.conv_general_dilated(
        x, w.astype(jnp.float32), (1, 1), ((1, 1), (1, 1)),
        dimension_numbers=("NHWC", "HWIO", "NHWC"))
    y = y * scale.reshape(1, 1, 1, -1) + bias.reshape(1, 1, 1, -1)
    return jnp.maximum(y, 0.0)


def _ref_upsample_add(x, skip, f):
    N, H, W, C = x.shape
    K = 2 * f
    c = (2 * f - 1 - f % 2) / (2.0 * f)
    w1d = np.array([1.0 - math.fabs(k / f - c) for k in range(K)], np.float32)
    kern = np.outer(w1d, w1d)[::-1, ::-1]  # flip (symmetric -> no-op)
    rhs = np.zeros((K, K, 1, C), np.float32)
    for ch in range(C):
        rhs[:, :, 0, ch] = kern
    pad = K - 1 - (f // 2)
    y = lax.conv_general_dilated(
        x, jnp.asarray(rhs), (1, 1), ((pad, pad), (pad, pad)),
        lhs_dilation=(f, f),
        dimension_numbers=("NHWC", "HWIO", "NHWC"),
        feature_group_count=C)
    return y + skip


def _ref_dlaup(params, layers):
    startp = params["startp"]
    out = [layers[-1]]
    for i in range(len(layers) - startp - 1):
        p = params[f"ida_{i}"]
        sp, ep = len(layers) - i - 2, len(layers)
        for t in range(sp + 1, ep):
            k = t - sp
            proj = _ref_conv(layers[t], p[f"proj_{k}"]["w"],
                             p[f"proj_{k}"]["scale"], p[f"proj_{k}"]["bias"])
            summed = _ref_upsample_add(proj, layers[t - 1], p[f"f_{k}"])
            layers[t] = _ref_conv(summed, p[f"node_{k}"]["w"],
                                  p[f"node_{k}"]["scale"], p[f"node_{k}"]["bias"])
        out.insert(0, layers[-1])
    return out


# ----------------------------------------------------------------------------
# Main
# ----------------------------------------------------------------------------
if __name__ == "__main__":
    key = jax.random.PRNGKey(0)
    k_param, k_data = jax.random.split(key)

    # Small synthetic DLA pyramid: 3 levels, strides 1/2/4 relative to level 0.
    channels = [8, 16, 32]
    scales = [1, 2, 4]
    startp = 0
    N, S = 2, 16  # batch, finest spatial size

    params = init_dlaup(k_param, startp, channels, scales)

    dkeys = jax.random.split(k_data, len(channels))
    layers = [
        jax.random.normal(
            dkeys[i], (N, S // scales[i], S // scales[i], channels[i]),
            jnp.float32).astype(jnp.bfloat16)
        for i in range(len(channels))
    ]

    out = dlaup_apply(params, list(layers))
    for o in out:
        jax.block_until_ready(o)

    ref = _ref_dlaup(params, [l.astype(jnp.float32) for l in layers])
    for a, b in zip(out, ref):
        np.testing.assert_allclose(
            np.asarray(a.astype(jnp.float32)), np.asarray(b),
            rtol=2e-2, atol=2e-2)

    print("KERNEL_OK")
</pallas_src>

<mosaic_0001>
module attributes {stable_mosaic.version = 11 : i64} {
  func.func @_ida_step_kernel(%arg0: i32, %arg1: memref<1x4x4x32xbf16, #tpu.memory_space<vmem>>, %arg2: memref<1x8x8x16xbf16, #tpu.memory_space<vmem>>, %arg3: memref<288x16xbf16, #tpu.memory_space<vmem>>, %arg4: memref<1x16xf32, #tpu.memory_space<vmem>>, %arg5: memref<1x16xf32, #tpu.memory_space<vmem>>, %arg6: memref<144x16xbf16, #tpu.memory_space<vmem>>, %arg7: memref<1x16xf32, #tpu.memory_space<vmem>>, %arg8: memref<1x16xf32, #tpu.memory_space<vmem>>, %arg9: memref<1x8x8x16xbf16, #tpu.memory_space<vmem>>, %arg10: memref<6x13x32xbf16, #tpu.memory_space<vmem>>, %arg11: memref<6x13x16xf32, #tpu.memory_space<vmem>>, %arg12: memref<10x17x16xbf16, #tpu.memory_space<vmem>>) attributes {dimension_semantics = [#tpu.dimension_semantics<parallel>], iteration_bounds = array<i64: 2>, scalar_prefetch = 0 : i64, scratch_operands = 3 : i64, tpu.core_type = #tpu.core_type<tc>, window_params = [{transform_indices = @transform_0, window_bounds = array<i64: 1, 4, 4, 32>}, {transform_indices = @transform_1, window_bounds = array<i64: 1, 8, 8, 16>}, {pipeline_mode = #tpu.pipeline_mode<synchronous>, transform_indices = @transform_2, window_bounds = array<i64: 288, 16>}, {pipeline_mode = #tpu.pipeline_mode<synchronous>, transform_indices = @transform_3, window_bounds = array<i64: 1, 16>}, {pipeline_mode = #tpu.pipeline_mode<synchronous>, transform_indices = @transform_4, window_bounds = array<i64: 1, 16>}, {pipeline_mode = #tpu.pipeline_mode<synchronous>, transform_indices = @transform_5, window_bounds = array<i64: 144, 16>}, {pipeline_mode = #tpu.pipeline_mode<synchronous>, transform_indices = @transform_6, window_bounds = array<i64: 1, 16>}, {pipeline_mode = #tpu.pipeline_mode<synchronous>, transform_indices = @transform_7, window_bounds = array<i64: 1, 16>}, {transform_indices = @transform_8, window_bounds = array<i64: 1, 8, 8, 16>}]} {
    %cst = arith.constant 0.000000e+00 : bf16
    %0 = vector.broadcast %cst : bf16 to vector<1x13x32xbf16>
    %cst_0 = arith.constant 0.000000e+00 : bf16
    %1 = vector.broadcast %cst_0 : bf16 to vector<6x1x32xbf16>
    %c0 = arith.constant 0 : index
    %c0_1 = arith.constant 0 : index
    %c0_2 = arith.constant 0 : index
    %2 = vector.load %arg10[%c0, %c0_1, %c0_2] : memref<6x13x32xbf16, #tpu.memory_space<vmem>>, vector<1x13x32xbf16>
    tpu.vector_store %arg10[%c0, %c0_1, %c0_2], %0 {strides = array<i32>} : memref<6x13x32xbf16, #tpu.memory_space<vmem>>, vector<1x13x32xbf16>,
    %c5 = arith.constant 5 : index
    %c0_3 = arith.constant 0 : index
    %c0_4 = arith.constant 0 : index
    %3 = vector.load %arg10[%c5, %c0_3, %c0_4] : memref<6x13x32xbf16, #tpu.memory_space<vmem>>, vector<1x13x32xbf16>
    tpu.vector_store %arg10[%c5, %c0_3, %c0_4], %0 {strides = array<i32>} : memref<6x13x32xbf16, #tpu.memory_space<vmem>>, vector<1x13x32xbf16>,
    %c0_5 = arith.constant 0 : index
    %c7 = arith.constant 7 : index
    %c0_6 = arith.constant 0 : index
    %4 = vector.load %arg10[%c0_5, %c7, %c0_6] : memref<6x13x32xbf16, #tpu.memory_space<vmem>>, vector<6x1x32xbf16>
    tpu.vector_store %arg10[%c0_5, %c7, %c0_6], %1 {strides = array<i32>} : memref<6x13x32xbf16, #tpu.memory_space<vmem>>, vector<6x1x32xbf16>,
    %c0_7 = arith.constant 0 : index
    %c12 = arith.constant 12 : index
    %c0_8 = arith.constant 0 : index
    %5 = vector.load %arg10[%c0_7, %c12, %c0_8] : memref<6x13x32xbf16, #tpu.memory_space<vmem>>, vector<6x1x32xbf16>
    tpu.vector_store %arg10[%c0_7, %c12, %c0_8], %1 {strides = array<i32>} : memref<6x13x32xbf16, #tpu.memory_space<vmem>>, vector<6x1x32xbf16>,
    %c0_9 = arith.constant 0 : index
    %c0_10 = arith.constant 0 : index
    %c0_11 = arith.constant 0 : index
    %c0_12 = arith.constant 0 : index
    %6 = vector.load %arg1[%c0_9, %c0_10, %c0_11, %c0_12] : memref<1x4x4x32xbf16, #tpu.memory_space<vmem>>, vector<1x4x4x32xbf16>
    %7 = vector.shape_cast %6 : vector<1x4x4x32xbf16> to vector<4x4x32xbf16>
    %c1 = arith.constant 1 : index
    %c8 = arith.constant 8 : index
    %c0_13 = arith.constant 0 : index
    %8 = vector.load %arg10[%c1, %c8, %c0_13] : memref<6x13x32xbf16, #tpu.memory_space<vmem>>, vector<4x4x32xbf16>
    tpu.vector_store %arg10[%c1, %c8, %c0_13], %7 {strides = array<i32>} : memref<6x13x32xbf16, #tpu.memory_space<vmem>>, vector<4x4x32xbf16>,
    %c0_14 = arith.constant 0 : index
    %c7_15 = arith.constant 7 : index
    %c0_16 = arith.constant 0 : index
    %9 = vector.load %arg10[%c0_14, %c7_15, %c0_16] : memref<6x13x32xbf16, #tpu.memory_space<vmem>>, vector<4x4x32xbf16>
    %10 = vector.shape_cast %9 : vector<4x4x32xbf16> to vector<16x32xbf16>
    %c0_17 = arith.constant 0 : index
    %c8_18 = arith.constant 8 : index
    %c0_19 = arith.constant 0 : index
    %11 = vector.load %arg10[%c0_17, %c8_18, %c0_19] : memref<6x13x32xbf16, #tpu.memory_space<vmem>>, vector<4x4x32xbf16>
    %12 = vector.shape_cast %11 : vector<4x4x32xbf16> to vector<16x32xbf16>
    %c0_20 = arith.constant 0 : index
    %c9 = arith.constant 9 : index
    %c0_21 = arith.constant 0 : index
    %13 = vector.load %arg10[%c0_20, %c9, %c0_21] : memref<6x13x32xbf16, #tpu.memory_space<vmem>>, vector<4x4x32xbf16>
    %14 = vector.shape_cast %13 : vector<4x4x32xbf16> to vector<16x32xbf16>
    %c1_22 = arith.constant 1 : index
    %c7_23 = arith.constant 7 : index
    %c0_24 = arith.constant 0 : index
    %15 = vector.load %arg10[%c1_22, %c7_23, %c0_24] : memref<6x13x32xbf16, #tpu.memory_space<vmem>>, vector<4x4x32xbf16>
    %16 = vector.shape_cast %15 : vector<4x4x32xbf16> to vector<16x32xbf16>
    %c1_25 = arith.constant 1 : index
    %c8_26 = arith.constant 8 : index
    %c0_27 = arith.constant 0 : index
    %17 = vector.load %arg10[%c1_25, %c8_26, %c0_27] : memref<6x13x32xbf16, #tpu.memory_space<vmem>>, vector<4x4x32xbf16>
    %18 = vector.shape_cast %17 : vector<4x4x32xbf16> to vector<16x32xbf16>
    %c1_28 = arith.constant 1 : index
    %c9_29 = arith.constant 9 : index
    %c0_30 = arith.constant 0 : index
    %19 = vector.load %arg10[%c1_28, %c9_29, %c0_30] : memref<6x13x32xbf16, #tpu.memory_space<vmem>>, vector<4x4x32xbf16>
    %20 = vector.shape_cast %19 : vector<4x4x32xbf16> to vector<16x32xbf16>
    %c2 = arith.constant 2 : index
    %c7_31 = arith.constant 7 : index
    %c0_32 = arith.constant 0 : index
    %21 = vector.load %arg10[%c2, %c7_31, %c0_32] : memref<6x13x32xbf16, #tpu.memory_space<vmem>>, vector<4x4x32xbf16>
    %22 = vector.shape_cast %21 : vector<4x4x32xbf16> to vector<16x32xbf16>
    %c2_33 = arith.constant 2 : index
    %c8_34 = arith.constant 8 : index
    %c0_35 = arith.constant 0 : index
    %23 = vector.load %arg10[%c2_33, %c8_34, %c0_35] : memref<6x13x32xbf16, #tpu.memory_space<vmem>>, vector<4x4x32xbf16>
    %24 = vector.shape_cast %23 : vector<4x4x32xbf16> to vector<16x32xbf16>
    %c2_36 = arith.constant 2 : index
    %c9_37 = arith.constant 9 : index
    %c0_38 = arith.constant 0 : index
    %25 = vector.load %arg10[%c2_36, %c9_37, %c0_38] : memref<6x13x32xbf16, #tpu.memory_space<vmem>>, vector<4x4x32xbf16>
    %26 = vector.shape_cast %25 : vector<4x4x32xbf16> to vector<16x32xbf16>
    %27 = tpu.concatenate %10, %12, %14, %16, %18, %20, %22, %24, %26 in 1 : vector<16x32xbf16>, vector<16x32xbf16>, vector<16x32xbf16>, vector<16x32xbf16>, vector<16x32xbf16>, vector<16x32xbf16>, vector<16x32xbf16>, vector<16x32xbf16>, vector<16x32xbf16> -> vector<16x288xbf16>
    %c0_39 = arith.constant 0 : index
    %c0_40 = arith.constant 0 : index
    %28 = vector.load %arg3[%c0_39, %c0_40] : memref<288x16xbf16, #tpu.memory_space<vmem>>, vector<288x16xbf16>
    %cst_41 = arith.constant dense<0.000000e+00> : vector<16x16xf32>
    %29 = tpu.matmul %27, %28, %cst_41 {dimension_numbers = #tpu.dot_dimension_numbers<[1], [0], [0], [1], [0, 0, 1, 1], [], []>} : vector<16x288xbf16>, vector<288x16xbf16>, vector<16x16xf32> -> vector<16x16xf32>
    %c0_42 = arith.constant 0 : index
    %c0_43 = arith.constant 0 : index
    %30 = vector.load %arg4[%c0_42, %c0_43] : memref<1x16xf32, #tpu.memory_space<vmem>>, vector<1x16xf32>
    %31 = vector.broadcast %30 : vector<1x16xf32> to vector<16x16xf32>
    %32 = arith.mulf %29, %31 : vector<16x16xf32>
    %c0_44 = arith.constant 0 : index
    %c0_45 = arith.constant 0 : index
    %33 = vector.load %arg5[%c0_44, %c0_45] : memref<1x16xf32, #tpu.memory_space<vmem>>, vector<1x16xf32>
    %34 = vector.broadcast %33 : vector<1x16xf32> to vector<16x16xf32>
    %35 = arith.addf %32, %34 : vector<16x16xf32>
    %cst_46 = arith.constant 0.000000e+00 : f32
    %36 = vector.broadcast %cst_46 : f32 to vector<16x16xf32>
    %37 = arith.maximumf %35, %36 : vector<16x16xf32>
    %38 = vector.shape_cast %37 : vector<16x16xf32> to vector<4x4x16xf32>
    %cst_47 = arith.constant 0.000000e+00 : f32
    %39 = vector.broadcast %cst_47 : f32 to vector<1x13x16xf32>
    %cst_48 = arith.constant 0.000000e+00 : f32
    %40 = vector.broadcast %cst_48 : f32 to vector<6x1x16xf32>
    %c0_49 = arith.constant 0 : index
    %c0_50 = arith.constant 0 : index
    %c0_51 = arith.constant 0 : index
    %41 = vector.load %arg11[%c0_49, %c0_50, %c0_51] : memref<6x13x16xf32, #tpu.memory_space<vmem>>, vector<1x13x16xf32>
    tpu.vector_store %arg11[%c0_49, %c0_50, %c0_51], %39 {strides = array<i32>} : memref<6x13x16xf32, #tpu.memory_space<vmem>>, vector<1x13x16xf32>,
    %c5_52 = arith.constant 5 : index
    %c0_53 = arith.constant 0 : index
    %c0_54 = arith.constant 0 : index
    %42 = vector.load %arg11[%c5_52, %c0_53, %c0_54] : memref<6x13x16xf32, #tpu.memory_space<vmem>>, vector<1x13x16xf32>
    tpu.vector_store %arg11[%c5_52, %c0_53, %c0_54], %39 {strides = array<i32>} : memref<6x13x16xf32, #tpu.memory_space<vmem>>, vector<1x13x16xf32>,
    %c0_55 = arith.constant 0 : index
    %c7_56 = arith.constant 7 : index
    %c0_57 = arith.constant 0 : index
    %43 = vector.load %arg11[%c0_55, %c7_56, %c0_57] : memref<6x13x16xf32, #tpu.memory_space<vmem>>, vector<6x1x16xf32>
    tpu.vector_store %arg11[%c0_55, %c7_56, %c0_57], %40 {strides = array<i32>} : memref<6x13x16xf32, #tpu.memory_space<vmem>>, vector<6x1x16xf32>,
    %c0_58 = arith.constant 0 : index
    %c12_59 = arith.constant 12 : index
    %c0_60 = arith.constant 0 : index
    %44 = vector.load %arg11[%c0_58, %c12_59, %c0_60] : memref<6x13x16xf32, #tpu.memory_space<vmem>>, vector<6x1x16xf32>
    tpu.vector_store %arg11[%c0_58, %c12_59, %c0_60], %40 {strides = array<i32>} : memref<6x13x16xf32, #tpu.memory_space<vmem>>, vector<6x1x16xf32>,
    %c1_61 = arith.constant 1 : index
    %c8_62 = arith.constant 8 : index
    %c0_63 = arith.constant 0 : index
    %45 = vector.load %arg11[%c1_61, %c8_62, %c0_63] : memref<6x13x16xf32, #tpu.memory_space<vmem>>, vector<4x4x16xf32>
    tpu.vector_store %arg11[%c1_61, %c8_62, %c0_63], %38 {strides = array<i32>} : memref<6x13x16xf32, #tpu.memory_space<vmem>>, vector<4x4x16xf32>,
    %cst_64 = arith.constant 5.625000e-01 : f32
    %46 = vector.broadcast %cst_64 : f32 to vector<4x4x16xf32>
    %47 = arith.mulf %46, %38 : vector<4x4x16xf32>
    %c0_65 = arith.constant 0 : index
    %c8_66 = arith.constant 8 : index
    %c0_67 = arith.constant 0 : index
    %48 = vector.load %arg11[%c0_65, %c8_66, %c0_67] : memref<6x13x16xf32, #tpu.memory_space<vmem>>, vector<4x4x16xf32>
    %cst_68 = arith.constant 1.875000e-01 : f32
    %49 = vector.broadcast %cst_68 : f32 to vector<4x4x16xf32>
    %50 = arith.mulf %49, %48 : vector<4x4x16xf32>
    %c2_69 = arith.constant 2 : index
    %c8_70 = arith.constant 8 : index
    %c0_71 = arith.constant 0 : index
    %51 = vector.load %arg11[%c2_69, %c8_70, %c0_71] : memref<6x13x16xf32, #tpu.memory_space<vmem>>, vector<4x4x16xf32>
    %cst_72 = arith.constant 1.875000e-01 : f32
    %52 = vector.broadcast %cst_72 : f32 to vector<4x4x16xf32>
    %53 = arith.mulf %52, %51 : vector<4x4x16xf32>
    %c1_73 = arith.constant 1 : index
    %c7_74 = arith.constant 7 : index
    %c0_75 = arith.constant 0 : index
    %54 = vector.load %arg11[%c1_73, %c7_74, %c0_75] : memref<6x13x16xf32, #tpu.memory_space<vmem>>, vector<4x4x16xf32>
    %cst_76 = arith.constant 1.875000e-01 : f32
    %55 = vector.broadcast %cst_76 : f32 to vector<4x4x16xf32>
    %56 = arith.mulf %55, %54 : vector<4x4x16xf32>
    %c1_77 = arith.constant 1 : index
    %c9_78 = arith.constant 9 : index
    %c0_79 = arith.constant 0 : index
    %57 = vector.load %arg11[%c1_77, %c9_78, %c0_79] : memref<6x13x16xf32, #tpu.memory_space<vmem>>, vector<4x4x16xf32>
    %cst_80 = arith.constant 1.875000e-01 : f32
    %58 = vector.broadcast %cst_80 : f32 to vector<4x4x16xf32>
    %59 = arith.mulf %58, %57 : vector<4x4x16xf32>
    %c0_81 = arith.constant 0 : index
    %c7_82 = arith.constant 7 : index
    %c0_83 = arith.constant 0 : index
    %60 = vector.load %arg11[%c0_81, %c7_82, %c0_83] : memref<6x13x16xf32, #tpu.memory_space<vmem>>, vector<4x4x16xf32>
    %cst_84 = arith.constant 6.250000e-02 : f32
    %61 = vector.broadcast %cst_84 : f32 to vector<4x4x16xf32>
    %62 = arith.mulf %61, %60 : vector<4x4x16xf32>
    %c0_85 = arith.constant 0 : index
    %c9_86 = arith.constant 9 : index
    %c0_87 = arith.constant 0 : index
    %63 = vector.load %arg11[%c0_85, %c9_86, %c0_87] : memref<6x13x16xf32, #tpu.memory_space<vmem>>, vector<4x4x16xf32>
    %cst_88 = arith.constant 6.250000e-02 : f32
    %64 = vector.broadcast %cst_88 : f32 to vector<4x4x16xf32>
    %65 = arith.mulf %64, %63 : vector<4x4x16xf32>
    %c2_89 = arith.constant 2 : index
    %c7_90 = arith.constant 7 : index
    %c0_91 = arith.constant 0 : index
    %66 = vector.load %arg11[%c2_89, %c7_90, %c0_91] : memref<6x13x16xf32, #tpu.memory_space<vmem>>, vector<4x4x16xf32>
    %cst_92 = arith.constant 6.250000e-02 : f32
    %67 = vector.broadcast %cst_92 : f32 to vector<4x4x16xf32>
    %68 = arith.mulf %67, %66 : vector<4x4x16xf32>
    %c2_93 = arith.constant 2 : index
    %c9_94 = arith.constant 9 : index
    %c0_95 = arith.constant 0 : index
    %69 = vector.load %arg11[%c2_93, %c9_94, %c0_95] : memref<6x13x16xf32, #tpu.memory_space<vmem>>, vector<4x4x16xf32>
    %cst_96 = arith.constant 6.250000e-02 : f32
    %70 = vector.broadcast %cst_96 : f32 to vector<4x4x16xf32>
    %71 = arith.mulf %70, %69 : vector<4x4x16xf32>
    %72 = arith.addf %47, %50 : vector<4x4x16xf32>
    %73 = arith.addf %72, %56 : vector<4x4x16xf32>
    %74 = arith.addf %73, %62 : vector<4x4x16xf32>
    %75 = arith.addf %47, %50 : vector<4x4x16xf32>
    %76 = arith.addf %75, %59 : vector<4x4x16xf32>
    %77 = arith.addf %76, %65 : vector<4x4x16xf32>
    %78 = arith.addf %47, %53 : vector<4x4x16xf32>
    %79 = arith.addf %78, %56 : vector<4x4x16xf32>
    %80 = arith.addf %79, %68 : vector<4x4x16xf32>
    %81 = arith.addf %47, %53 : vector<4x4x16xf32>
    %82 = arith.addf %81, %59 : vector<4x4x16xf32>
    %83 = arith.addf %82, %71 : vector<4x4x16xf32>
    %84 = vector.shape_cast %74 : vector<4x4x16xf32> to vector<4x4x1x16xf32>
    %85 = vector.shape_cast %77 : vector<4x4x16xf32> to vector<4x4x1x16xf32>
    %86 = tpu.concatenate %84, %85 in 2 : vector<4x4x1x16xf32>, vector<4x4x1x16xf32> -> vector<4x4x2x16xf32>
    %87 = vector.shape_cast %86 : vector<4x4x2x16xf32> to vector<4x8x16xf32>
    %88 = vector.shape_cast %80 : vector<4x4x16xf32> to vector<4x4x1x16xf32>
    %89 = vector.shape_cast %83 : vector<4x4x16xf32> to vector<4x4x1x16xf32>
    %90 = tpu.concatenate %88, %89 in 2 : vector<4x4x1x16xf32>, vector<4x4x1x16xf32> -> vector<4x4x2x16xf32>
    %91 = vector.shape_cast %90 : vector<4x4x2x16xf32> to vector<4x8x16xf32>
    %92 = vector.shape_cast %87 : vector<4x8x16xf32> to vector<4x1x8x16xf32>
    %93 = vector.shape_cast %91 : vector<4x8x16xf32> to vector<4x1x8x16xf32>
    %94 = tpu.concatenate %92, %93 in 1 : vector<4x1x8x16xf32>, vector<4x1x8x16xf32> -> vector<4x2x8x16xf32>
    %95 = vector.shape_cast %94 : vector<4x2x8x16xf32> to vector<8x8x16xf32>
    %c0_97 = arith.constant 0 : index
    %c0_98 = arith.constant 0 : index
    %c0_99 = arith.constant 0 : index
    %c0_100 = arith.constant 0 : index
    %96 = vector.load %arg2[%c0_97, %c0_98, %c0_99, %c0_100] : memref<1x8x8x16xbf16, #tpu.memory_space<vmem>>, vector<1x8x8x16xbf16>
    %97 = vector.shape_cast %96 : vector<1x8x8x16xbf16> to vector<8x8x16xbf16>
    %98 = arith.extf %97 : vector<8x8x16xbf16> to vector<8x8x16xf32>
    %99 = arith.addf %95, %98 : vector<8x8x16xf32>
    %cst_101 = arith.constant 0.000000e+00 : bf16
    %100 = vector.broadcast %cst_101 : bf16 to vector<1x17x16xbf16>
    %cst_102 = arith.constant 0.000000e+00 : bf16
    %101 = vector.broadcast %cst_102 : bf16 to vector<10x1x16xbf16>
    %c0_103 = arith.constant 0 : index
    %c0_104 = arith.constant 0 : index
    %c0_105 = arith.constant 0 : index
    %102 = vector.load %arg12[%c0_103, %c0_104, %c0_105] : memref<10x17x16xbf16, #tpu.memory_space<vmem>>, vector<1x17x16xbf16>
    tpu.vector_store %arg12[%c0_103, %c0_104, %c0_105], %100 {strides = array<i32>} : memref<10x17x16xbf16, #tpu.memory_space<vmem>>, vector<1x17x16xbf16>,
    %c9_106 = arith.constant 9 : index
    %c0_107 = arith.constant 0 : index
    %c0_108 = arith.constant 0 : index
    %103 = vector.load %arg12[%c9_106, %c0_107, %c0_108] : memref<10x17x16xbf16, #tpu.memory_space<vmem>>, vector<1x17x16xbf16>
    tpu.vector_store %arg12[%c9_106, %c0_107, %c0_108], %100 {strides = array<i32>} : memref<10x17x16xbf16, #tpu.memory_space<vmem>>, vector<1x17x16xbf16>,
    %c0_109 = arith.constant 0 : index
    %c7_110 = arith.constant 7 : index
    %c0_111 = arith.constant 0 : index
    %104 = vector.load %arg12[%c0_109, %c7_110, %c0_111] : memref<10x17x16xbf16, #tpu.memory_space<vmem>>, vector<10x1x16xbf16>
    tpu.vector_store %arg12[%c0_109, %c7_110, %c0_111], %101 {strides = array<i32>} : memref<10x17x16xbf16, #tpu.memory_space<vmem>>, vector<10x1x16xbf16>,
    %c0_112 = arith.constant 0 : index
    %c16 = arith.constant 16 : index
    %c0_113 = arith.constant 0 : index
    %105 = vector.load %arg12[%c0_112, %c16, %c0_113] : memref<10x17x16xbf16, #tpu.memory_space<vmem>>, vector<10x1x16xbf16>
    tpu.vector_store %arg12[%c0_112, %c16, %c0_113], %101 {strides = array<i32>} : memref<10x17x16xbf16, #tpu.memory_space<vmem>>, vector<10x1x16xbf16>,
    %106 = arith.truncf %99 : vector<8x8x16xf32> to vector<8x8x16xbf16>
    %c1_114 = arith.constant 1 : index
    %c8_115 = arith.constant 8 : index
    %c0_116 = arith.constant 0 : index
    %107 = vector.load %arg12[%c1_114, %c8_115, %c0_116] : memref<10x17x16xbf16, #tpu.memory_space<vmem>>, vector<8x8x16xbf16>
    tpu.vector_store %arg12[%c1_114, %c8_115, %c0_116], %106 {strides = array<i32>} : memref<10x17x16xbf16, #tpu.memory_space<vmem>>, vector<8x8x16xbf16>,
    %c0_117 = arith.constant 0 : index
    %c7_118 = arith.constant 7 : index
    %c0_119 = arith.constant 0 : index
    %108 = vector.load %arg12[%c0_117, %c7_118, %c0_119] : memref<10x17x16xbf16, #tpu.memory_space<vmem>>, vector<8x8x16xbf16>
    %109 = vector.shape_cast %108 : vector<8x8x16xbf16> to vector<64x16xbf16>
    %c0_120 = arith.constant 0 : index
    %c8_121 = arith.constant 8 : index
    %c0_122 = arith.constant 0 : index
    %110 = vector.load %arg12[%c0_120, %c8_121, %c0_122] : memref<10x17x16xbf16, #tpu.memory_space<vmem>>, vector<8x8x16xbf16>
    %111 = vector.shape_cast %110 : vector<8x8x16xbf16> to vector<64x16xbf16>
    %c0_123 = arith.constant 0 : index
    %c9_124 = arith.constant 9 : index
    %c0_125 = arith.constant 0 : index
    %112 = vector.load %arg12[%c0_123, %c9_124, %c0_125] : memref<10x17x16xbf16, #tpu.memory_space<vmem>>, vector<8x8x16xbf16>
    %113 = vector.shape_cast %112 : vector<8x8x16xbf16> to vector<64x16xbf16>
    %c1_126 = arith.constant 1 : index
    %c7_127 = arith.constant 7 : index
    %c0_128 = arith.constant 0 : index
    %114 = vector.load %arg12[%c1_126, %c7_127, %c0_128] : memref<10x17x16xbf16, #tpu.memory_space<vmem>>, vector<8x8x16xbf16>
    %115 = vector.shape_cast %114 : vector<8x8x16xbf16> to vector<64x16xbf16>
    %c1_129 = arith.constant 1 : index
    %c8_130 = arith.constant 8 : index
    %c0_131 = arith.constant 0 : index
    %116 = vector.load %arg12[%c1_129, %c8_130, %c0_131] : memref<10x17x16xbf16, #tpu.memory_space<vmem>>, vector<8x8x16xbf16>
    %117 = vector.shape_cast %116 : vector<8x8x16xbf16> to vector<64x16xbf16>
    %c1_132 = arith.constant 1 : index
    %c9_133 = arith.constant 9 : index
    %c0_134 = arith.constant 0 : index
    %118 = vector.load %arg12[%c1_132, %c9_133, %c0_134] : memref<10x17x16xbf16, #tpu.memory_space<vmem>>, vector<8x8x16xbf16>
    %119 = vector.shape_cast %118 : vector<8x8x16xbf16> to vector<64x16xbf16>
    %c2_135 = arith.constant 2 : index
    %c7_136 = arith.constant 7 : index
    %c0_137 = arith.constant 0 : index
    %120 = vector.load %arg12[%c2_135, %c7_136, %c0_137] : memref<10x17x16xbf16, #tpu.memory_space<vmem>>, vector<8x8x16xbf16>
    %121 = vector.shape_cast %120 : vector<8x8x16xbf16> to vector<64x16xbf16>
    %c2_138 = arith.constant 2 : index
    %c8_139 = arith.constant 8 : index
    %c0_140 = arith.constant 0 : index
    %122 = vector.load %arg12[%c2_138, %c8_139, %c0_140] : memref<10x17x16xbf16, #tpu.memory_space<vmem>>, vector<8x8x16xbf16>
    %123 = vector.shape_cast %122 : vector<8x8x16xbf16> to vector<64x16xbf16>
    %c2_141 = arith.constant 2 : index
    %c9_142 = arith.constant 9 : index
    %c0_143 = arith.constant 0 : index
    %124 = vector.load %arg12[%c2_141, %c9_142, %c0_143] : memref<10x17x16xbf16, #tpu.memory_space<vmem>>, vector<8x8x16xbf16>
    %125 = vector.shape_cast %124 : vector<8x8x16xbf16> to vector<64x16xbf16>
    %126 = tpu.concatenate %109, %111, %113, %115, %117, %119, %121, %123, %125 in 1 : vector<64x16xbf16>, vector<64x16xbf16>, vector<64x16xbf16>, vector<64x16xbf16>, vector<64x16xbf16>, vector<64x16xbf16>, vector<64x16xbf16>, vector<64x16xbf16>, vector<64x16xbf16> -> vector<64x144xbf16>
    %c0_144 = arith.constant 0 : index
    %c0_145 = arith.constant 0 : index
    %127 = vector.load %arg6[%c0_144, %c0_145] : memref<144x16xbf16, #tpu.memory_space<vmem>>, vector<144x16xbf16>
    %cst_146 = arith.constant dense<0.000000e+00> : vector<64x16xf32>
    %128 = tpu.matmul %126, %127, %cst_146 {dimension_numbers = #tpu.dot_dimension_numbers<[1], [0], [0], [1], [0, 0, 1, 1], [], []>} : vector<64x144xbf16>, vector<144x16xbf16>, vector<64x16xf32> -> vector<64x16xf32>
    %c0_147 = arith.constant 0 : index
    %c0_148 = arith.constant 0 : index
    %129 = vector.load %arg7[%c0_147, %c0_148] : memref<1x16xf32, #tpu.memory_space<vmem>>, vector<1x16xf32>
    %130 = vector.broadcast %129 : vector<1x16xf32> to vector<64x16xf32>
    %131 = arith.mulf %128, %130 : vector<64x16xf32>
    %c0_149 = arith.constant 0 : index
    %c0_150 = arith.constant 0 : index
    %132 = vector.load %arg8[%c0_149, %c0_150] : memref<1x16xf32, #tpu.memory_space<vmem>>, vector<1x16xf32>
    %133 = vector.broadcast %132 : vector<1x16xf32> to vector<64x16xf32>
    %134 = arith.addf %131, %133 : vector<64x16xf32>
    %cst_151 = arith.constant 0.000000e+00 : f32
    %135 = vector.broadcast %cst_151 : f32 to vector<64x16xf32>
    %136 = arith.maximumf %134, %135 : vector<64x16xf32>
    %137 = vector.shape_cast %136 : vector<64x16xf32> to vector<1x8x8x16xf32>
    %138 = arith.truncf %137 : vector<1x8x8x16xf32> to vector<1x8x8x16xbf16>
    %c0_152 = arith.constant 0 : index
    %c0_153 = arith.constant 0 : index
    %c0_154 = arith.constant 0 : index
    %c0_155 = arith.constant 0 : index
    %139 = vector.load %arg9[%c0_152, %c0_153, %c0_154, %c0_155] : memref<1x8x8x16xbf16, #tpu.memory_space<vmem>>, vector<1x8x8x16xbf16>
    tpu.vector_store %arg9[%c0_152, %c0_153, %c0_154, %c0_155], %138 {strides = array<i32>} : memref<1x8x8x16xbf16, #tpu.memory_space<vmem>>, vector<1x8x8x16xbf16>,
    return
  }
  func.func @transform_0(%arg0: i32) -> (i32, i32, i32, i32) {
    %c0_i32 = arith.constant 0 : i32
    %c0_i32_0 = arith.constant 0 : i32
    %c0_i32_1 = arith.constant 0 : i32
    %c0_i32_2 = arith.constant 0 : i32
    return %arg0, %c0_i32, %c0_i32_0, %c0_i32_1 : i32, i32, i32, i32
  }
  func.func @transform_1(%arg0: i32) -> (i32, i32, i32, i32) {
    %c0_i32 = arith.constant 0 : i32
    %c0_i32_0 = arith.constant 0 : i32
    %c0_i32_1 = arith.constant 0 : i32
    %c0_i32_2 = arith.constant 0 : i32
    return %arg0, %c0_i32, %c0_i32_0, %c0_i32_1 : i32, i32, i32, i32
  }
  func.func @transform_2(%arg0: i32) -> (i32, i32) {
    %c0_i32 = arith.constant 0 : i32
    %c0_i32_0 = arith.constant 0 : i32
    %c0_i32_1 = arith.constant 0 : i32
    return %c0_i32, %c0_i32_0 : i32, i32
  }
  func.func @transform_3(%arg0: i32) -> (i32, i32) {
    %c0_i32 = arith.constant 0 : i32
    %c0_i32_0 = arith.constant 0 : i32
    %c0_i32_1 = arith.constant 0 : i32
    return %c0_i32, %c0_i32_0 : i32, i32
  }
  func.func @transform_4(%arg0: i32) -> (i32, i32) {
    %c0_i32 = arith.constant 0 : i32
    %c0_i32_0 = arith.constant 0 : i32
    %c0_i32_1 = arith.constant 0 : i32
    return %c0_i32, %c0_i32_0 : i32, i32
  }
  func.func @transform_5(%arg0: i32) -> (i32, i32) {
    %c0_i32 = arith.constant 0 : i32
    %c0_i32_0 = arith.constant 0 : i32
    %c0_i32_1 = arith.constant 0 : i32
    return %c0_i32, %c0_i32_0 : i32, i32
  }
  func.func @transform_6(%arg0: i32) -> (i32, i32) {
    %c0_i32 = arith.constant 0 : i32
    %c0_i32_0 = arith.constant 0 : i32
    %c0_i32_1 = arith.constant 0 : i32
    return %c0_i32, %c0_i32_0 : i32, i32
  }
  func.func @transform_7(%arg0: i32) -> (i32, i32) {
    %c0_i32 = arith.constant 0 : i32
    %c0_i32_0 = arith.constant 0 : i32
    %c0_i32_1 = arith.constant 0 : i32
    return %c0_i32, %c0_i32_0 : i32, i32
  }
  func.func @transform_8(%arg0: i32) -> (i32, i32, i32, i32) {
    %c0_i32 = arith.constant 0 : i32
    %c0_i32_0 = arith.constant 0 : i32
    %c0_i32_1 = arith.constant 0 : i32
    %c0_i32_2 = arith.constant 0 : i32
    return %arg0, %c0_i32, %c0_i32_0, %c0_i32_1 : i32, i32, i32, i32
  }
}

</mosaic_0001>

<bundles_post_ra>
// kernel: tpu_custom_call.1
= control target key start
LH: loop header
LB: loop body
LE: loop exit
PB: predicated region body
PF: predicated region fallthrough
CT: control target
= control target key end

     0   :  { %13 = vsyncpa [#allocation6], 0  ;;  %s4839_s0 = inlined_call_operand.vmem [shape: bf16[2,4,4,32], index: 0, kind: input, shape index: {}]   ;;  %s4840_s1 = inlined_call_operand.vmem [shape: bf16[2,8,8,16], index: 1, kind: input, shape index: {}]   ;;  %s4841_s2 = inlined_call_operand.vmem [shape: bf16[288,16], index: 2, kind: input, shape index: {}]   ;;  %s4842_s3 = inlined_call_operand.vmem [shape: f32[1,16], index: 3, kind: input, shape index: {}]   ;;  %s4843_s4 = inlined_call_operand.vmem [shape: f32[1,16], index: 4, kind: input, shape index: {}]   ;;  %s4844_s5 = inlined_call_operand.vmem [shape: bf16[144,16], index: 5, kind: input, shape index: {}]   ;;  %s4845_s6 = inlined_call_operand.vmem [shape: f32[1,16], index: 6, kind: input, shape index: {}]   ;;  %s4846_s7 = inlined_call_operand.vmem [shape: f32[1,16], index: 7, kind: input, shape index: {}]   ;;  %s4847_s8 = inlined_call_operand.hbm [shape: bf16[2,8,8,16], index: 8, kind: output, shape index: {}]  }
   0x1   :  { %15 = vsyncpa [#allocation6 + $0x1], 0  ;;  %s3559_s27 = smov 0   ;;  %s3561_s28 = smov 0  }
   0x2   :  { %s3563_s29 = smov 0   ;;  %s3565_s30 = smov 0  }
   0x3 LB: > { %s3580_s9 = sadd.s32 4294967295, %s3502_s30   ;;  %s3107_s10 = sadd.s32 4294967294, %s3502_s30   ;;  %s3502_s30 = sphi %s3565_s30, %s4879_s30   ;;  %s3498_s29 = sphi %s3563_s29, %s4878_s29   ;;  %s3494_s28 = sphi %s3561_s28, %s4877_s28   ;;  %s3490_s27 = sphi %s3559_s27, %s4876_s27  }
   0x4   : > { %s3584_s11 = sadd.s32 1, %s3502_s30   ;;  %s206_s12 = sadd.s32 1, %s3498_s29 }
   0x5   : > { %s203_s13 = ssub.s32 %s3502_s30, %s3584_s11  ;;  %p216_p0 = scmp.ne.s32.totalorder %s3498_s29, %s3494_s28 }
   0x6   : > { %p204_p1 = scmp.eq.s32.totalorder %s203_s13, 0  ;;  %p217_p2 = scmp.eq.s32.totalorder %s3580_s9, 1 }
   0x7   : > { %p222_p3 = scmp.ne.s32.totalorder %s3494_s28, %s3490_s27  ;;  %p223_p4 = scmp.eq.s32.totalorder %s3107_s10, 1 }
   0x8   : > { %s3595_s14 = scalar_select %p204_p1, %s3498_s29, %s206_s12  }
   0x9   : > { %p3597_p5 = por %p217_p2, %p216_p0  ;;  %p3601_p6 = por %p223_p4, %p222_p3 }
   0xa   : > { %p3110_p7 = scmp.ge.s32.totalorder %s3502_s30, 1  ;;  %p275_p8 = scmp.lt.s32.totalorder %s3502_s30, 3 }
   0xc   : > { %p276_p9 = pnand %p3110_p7, %p275_p8 }
   0xd   : > { %p314_p10 = scmp.lt.s32.totalorder (!%p276_p9), %s3580_s9, 1  ;;  %s3505_s22 = smov (!%p276_p9), 64  }
   0xe   : > { %279 = sbr.rel (%p276_p9) target bundleno = 904 (0x388), region = 52  ;;  %s3506_s23 = smov (!%p276_p9), 96  }
   0xf   : > { %s3507_s12 = smov (!%p276_p9), 32   ;;  %s3509_s24 = smov (!%p276_p9), 16  }
  0x10   : > { %s3510_s25 = smov (!%p276_p9), 112   ;;  %s3511_s26 = smov (!%p276_p9), 48  }
  0x11   : > { %s3512_s10 = smov (!%p276_p9), 80  }
  0x13   : > { %vm325_vm0 = vcmask 257024   ;;  %vm327_vm1 = vcmask 256000   ;;  %vm328_vm2 = vsmask.f32 2304  ;;  %v3504_v0 = vmov 0   ;;  %s3612_s17 = scalar_select %p314_p10, %s3580_s9, 1 }
  0x14   : > { %326 = vst.msk [vmem:[#allocation2] sm:$0xf] %vm325_vm0, %v3504_v0  ;;  %vm329_vm3 = vmand %vm327_vm1, %vm328_vm2  ;;  %v330_v1 = vld [vmem:[#allocation2 + $0x4] sm:$0x7]  ;;  %v335_v2 = vld [vmem:[#allocation2 + $0x2c] sm:$0x7] }
  0x15   : > { %v331_v3 = vsel %vm329_vm3, 0, %v330_v1  ;;  %v336_v4 = vsel %vm329_vm3, 0, %v335_v2  ;;  %vm338_vm4 = vcmask 257027   ;;  %vm339_vm5 = vsmask.f32 7950  ;;  %s3318_s18 = sshll.u32 %s3612_s17, 3 }
  0x16   : > { %332 = vst [vmem:[#allocation2 + $0x4] sm:$0x7] %v331_v3  ;;  %vm3615_vm6 = vmand %vm338_vm4, %vm339_vm5  ;;  %v344_v6 = vld [vmem:[#allocation2 + $0x8] sm:$0x8]  ;;  %v347_v7 = vld [vmem:[#allocation2 + $0x10] sm:$0x8]  ;;  %s318_s21 = scalar_lea.vmem %s4839_s0, %s3318_s18 }
  0x17   : > { %337 = vst [vmem:[#allocation2 + $0x2c] sm:$0x7] %v336_v4  ;;  %v345_v8 = vsel %vm3615_vm6, 0, %v344_v6  ;;  %v348_v9 = vsel %vm3615_vm6, 0, %v347_v7  ;;  %vm359_vm7 = vcmask 256002   ;;  %vm384_vm9 = vcmask 254976  }
  0x18   : > { %346 = vst [vmem:[#allocation2 + $0x8] sm:$0x8] %v345_v8  ;;  %v350_v10 = vld [vmem:[#allocation2 + $0x18] sm:$0x8]  ;;  %v353_v11 = vld [vmem:[#allocation2 + $0x20] sm:$0x8]  ;;  %vm3624_vm8 = vmand %vm359_vm7, %vm328_vm2 }
  0x19   : > { %349 = vst [vmem:[#allocation2 + $0x10] sm:$0x8] %v348_v9  ;;  %v351_v13 = vsel %vm3615_vm6, 0, %v350_v10  ;;  %v354_v14 = vsel %vm3615_vm6, 0, %v353_v11  ;;  %v364_v15 = vld [vmem:[#allocation2 + $0xc] sm:$0x4] }
  0x1a   : > { %352 = vst [vmem:[#allocation2 + $0x18] sm:$0x8] %v351_v13  ;;  %v365_v16 = vsel %vm3624_vm8, 0, %v364_v15  ;;  %v367_v17 = vld [vmem:[#allocation2 + $0x14] sm:$0x4]  ;;  %vm492_vm1 = vcmask 1041408  }
  0x1b   : > { %v341_v18 = vld [vmem:[#allocation2] sm:$0x8]  ;;  %355 = vst [vmem:[#allocation2 + $0x20] sm:$0x8] %v354_v14  ;;  %v368_v19 = vsel %vm3624_vm8, 0, %v367_v17  ;;  %vm496_vm2 = vcmask 1043458  }
  0x1c   : > { %v342_v20 = vsel %vm3615_vm6, 0, %v341_v18  ;;  %366 = vst [vmem:[#allocation2 + $0xc] sm:$0x4] %v365_v16  ;;  %v370_v21 = vld [vmem:[#allocation2 + $0x1c] sm:$0x4]  ;;  %s3319_s13 = sshll.u32 %s3612_s17, 5 }
  0x1d   : > { %343 = vst [vmem:[#allocation2] sm:$0x8] %v342_v20  ;;  %v361_v22 = vld [vmem:[#allocation2 + $0x4] sm:$0x4]  ;;  %v371_v23 = vsel %vm3624_vm8, 0, %v370_v21  ;;  %v3328_v12 = vld [vmem:[%s4841_s2 + $0x40] sm:$0xff]  ;;  %s3925_s20 = scalar_lea.vmem %s4840_s1, %s3319_s13 }
  0x1e   : > { %v362_v24 = vsel %vm3624_vm8, 0, %v361_v22  ;;  %369 = vst [vmem:[#allocation2 + $0x14] sm:$0x4] %v368_v19  ;;  %v373_v25 = vld [vmem:[#allocation2 + $0x24] sm:$0x4] }
  0x1f   : > { %363 = vst [vmem:[#allocation2 + $0x4] sm:$0x4] %v362_v24  ;;  %v374_v26 = vsel %vm3624_vm8, 0, %v373_v25  ;;  %v379_v27 = vld [vmem:[%s318_s21] sm:$0x3] }
  0x20   : > { %372 = vst [vmem:[#allocation2 + $0x1c] sm:$0x4] %v371_v23  ;;  %v380_v28 = vld [vmem:[%s318_s21 + $0x2] sm:$0x3]  ;;  %v381_v29 = vld [vmem:[%s318_s21 + $0x4] sm:$0x3] }
  0x21   : > { %375 = vst [vmem:[#allocation2 + $0x24] sm:$0x4] %v374_v26  ;;  %v382_v30 = vld [vmem:[%s318_s21 + $0x6] sm:$0x3]  ;;  %v390_v32 = vld [vmem:[#allocation2 + $0x4] sm:$0x3] }
  0x22   : > { %385 = vst.msk [vmem:[#allocation2 + $0xc] sm:$0x3] %vm384_vm9, %v379_v27  ;;  %v391_v33 = vld [vmem:[#allocation2 + $0x8] sm:$0x8]  ;;  %v393_v35 = vld [vmem:[#allocation2 + $0x10] sm:$0x8] }
  0x23   : > { %386 = vst.msk [vmem:[#allocation2 + $0x14] sm:$0x3] %vm384_vm9, %v380_v28  ;;  %v395_v37 = vld [vmem:[#allocation2 + $0x18] sm:$0x8]  ;;  %v577_v44 = vld [vmem:[#allocation2 + $0x8] sm:$0x8] }
  0x24   : > { %387 = vst.msk [vmem:[#allocation2 + $0x1c] sm:$0x3] %vm384_vm9, %v381_v29  ;;  %v389_v31 = vld [vmem:[#allocation2] sm:$0x8]  ;;  %v579_v47 = vld [vmem:[#allocation2 + $0x10] sm:$0x8] }
  0x25   : > { %388 = vst.msk [vmem:[#allocation2 + $0x24] sm:$0x3] %vm384_vm9, %v382_v30  ;;  %v581_v51 = vld [vmem:[#allocation2 + $0x18] sm:$0x8]  ;;  %v583_v53 = vld [vmem:[#allocation2 + $0x20] sm:$0x8] }
  0x26   : > { %398 = vst.sshfl [vmem:[#allocation1] sm:$0xff pattern:$0x75643120] %v389_v31  ;;  %v750_v60 = vld [vmem:[#allocation2 + $0x10] sm:$0x8]  ;;  %v3332_v28 = vld [vmem:[%s4841_s2 + $0x60] sm:$0xff] }
  0x27   : > { %400 = vst.sshfl [vmem:[#allocation1 + $0x10] sm:$0xff pattern:$0x75643120] %v390_v32  ;;  %vm425_vm10 = vsmask.f32 256 }
  0x28   : > { %406 = vst.sshfl [vmem:[#allocation1 + $0x20] sm:$0xff pattern:$0x75643120] %v391_v33  ;;  %vm426_vm11 = vsmask.f32 2312 }
  0x29   : > { %v392_v34 = vld [vmem:[#allocation2 + $0xc] sm:$0x3]  ;;  %334 = vst.msk [vmem:[#allocation2 + $0x28] sm:$0xf] %vm325_vm0, %v3504_v0  ;;  %vm3682_vm12 = vmor %vm425_vm10, %vm426_vm11  ;;  %vm428_vm13 = vsmask.f32 4368 }
  0x2a   : > { %408 = vst.sshfl [vmem:[#allocation1 + $0x30] sm:$0xff pattern:$0x75643120] %v392_v34  ;;  %v394_v36 = vld [vmem:[#allocation2 + $0x14] sm:$0x3]  ;;  %vm429_vm15 = vmor %vm3682_vm12, %vm428_vm13 }
  0x2b   : > { %v396_v38 = vld [vmem:[#allocation2 + $0x1c] sm:$0x3]  ;;  %v578_v46 = vld [vmem:[#allocation2 + $0xc] sm:$0x3]  ;;  %v580_v48 = vld [vmem:[#allocation2 + $0x14] sm:$0x3] }
  0x2c   : > { %v582_v52 = vld [vmem:[#allocation2 + $0x1c] sm:$0x3]  ;;  %v584_v54 = vld [vmem:[#allocation2 + $0x24] sm:$0x3]  ;;  %v751_v62 = vld [vmem:[#allocation2 + $0x14] sm:$0x3] }
  0x2d   : > { %v3648_v39 = vld [vmem:[#allocation1 + $0x1] ss:$2 sm:$0xff]  ;;  %vm430_vm14 = vsmask.f32 6424  ;;  %v481_v16 = vld [vmem:[#allocation2 + $0xc] sm:$0x7] }
  0x2e   : > { %v3650_v40 = vld [vmem:[#allocation1 + $0x10] ss:$2 sm:$0xff]  ;;  %414 = vst.sshfl [vmem:[#allocation1] sm:$0xff pattern:$0x75643120] %v393_v35  ;;  %v432_v11 = vshrl.u32 %v3648_v39, 16  ;;  %vm3703_vm0 = vmor %vm429_vm15, %vm430_vm14 }
  0x2f   : > { %v3652_v41 = vld [vmem:[#allocation1 + $0x21] ss:$2 sm:$0xff]  ;;  %416 = vst.sshfl [vmem:[#allocation1 + $0x10] sm:$0xff pattern:$0x75643120] %v394_v36  ;;  %v436_v1 = vshrl.u32 %v3650_v40, 16 }
  0x30   : > { %420 = vst.sshfl [vmem:[#allocation1 + $0x20] sm:$0xff pattern:$0x75643120] %v395_v37  ;;  %v443_v6 = vshrl.u32 %v3652_v41, 16  ;;  %v480_v9 = vld [vmem:[#allocation2 + $0x4] sm:$0x7] }
  0x31   : > { %v3654_v42 = vld [vmem:[#allocation1 + $0x30] ss:$2 sm:$0xff]  ;;  %v754_v10 = vld [vmem:[#allocation2 + $0x20] sm:$0x8]  ;;  %v438_v13 = vrot.slane %v436_v1, 7  ;;  %v439_v14 = vshll.u32 %v3650_v40, 16 }
  0x32   : > { %422 = vst.sshfl [vmem:[#allocation1 + $0x30] sm:$0xff pattern:$0x75643120] %v396_v38  ;;  %v447_v63 = vshrl.u32 %v3654_v42, 16  ;;  %v450_v8 = vshll.u32 %v3654_v42, 16  ;;  %v3117_v25 = vrot.slane %v443_v6, 9 }
  0x33   : > { %v755_v17 = vld [vmem:[#allocation2 + $0x24] sm:$0x3]  ;;  %v482_v27 = vld [vmem:[#allocation2 + $0x14] sm:$0x7]  ;;  %v3116_v29 = vrot.slane %v432_v11, 9  ;;  %v441_v30 = vor.u32 %v439_v14, %v438_v13  ;;  %v488_v31 = vrot.slane %v480_v9, 2 }
  0x34   : > { %v449_v7 = vrot.slane %v447_v63, 7  ;;  %v483_v34 = vld [vmem:[#allocation2 + $0x1c] sm:$0x7]  ;;  %v489_v35 = vrot.slane %v481_v16, 2  ;;  %v490_v38 = vrot.slane %v482_v27, 2  ;;  %vm1054_vm15 = vcmask 785408  }
  0x35   : > { %v3656_v43 = vld [vmem:[#allocation1 + $0x1] ss:$2 sm:$0xff]  ;;  %v442_v40 = vsel %vm3703_vm0, %v3116_v29, %v441_v30  ;;  %v491_v41 = vrot.slane %v483_v34, 2  ;;  %v495_v42 = vsel %vm492_vm1, %v480_v9, %v488_v31  ;;  %vm518_vm3 = vsmask.f32 1280 }
  0x36   : > { %v3658_v45 = vld [vmem:[#allocation1 + $0x10] ss:$2 sm:$0xff]  ;;  %586 = vst.sshfl [vmem:[#allocation1] sm:$0xff pattern:$0x75643120] %v577_v44  ;;  %v454_v15 = vshrl.u32 %v3656_v43, 16  ;;  %v452_v26 = vor.u32 %v450_v8, %v449_v7  ;;  %v502_v44 = vsel %vm492_vm1, %v481_v16, %v489_v35 }
  0x37   : > { %v3660_v49 = vld [vmem:[#allocation1 + $0x21] ss:$2 sm:$0xff]  ;;  %588 = vst.sshfl [vmem:[#allocation1 + $0x10] sm:$0xff pattern:$0x75643120] %v578_v46  ;;  %v458_v2 = vshrl.u32 %v3658_v45, 16 }
  0x38   : > { %594 = vst.sshfl [vmem:[#allocation1 + $0x20] sm:$0xff pattern:$0x75643120] %v579_v47  ;;  %v461_v19 = vshll.u32 %v3658_v45, 16  ;;  %v465_v20 = vshrl.u32 %v3660_v49, 16  ;;  %v3118_v32 = vrot.slane %v454_v15, 9  ;;  %v453_v39 = vsel %vm3703_vm0, %v3117_v25, %v452_v26 }
  0x39   : > { %v3662_v50 = vld [vmem:[#allocation1 + $0x30] ss:$2 sm:$0xff]  ;;  %v460_v18 = vrot.slane %v458_v2, 7  ;;  %v508_v47 = vsel %vm492_vm1, %v482_v27, %v490_v38  ;;  %v497_v49 = vsel %vm496_vm2, %v480_v9, %v488_v31  ;;  %v509_v2 = vsel %vm496_vm2, %v482_v27, %v490_v38  ;;  %v476_v8 = vld [vmem:[#allocation2 + $0x4] sm:$0x3] }
  0x3a   : > { %596 = vst.sshfl [vmem:[#allocation1 + $0x30] sm:$0xff pattern:$0x75643120] %v580_v48  ;;  %v469_v4 = vshrl.u32 %v3662_v50, 16  ;;  %v472_v21 = vshll.u32 %v3662_v50, 16  ;;  %v3119_v36 = vrot.slane %v465_v20, 9 }
  0x3b   : > { %v463_v33 = vor.u32 %v461_v19, %v460_v18  ;;  %v525_v50 = vshrl.u32 %v495_v42, 16  ;;  %v554_v63 = vshll.u32 %v508_v47, 16  ;;  %v499_v1 = vrot.slane %v497_v49, 2  ;;  %v478_v18 = vld [vmem:[#allocation2 + $0x14] sm:$0x3] }
  0x3c   : > { %v471_v23 = vrot.slane %v469_v4, 7  ;;  %v511_v14 = vrot.slane %v509_v2, 2  ;;  %vm519_vm4 = vsmask.f32 3336  ;;  %v479_v20 = vld [vmem:[#allocation2 + $0x1c] sm:$0x3] }
  0x3d   : > { %v3664_v55 = vld [vmem:[#allocation1 + $0x1] ss:$2 sm:$0xff]  ;;  %v464_v43 = vsel %vm3703_vm0, %v3118_v32, %v463_v33  ;;  %v527_v3 = vrot.slane %v525_v50, 6  ;;  %v534_v19 = vshll.u32 %v499_v1, 16  ;;  %vm520_vm7 = vmor %vm518_vm3, %vm519_vm4  ;;  %vm521_vm9 = vsmask.f32 5392 }
  0x3e   : > { %v3666_v56 = vld [vmem:[#allocation1 + $0x10] ss:$2 sm:$0xff]  ;;  %602 = vst.sshfl [vmem:[#allocation1] sm:$0xff pattern:$0x75643120] %v581_v51  ;;  %v474_v37 = vor.u32 %v472_v21, %v471_v23  ;;  %v528_v51 = vshll.u32 %v495_v42, 16  ;;  %vm522_vm12 = vmor %vm520_vm7, %vm521_vm9 }
  0x3f   : > { %v3668_v57 = vld [vmem:[#allocation1 + $0x21] ss:$2 sm:$0xff]  ;;  %604 = vst.sshfl [vmem:[#allocation1 + $0x10] sm:$0xff pattern:$0x75643120] %v582_v52  ;;  %v514_v52 = vsel %vm492_vm1, %v483_v34, %v491_v41  ;;  %v560_v32 = vshll.u32 %v511_v14, 16 }
  0x40   : > { %608 = vst.sshfl [vmem:[#allocation1 + $0x20] sm:$0xff pattern:$0x75643120] %v583_v53  ;;  %v475_v46 = vsel %vm3703_vm0, %v3119_v36, %v474_v37  ;;  %v538_v53 = vshrl.u32 %v502_v44, 16  ;;  %v530_v4 = vrot.slane %v528_v51, 7  ;;  %v564_v6 = vshrl.u32 %v514_v52, 16 }
  0x41   : > { %v3670_v58 = vld [vmem:[#allocation1 + $0x30] ss:$2 sm:$0xff]  ;;  %v567_v7 = vshll.u32 %v514_v52, 16  ;;  %v356_v33 = vld [vmem:[#allocation2 + $0x28] sm:$0x8]  ;;  %v617_v49 = vshrl.u32 %v3666_v56, 16 }
  0x42   : > { %610 = vst.sshfl [vmem:[#allocation1 + $0x30] sm:$0xff pattern:$0x75643120] %v584_v54  ;;  %v541_v54 = vshll.u32 %v502_v44, 16  ;;  %v540_v11 = vrot.slane %v538_v53, 6  ;;  %v531_v23 = vor.u32 %v530_v4, %v527_v3  ;;  %v566_v25 = vrot.slane %v564_v6, 6 }
  0x43   : > { %v569_v26 = vrot.slane %v567_v7, 7  ;;  %vm523_vm11 = vsmask.f32 7448  ;;  %v753_v42 = vld [vmem:[#allocation2 + $0x1c] sm:$0x3]  ;;  %v562_v44 = vrot.slane %v560_v32, 7 }
  0x44   : > { %v543_v13 = vrot.slane %v541_v54, 7  ;;  %v532_v36 = vrot.slane %v531_v23, 2  ;;  %vm3733_vm14 = vmor %vm522_vm12, %vm523_vm11  ;;  %v628_v52 = vshrl.u32 %v3670_v58, 16  ;;  %v619_v1 = vrot.slane %v617_v49, 7  ;;  %v757_v14 = vld [vmem:[#allocation2 + $0x2c] sm:$0x3] }
  0x45   : > { %v3674_v59 = vld [vmem:[#allocation1 + $0x1] ss:$2 sm:$0xff]  ;;  %v570_v37 = vor.u32 %v569_v26, %v566_v25  ;;  %v620_v2 = vshll.u32 %v3666_v56, 16  ;;  %v624_v4 = vshrl.u32 %v3668_v57, 16  ;;  %v631_v6 = vshll.u32 %v3670_v58, 16 }
  0x46   : > { %v3676_v61 = vld [vmem:[#allocation1 + $0x10] ss:$2 sm:$0xff]  ;;  %759 = vst.sshfl [vmem:[#allocation1] sm:$0xff pattern:$0x75643120] %v750_v60  ;;  %v503_v60 = vsel %vm496_vm2, %v481_v16, %v489_v35  ;;  %v556_v16 = vrot.slane %v554_v63, 7  ;;  %v544_v27 = vor.u32 %v543_v13, %v540_v11 }
  0x47   : > { %761 = vst.sshfl [vmem:[#allocation1 + $0x10] sm:$0xff pattern:$0x75643120] %v751_v62  ;;  %v551_v62 = vshrl.u32 %v508_v47, 16  ;;  %v505_v9 = vrot.slane %v503_v60, 2  ;;  %v357_v35 = vsel %vm3615_vm6, 0, %v356_v33 }
  0x48   : > { %358 = vst [vmem:[#allocation2 + $0x28] sm:$0x8] %v357_v35  ;;  %v571_v50 = vrot.slane %v570_v37, 2  ;;  %v639_v53 = vshrl.u32 %v3676_v61, 16  ;;  %v613_v63 = vshrl.u32 %v3664_v55, 16  ;;  %v642_v13 = vshll.u32 %v3676_v61, 16 }
  0x49   : > { %v553_v15 = vrot.slane %v551_v62, 6  ;;  %v547_v29 = vshll.u32 %v505_v9, 16  ;;  %v612_v5 = vld [vmem:[#allocation1 + $0x30] ss:$2 sm:$0xff]  ;;  %v630_v9 = vrot.slane %v628_v52, 7  ;;  %vm1048_vm6 = vcmask 261120  }
  0x4a   : > { %769 = vst.sshfl [vmem:[#allocation1 + $0x30] sm:$0xff pattern:$0x75643120] %v753_v42  ;;  %v650_v7 = vshrl.u32 %v612_v5, 16  ;;  %v641_v11 = vrot.slane %v639_v53, 7  ;;  %vm1294_vm3 = vcmask 125952  }
  0x4b   : > { %v557_v31 = vor.u32 %v556_v16, %v553_v15  ;;  %v653_v16 = vshll.u32 %v612_v5, 16  ;;  %v662_v61 = vld [vmem:[#allocation2 + $0x14] sm:$0x7]  ;;  %v663_v25 = vld [vmem:[#allocation2 + $0x1c] sm:$0x7]  ;;  %vm1416_vm4 = vcmask 1040384  }
  0x4c   : > { %v652_v58 = vrot.slane %v650_v7, 7  ;;  %v644_v23 = vor.u32 %v642_v13, %v641_v11  ;;  %v670_v33 = vrot.slane %v662_v61, 2  ;;  %v671_v35 = vrot.slane %v663_v25, 2  ;;  %v659_v11 = vld [vmem:[#allocation2 + $0x1c] sm:$0x3] }
  0x4d   : > { %v3698_v22 = vld [vmem:[#allocation1 + $0x1] ss:$2 sm:$0xff]  ;;  %1788 = vst.msk [vmem:[#allocation4] sm:$0xf] %vm1294_vm3, %v3504_v0  ;;  %vm1418_vm7 = vcmask 1041409   ;;  %vm1421_vm9 = vcmask 1042434  }
  0x4e   : > { %v3700_v24 = vld [vmem:[#allocation1 + $0x10] ss:$2 sm:$0xff]  ;;  %775 = vst.sshfl [vmem:[#allocation1] sm:$0xff pattern:$0x75643120] %v754_v10  ;;  %v515_v10 = vsel %vm496_vm2, %v483_v34, %v491_v41  ;;  %v536_v34 = vrot.slane %v534_v19, 7  ;;  %v687_v42 = vsel %vm492_vm1, %v663_v25, %v671_v35 }
  0x4f   : > { %777 = vst.sshfl [vmem:[#allocation1 + $0x10] sm:$0xff pattern:$0x75643120] %v755_v17  ;;  %v477_v17 = vld [vmem:[#allocation2 + $0xc] sm:$0x3]  ;;  %v517_v21 = vrot.slane %v515_v10, 2 }
  0x50   : > { %v549_v41 = vrot.slane %v547_v29, 7  ;;  %v537_v54 = vsel %vm3733_vm14, %v532_v36, %v536_v34  ;;  %v635_v10 = vshrl.u32 %v3674_v59, 16  ;;  %v756_v55 = vld [vmem:[#allocation2 + $0x28] sm:$0x8]  ;;  %v661_v19 = vld [vmem:[#allocation2 + $0xc] sm:$0x7] }
  0x51   : > { %v573_v38 = vshll.u32 %v517_v21, 16  ;;  %v3758_v15 = vld [vmem:[#allocation1 + $0x30] ss:$2 sm:$0xff]  ;;  %v3121_v59 = vrot.slane %v624_v4, 9  ;;  %v664_v29 = vld [vmem:[#allocation2 + $0x24] sm:$0x7] }
  0x52   : > { %783 = vst.sshfl [vmem:[#allocation1 + $0x30] sm:$0xff pattern:$0x75643120] %v757_v14  ;;  %v3122_v21 = vrot.slane %v635_v10, 9  ;;  %v672_v37 = vrot.slane %v664_v29, 2  ;;  %v723_v52 = vshrl.u32 %v687_v42, 16 }
  0x53   : > { %v575_v51 = vrot.slane %v573_v38, 7  ;;  %v726_v53 = vshll.u32 %v687_v42, 16  ;;  %1789 = vst.msk [vmem:[#allocation4 + $0x4] sm:$0xf] %vm1294_vm3, %v3504_v0  ;;  %vm1424_vm11 = vcmask 1043459  }
  0x54   : > { %v645_v36 = vsel %vm3703_vm0, %v3122_v21, %v644_v23  ;;  %1796 = vst.msk [vmem:[#allocation4 + $0x6c] sm:$0xf] %vm1294_vm3, %v3504_v0 }
  0x55   : > { %v3715_v45 = vld [vmem:[#allocation1 + $0x1] ss:$2 sm:$0xff]  ;;  %v576_v3 = vsel %vm3733_vm14, %v571_v50, %v575_v51  ;;  %v682_v51 = vsel %vm496_vm2, %v662_v61, %v670_v33  ;;  %v728_v14 = vrot.slane %v726_v53, 7  ;;  %1797 = vst.msk [vmem:[#allocation4 + $0x70] sm:$0xf] %vm1294_vm3, %v3504_v0 }
  0x56   : > { %v3720_v48 = vld [vmem:[#allocation1 + $0x10] ss:$2 sm:$0xff]  ;;  %926 = vst [vmem:[#allocation1 + $0x1] ss:$4 sm:$0xff] %v453_v39  ;;  %v752_v39 = vld [vmem:[#allocation2 + $0x18] sm:$0x8] }
  0x57   : > { %923 = vst [vmem:[#allocation1] ss:$4 sm:$0xff] %v442_v40  ;;  %v545_v40 = vrot.slane %v544_v27, 2  ;;  %v655_v27 = vor.u32 %v653_v16, %v652_v58  ;;  %v684_v7 = vrot.slane %v682_v51, 2  ;;  %v812_v42 = vshrl.u32 %v3720_v48, 16 }
  0x58   : > { %929 = vst [vmem:[#allocation1 + $0x2] ss:$4 sm:$0xff] %v464_v43  ;;  %v558_v43 = vrot.slane %v557_v31, 2  ;;  %v669_v31 = vrot.slane %v661_v19, 2 }
  0x59   : > { %932 = vst [vmem:[#allocation1 + $0x3] ss:$4 sm:$0xff] %v475_v46  ;;  %v611_v46 = vld [vmem:[#allocation1 + $0x21] ss:$2 sm:$0xff]  ;;  %v550_v60 = vsel %vm3733_vm14, %v545_v40, %v549_v41  ;;  %v681_v41 = vsel %vm492_vm1, %v662_v61, %v670_v33  ;;  %v719_v61 = vshll.u32 %v684_v7, 16 }
  0x5a   : > { %767 = vst.sshfl [vmem:[#allocation1 + $0x20] sm:$0xff pattern:$0x75643120] %v752_v39  ;;  %v563_v62 = vsel %vm3733_vm14, %v558_v43, %v562_v44  ;;  %v646_v57 = vshrl.u32 %v611_v46, 16  ;;  %v675_v40 = vsel %vm492_vm1, %v661_v19, %v669_v31  ;;  %v693_v43 = vsel %vm492_vm1, %v664_v29, %v672_v37 }
  0x5b   : > { %v697_v44 = vshrl.u32 %v675_v40, 16  ;;  %v700_v46 = vshll.u32 %v675_v40, 16  ;;  %v676_v5 = vsel %vm496_vm2, %v661_v19, %v669_v31  ;;  %v710_v49 = vshrl.u32 %v681_v41, 16 }
  0x5c   : > { %v3123_v26 = vrot.slane %v646_v57, 9  ;;  %v713_v50 = vshll.u32 %v681_v41, 16  ;;  %v801_v40 = vshrl.u32 %v3758_v15, 16 }
  0x5d   : > { %v702_v4 = vrot.slane %v700_v46, 7  ;;  %v786_v46 = vshrl.u32 %v3698_v22, 16  ;;  %v815_v22 = vshll.u32 %v3720_v48, 16  ;;  %v3335_v48 = vld [vmem:[%s4841_s2 + $0x78] sm:$0xff] }
  0x5e   : > { %v656_v39 = vsel %vm3703_vm0, %v3123_v26, %v655_v27  ;;  %v715_v10 = vrot.slane %v713_v50, 7  ;;  %1225 = vmatpush.bf16.msra.mxu1 %v3335_v48 }
  0x60   : > { %v3728_v30 = vld.sshfl [vmem:[#allocation1] sm:$0xff pattern:$0x73625140] }
  0x61   : > { %935 = vst [vmem:[#allocation1] ss:$4 sm:$0xff] %v476_v8  ;;  %v3756_v56 = vld [vmem:[#allocation1 + $0x21] ss:$2 sm:$0xff] }
  0x62   : > { %938 = vst [vmem:[#allocation1 + $0x1] ss:$4 sm:$0xff] %v477_v17  ;;  %v3120_v17 = vrot.slane %v613_v63, 9  ;;  %v657_v63 = vld [vmem:[#allocation2 + $0xc] sm:$0x3]  ;;  %v797_v53 = vshrl.u32 %v3756_v56, 16 }
  0x63   : > { %941 = vst [vmem:[#allocation1 + $0x2] ss:$4 sm:$0xff] %v478_v18  ;;  %v622_v18 = vor.u32 %v620_v2, %v619_v1  ;;  %v678_v1 = vrot.slane %v676_v5, 2  ;;  %v694_v2 = vsel %vm496_vm2, %v664_v29, %v672_v37  ;;  %v785_v37 = vld [vmem:[#allocation1 + $0x30] ss:$2 sm:$0xff] }
  0x64   : > { %944 = vst [vmem:[#allocation1 + $0x3] ss:$4 sm:$0xff] %v479_v20  ;;  %v633_v20 = vor.u32 %v631_v6, %v630_v9  ;;  %v658_v6 = vld [vmem:[#allocation2 + $0x14] sm:$0x3]  ;;  %v712_v9 = vrot.slane %v710_v49, 6  ;;  %v696_v57 = vrot.slane %v694_v2, 2 }
  0x65   : > { %781 = vst.sshfl [vmem:[#allocation1 + $0x20] sm:$0xff pattern:$0x75643120] %v756_v55  ;;  %v623_v32 = vsel %vm3703_vm0, %v3120_v17, %v622_v18  ;;  %v725_v55 = vrot.slane %v723_v52, 6  ;;  %v660_v18 = vld [vmem:[#allocation2 + $0x24] sm:$0x3] }
  0x66   : > { %v634_v34 = vsel %vm3703_vm0, %v3121_v59, %v633_v20  ;;  %v706_v59 = vshll.u32 %v678_v1, 16  ;;  %v716_v20 = vor.u32 %v715_v10, %v712_v9  ;;  %v745_v26 = vshll.u32 %v696_v57, 16 }
  0x67   : > { %v729_v21 = vor.u32 %v728_v14, %v725_v55  ;;  %v823_v5 = vshrl.u32 %v785_v37, 16  ;;  %v793_v52 = vshll.u32 %v3700_v24, 16  ;;  %v3125_v7 = vrot.slane %v797_v53, 9  ;;  %v3327_v14 = vld [vmem:[%s4841_s2 + $0x38] sm:$0xff]  ;;  %v3321_v53 = vld [vmem:[%s4841_s2 + $0x8] sm:$0xff] }
  0x68   : > { %v708_v29 = vrot.slane %v706_v59, 7  ;;  %v717_v31 = vrot.slane %v716_v20, 2  ;;  %1211 = vmatpush.bf16.msra.mxu0 %v3327_v14  ;;  %v832_v59 = vld [vmem:[#allocation2 + $0x24] sm:$0x3]  ;;  %v833_v20 = vld [vmem:[#allocation2 + $0x2c] sm:$0x3] }
  0x69   : > { %v730_v33 = vrot.slane %v729_v21, 2  ;;  %v825_v2 = vrot.slane %v823_v5, 7  ;;  %v3326_v21 = vld [vmem:[%s4841_s2 + $0x30] sm:$0xff] }
  0x6b   : > { %v3752_v8 = vld.sshfl [vmem:[#allocation1] sm:$0xff pattern:$0x73625140] }
  0x6c   : > { %950 = vst [vmem:[#allocation1] ss:$4 sm:$0xff] %v537_v54  ;;  %v688_v54 = vsel %vm496_vm2, %v663_v25, %v671_v35  ;;  %v784_v50 = vld [vmem:[#allocation1 + $0x21] ss:$2 sm:$0xff]  ;;  %1212 = vmatpush.bf16.msra.mxu0 %v3326_v21 }
  0x6d   : > { %953 = vst [vmem:[#allocation1 + $0x1] ss:$4 sm:$0xff] %v550_v60  ;;  %v736_v60 = vshrl.u32 %v693_v43, 16  ;;  %v690_v13 = vrot.slane %v688_v54, 2  ;;  %v803_v54 = vrot.slane %v801_v40, 7  ;;  %v819_v1 = vshrl.u32 %v784_v50, 16 }
  0x6e   : > { %956 = vst [vmem:[#allocation1 + $0x2] ss:$4 sm:$0xff] %v563_v62  ;;  %v739_v62 = vshll.u32 %v693_v43, 16  ;;  %v3322_v40 = vld [vmem:[%s4841_s2 + $0x10] sm:$0xff] }
  0x6f   : > { %959 = vst [vmem:[#allocation1 + $0x3] ss:$4 sm:$0xff] %v576_v3  ;;  %v699_v3 = vrot.slane %v697_v44, 6  ;;  %v738_v58 = vrot.slane %v736_v60, 6  ;;  %v732_v23 = vshll.u32 %v690_v13, 16  ;;  %v804_v60 = vshll.u32 %v3758_v15, 16 }
  0x70   : > { %v741_v16 = vrot.slane %v739_v62, 7  ;;  %v808_v62 = vshrl.u32 %v3715_v45, 16  ;;  %v3127_v56 = vrot.slane %v819_v1, 9 }
  0x71   : > { %v703_v19 = vor.u32 %v702_v4, %v699_v3  ;;  %v826_v3 = vshll.u32 %v785_v37, 16  ;;  %v3124_v4 = vrot.slane %v786_v46, 9 }
  0x72   : > { %v742_v25 = vor.u32 %v741_v16, %v738_v58  ;;  %v3126_v9 = vrot.slane %v808_v62, 9  ;;  %v3334_v58 = vld [vmem:[%s4841_s2 + $0x70] sm:$0xff]  ;;  %v3333_v16 = vld [vmem:[%s4841_s2 + $0x68] sm:$0xff] }
  0x73   : > { %v704_v27 = vrot.slane %v703_v19, 2  ;;  %1226 = vmatpush.bf16.msra.mxu1 %v3334_v58 }
  0x74   : > { %v743_v35 = vrot.slane %v742_v25, 2  ;;  %v3325_v25 = vld [vmem:[%s4841_s2 + $0x28] sm:$0xff] }
  0x75   : > { %1213 = vmatpush.bf16.msra.mxu0 %v3325_v25 }
  0x76   : > { %v960_v38 = vld.sshfl [vmem:[#allocation1] sm:$0xff pattern:$0x73625140] }
  0x77   : > { %965 = vst [vmem:[#allocation1] ss:$4 sm:$0xff] %v623_v32  ;;  %962 = vrot.lane.b32.xlu2 %v960_v38, %s3505_s22  ;;  %v721_v32 = vrot.slane %v719_v61, 7  ;;  %v790_v38 = vshrl.u32 %v3700_v24, 16  ;;  %v806_v24 = vor.u32 %v804_v60, %v803_v54  ;;  %1227 = vmatpush.bf16.msra.mxu1 %v3333_v16 }
  0x78   : > { %968 = vst [vmem:[#allocation1 + $0x1] ss:$4 sm:$0xff] %v634_v34  ;;  %v734_v34 = vrot.slane %v732_v23, 7  ;;  %v3331_v23 = vld [vmem:[%s4841_s2 + $0x58] sm:$0xff] }
  0x79   : > { %971 = vst [vmem:[#allocation1 + $0x2] ss:$4 sm:$0xff] %v645_v36  ;;  %v747_v36 = vrot.slane %v745_v26, 7  ;;  %v722_v41 = vsel %vm3733_vm14, %v717_v31, %v721_v32  ;;  %v792_v51 = vrot.slane %v790_v38, 7  ;;  %v807_v45 = vsel %vm3703_vm0, %v3125_v7, %v806_v24  ;;  %v3330_v26 = vld [vmem:[%s4841_s2 + $0x50] sm:$0xff]  ;;  %v3329_v31 = vld [vmem:[%s4841_s2 + $0x48] sm:$0xff] }
  0x7a   : > { %974 = vst [vmem:[#allocation1 + $0x3] ss:$4 sm:$0xff] %v656_v39  ;;  %v709_v39 = vsel %vm3733_vm14, %v704_v27, %v708_v29  ;;  %v735_v43 = vsel %vm3733_vm14, %v730_v33, %v734_v34  ;;  %v3324_v29 = vld [vmem:[%s4841_s2 + $0x20] sm:$0xff]  ;;  %v3323_v32 = vld [vmem:[%s4841_s2 + $0x18] sm:$0xff] }
  0x7b   : > { %v748_v49 = vsel %vm3733_vm14, %v743_v35, %v747_v36  ;;  %1228 = vmatpush.bf16.msra.mxu1 %v3332_v28  ;;  %1214 = vmatpush.bf16.msra.mxu0 %v3324_v29  ;;  %v834_v33 = vld [vmem:[#allocation2 + $0x14] sm:$0x7]  ;;  %v835_v34 = vld [vmem:[#allocation2 + $0x1c] sm:$0x7]  ;;  %v836_v35 = vld [vmem:[#allocation2 + $0x24] sm:$0x7] }
  0x7c   : > { %v842_v37 = vrot.slane %v834_v33, 2  ;;  %v843_v38 = vrot.slane %v835_v34, 2 }
  0x7e   : > { %v854_v46 = vsel %vm492_vm1, %v835_v34, %v843_v38  ;;  %v849_v54 = vsel %vm496_vm2, %v834_v33, %v842_v37  ;;  %v855_v60 = vsel %vm496_vm2, %v835_v34, %v843_v38 }
  0x7f   : > { %1229 = vmatpush.bf16.msra.mxu1 %v3331_v23  ;;  %1215 = vmatpush.bf16.msra.mxu0 %v3323_v32  ;;  %v857_v1 = vrot.slane %v855_v60, 2  ;;  %v886_v24 = vshll.u32 %v854_v46, 16  ;;  %v3437_v60 = vld [vmem:[%s4843_s4] ss:$0 sm:$0xff] }
  0x81   : > { %v975_v17 = vld.sshfl [vmem:[#allocation1] sm:$0xff pattern:$0x73625140] }
  0x82   : > { %980 = vst [vmem:[#allocation1] ss:$4 sm:$0xff] %v657_v63  ;;  %977 = vrot.lane.b32.xlu2 %v975_v17, %s3506_s23  ;;  %v814_v63 = vrot.slane %v812_v42, 7  ;;  %v830_v17 = vld [vmem:[#allocation2 + $0x14] sm:$0x3]  ;;  %v3337_v42 = vld [vmem:[%s4841_s2 + $0x88] sm:$0xff] }
  0x83   : > { %983 = vst [vmem:[#allocation1 + $0x1] ss:$4 sm:$0xff] %v658_v6  ;;  %v795_v6 = vor.u32 %v793_v52, %v792_v51  ;;  %1230 = vmatpush.bf16.msra.mxu1 %v3330_v26  ;;  %1216 = vmatpush.bf16.msra.mxu0 %v3322_v40  ;;  %v883_v52 = vshrl.u32 %v854_v46, 16 }
  0x84   : > { %986 = vst [vmem:[#allocation1 + $0x2] ss:$4 sm:$0xff] %v659_v11  ;;  %v817_v10 = vor.u32 %v815_v22, %v814_v63  ;;  %v828_v11 = vor.u32 %v826_v3, %v825_v2  ;;  %v851_v22 = vrot.slane %v849_v54, 2 }
  0x85   : > { %989 = vst [vmem:[#allocation1 + $0x3] ss:$4 sm:$0xff] %v660_v18  ;;  %v796_v15 = vsel %vm3703_vm0, %v3124_v4, %v795_v6  ;;  %v831_v18 = vld [vmem:[#allocation2 + $0x1c] sm:$0x3]  ;;  %v885_v7 = vrot.slane %v883_v52, 6 }
  0x86   : > { %v818_v55 = vsel %vm3703_vm0, %v3126_v9, %v817_v10  ;;  %v829_v57 = vsel %vm3703_vm0, %v3127_v56, %v828_v11  ;;  %v879_v9 = vshll.u32 %v851_v22, 16  ;;  %v892_v10 = vshll.u32 %v857_v1, 16  ;;  %v3436_v52 = vld [vmem:[%s4842_s3] ss:$0 sm:$0xff] }
  0x87   : > { %1231 = vmatpush.bf16.msra.mxu1 %v3329_v31  ;;  %1217 = vmatpush.bf16.msra.mxu0 %v3321_v53  ;;  %vm1275_vm0 = vcmask 126976  }
  0x88   : > { %v881_v14 = vrot.slane %v879_v9, 7  ;;  %v894_v28 = vrot.slane %v892_v10, 7 }
  0x8b   : > { %1232 = vmatpush.bf16.msra.mxu1 %v3328_v12 }
  0x8c   : > { %v3787_v44 = vld.sshfl [vmem:[#allocation1] sm:$0xff pattern:$0x73625140] }
  0x8d   : > { %992 = vst [vmem:[#allocation1] ss:$4 sm:$0xff] %v709_v39  ;;  %v844_v39 = vrot.slane %v836_v35, 2 }
  0x8e   : > { %995 = vst [vmem:[#allocation1 + $0x1] ss:$4 sm:$0xff] %v722_v41 }
  0x8f   : > { %998 = vst [vmem:[#allocation1 + $0x2] ss:$4 sm:$0xff] %v735_v43  ;;  %v848_v43 = vsel %vm492_vm1, %v834_v33, %v842_v37  ;;  %v860_v5 = vsel %vm492_vm1, %v836_v35, %v844_v39  ;;  %1245 = vmatpush.bf16.msrb.mxu1 %v3337_v42  ;;  %v861_v62 = vsel %vm496_vm2, %v836_v35, %v844_v39 }
  0x90   : > { %1001 = vst [vmem:[#allocation1 + $0x3] ss:$4 sm:$0xff] %v748_v49  ;;  %v870_v50 = vshrl.u32 %v848_v43, 16  ;;  %v873_v51 = vshll.u32 %v848_v43, 16  ;;  %v863_v2 = vrot.slane %v861_v62, 2  ;;  %v896_v56 = vshrl.u32 %v860_v5, 16 }
  0x91   : > { %v899_v11 = vshll.u32 %v860_v5, 16  ;;  %v3508_v5 = vmov 0.0  }
  0x92   : > { %v872_v4 = vrot.slane %v870_v50, 6  ;;  %v875_v6 = vrot.slane %v873_v51, 7  ;;  %v905_v48 = vshll.u32 %v863_v2, 16  ;;  %1276 = vst.msk [vmem:[#allocation3 + $0x8] sm:$0x1f] %vm1275_vm0, %v3508_v5 }
  0x93   : > { %v901_v58 = vrot.slane %v899_v11, 7  ;;  %1279 = vst.msk [vmem:[#allocation3 + $0x58] sm:$0x1f] %vm1275_vm0, %v3508_v5  ;;  %vm2096_vm0 = vsmask.f32 3328 }
  0x97   : > { %v1002_v13 = vld.sshfl [vmem:[#allocation1] sm:$0xff pattern:$0x73625140] }
  0x98   : > { %1004 = vrot.lane.b32.xlu0 %v1002_v13, %s3507_s12  ;;  %1007 = vst [vmem:[#allocation1] ss:$4 sm:$0xff] %v796_v15  ;;  %v876_v15 = vor.u32 %v875_v6, %v872_v4 }
  0x99   : > { %1010 = vst [vmem:[#allocation1 + $0x1] ss:$4 sm:$0xff] %v807_v45  ;;  %v888_v45 = vrot.slane %v886_v24, 7  ;;  %v1303_v6 = vld [vmem:[#allocation3 + $0x8] sm:$0xf] }
  0x9a   : > { %1013 = vst [vmem:[#allocation1 + $0x2] ss:$4 sm:$0xff] %v818_v55  ;;  %v3320_v55 = vld [vmem:[%s4841_s2] sm:$0xff]  ;;  %v877_v16 = vrot.slane %v876_v15, 2  ;;  %v1307_v11 = vmul.f32 0.1875, %v1303_v6 }
  0x9b   : > { %1016 = vst [vmem:[#allocation1 + $0x3] ss:$4 sm:$0xff] %v829_v57  ;;  %v898_v57 = vrot.slane %v896_v56, 6  ;;  %1218 = vmatpush.bf16.msra.mxu0 %v3320_v55 }
  0x9c   : > { %v882_v23 = vsel %vm3733_vm14, %v877_v16, %v881_v14 }
  0xa2   : > { %v1017_v19 = vld.sshfl [vmem:[#allocation1] sm:$0xff pattern:$0x73625140] }
  0xa3   : > { %1019 = vrot.lane.b32.xlu0 %v1017_v19, %s3505_s22  ;;  %1022 = vst [vmem:[#allocation1] ss:$4 sm:$0xff] %v830_v17  ;;  %v889_v17 = vor.u32 %v888_v45, %v885_v7  ;;  %v3336_v19 = vld [vmem:[%s4841_s2 + $0x80] sm:$0xff] }
  0xa4   : > { %1025 = vst [vmem:[#allocation1 + $0x1] ss:$4 sm:$0xff] %v831_v18  ;;  %v907_v18 = vrot.slane %v905_v48, 7  ;;  %1246 = vmatpush.bf16.msrb.mxu1 %v3336_v19 }
  0xa5   : > { %1028 = vst [vmem:[#allocation1 + $0x2] ss:$4 sm:$0xff] %v832_v59  ;;  %v902_v59 = vor.u32 %v901_v58, %v898_v57  ;;  %v890_v25 = vrot.slane %v889_v17, 2 }
  0xa6   : > { %1031 = vst [vmem:[#allocation1 + $0x3] ss:$4 sm:$0xff] %v833_v20 }
  0xa7   : > { %v903_v26 = vrot.slane %v902_v59, 2 }
  0xa9   : > { %v908_v29 = vsel %vm3733_vm14, %v903_v26, %v907_v18  ;;  %v3376_v18 = vld [vmem:[%s3925_s20 + $0x8] sm:$0xff]  }
  0xad   : > { %v1032_v61 = vld.sshfl [vmem:[#allocation1] sm:$0xff pattern:$0x73625140] }
  0xae   : > { %1034 = vrot.lane.b32.xlu1 %v1032_v61, %s3506_s23  ;;  %1037 = vst [vmem:[#allocation1] ss:$4 sm:$0xff] %v882_v23 }
  0xaf   : > { %1043 = vst [vmem:[#allocation1 + $0x2] ss:$4 sm:$0xff] %v908_v29 }
  0xb6   : > { %947 = vrot.lane.b32.xlu1 %v3752_v8, %s3507_s12  ;;  %v376_v8 = vld [vmem:[#allocation2 + $0x2c] sm:$0x4] }
  0xb7   : > { %v377_v27 = vsel %vm3624_vm8, 0, %v376_v8  ;;  %vm1051_vm8 = vcmask 523264  }
  0xb8   : > { %378 = vst [vmem:[#allocation2 + $0x2c] sm:$0x4] %v377_v27  ;;  %v895_v27 = vsel %vm3733_vm14, %v890_v25, %v894_v28 }
  0xb9   : > { %1040 = vst [vmem:[#allocation1 + $0x1] ss:$4 sm:$0xff] %v895_v27 }
  0xbf   : > { %v837_v36 = vld [vmem:[#allocation2 + $0x2c] sm:$0x7] }
  0xc0   : > { %v845_v41 = vrot.slane %v837_v36, 2 }
  0xc2   : > { %v866_v49 = vsel %vm492_vm1, %v837_v36, %v845_v41  ;;  %v867_v63 = vsel %vm496_vm2, %v837_v36, %v845_v41  ;;  %vm1280_vm1 = vcmask 122880   ;;  %vm1273_vm2 = vcmask 130048  }
  0xc3   : > { %v869_v3 = vrot.slane %v867_v63, 2  ;;  %v909_v13 = vshrl.u32 %v866_v49, 16  ;;  %v912_v61 = vshll.u32 %v866_v49, 16  ;;  %1282 = vst.msk [vmem:[#allocation3 + $0x17] sm:$0x1] %vm1280_vm1, %v3508_v5  ;;  %vm4249_vm12 = vmand %vm1280_vm1, %vm425_vm10 }
  0xc4   : > { %1274 = vst.msk [vmem:[#allocation3] sm:$0xff] %vm1273_vm2, %v3508_v5 }
  0xc5   : > { %v911_v20 = vrot.slane %v909_v13, 6  ;;  %v918_v21 = vshll.u32 %v869_v3, 16  ;;  %v914_v8 = vrot.slane %v912_v61, 7  ;;  %1281 = vst.msk [vmem:[#allocation3 + $0x7] sm:$0x1] %vm1280_vm1, %v3508_v5  ;;  %v3361_v13 = vld [vmem:[%s3925_s20] sm:$0xff]  }
  0xc6   : > { %1283 = vst.msk [vmem:[#allocation3 + $0x27] sm:$0x1] %vm1280_vm1, %v3508_v5  ;;  %v3934_v23 = vunpack.c.l.bf16 %v3361_v13 }
  0xc7   : > { %v915_v31 = vor.u32 %v914_v8, %v911_v20  ;;  %v920_v32 = vrot.slane %v918_v21, 7  ;;  %1287 = vst.msk [vmem:[#allocation3 + $0xc] sm:$0x1] %vm1280_vm1, %v3508_v5 }
  0xc8   : > { %1288 = vst.msk [vmem:[#allocation3 + $0x1c] sm:$0x1] %vm1280_vm1, %v3508_v5 }
  0xc9   : > { %v916_v12 = vrot.slane %v915_v31, 2  ;;  %1289 = vst.msk [vmem:[#allocation3 + $0x2c] sm:$0x1] %vm1280_vm1, %v3508_v5  ;;  %v3939_v31 = vunpack.c.l.bf16 %v3376_v18 }
  0xca   : > { %1278 = vst.msk [vmem:[#allocation3 + $0x50] sm:$0xff] %vm1273_vm2, %v3508_v5 }
  0xcb   : > { %v921_v33 = vsel %vm3733_vm14, %v916_v12, %v920_v32  ;;  %1284 = vst.msk [vmem:[#allocation3 + $0x37] sm:$0x1] %vm1280_vm1, %v3508_v5  ;;  %v1315_v12 = vld [vmem:[#allocation3 + $0x58] sm:$0xf]  ;;  %vm1801_vm14 = vcmask 125955  }
  0xcc   : > { %1046 = vst [vmem:[#allocation1 + $0x3] ss:$4 sm:$0xff] %v921_v33  ;;  %v1336_v24 = vld [vmem:[#allocation3 + $0x7] sm:$0xf] }
  0xcd   : > { %1285 = vst.msk [vmem:[#allocation3 + $0x47] sm:$0x1] %vm1280_vm1, %v3508_v5  ;;  %v1340_v45 = vmul.f32 0.0625, %v1336_v24 }
  0xce   : > { %1290 = vst.msk [vmem:[#allocation3 + $0x3c] sm:$0x1] %vm1280_vm1, %v3508_v5  ;;  %v1344_v9 = vld [vmem:[#allocation3 + $0x9] sm:$0xf] }
  0xcf   : > { %1291 = vst.msk [vmem:[#allocation3 + $0x4c] sm:$0x1] %vm1280_vm1, %v3508_v5  ;;  %v1348_v48 = vmul.f32 0.0625, %v1344_v9 }
  0xd0   : > { %1286 = vst.msk [vmem:[#allocation3 + $0x57] sm:$0x1] %vm1280_vm1, %v3508_v5 }
  0xd1   : > { %v963_v37 = vpop.permute.xlu2 %962  ;;  %1292 = vst.msk [vmem:[#allocation3 + $0x5c] sm:$0x1] %vm1280_vm1, %v3508_v5  ;;  %vm2097_vm1 = vsmask.f32 7440 }
  0xdc   : > { %v978_v42 = vpop.permute.xlu2 %977 }
 0x10a   : > { %v1005_v34 = vpop.permute.xlu0 %1004 }
 0x10b   : > { %v1059_v35 = vsel %vm1048_vm6, %v3787_v44, %v1005_v34  ;;  %v1047_v44 = vld.sshfl [vmem:[#allocation1] sm:$0xff pattern:$0x73625140] }
 0x115   : > { %v1020_v36 = vpop.permute.xlu0 %1019 }
 0x116   : > { %v1061_v38 = vsel %vm1051_vm8, %v1059_v35, %v1020_v36  ;;  %v3945_v36 = vunpack.c.h.bf16 %v3361_v13 }
 0x120   : > { %v1035_v39 = vpop.permute.xlu1 %1034 }
 0x121   : > { %v1063_v40 = vsel %vm1054_vm15, %v1061_v38, %v1035_v39  ;;  %v3952_v39 = vunpack.c.h.bf16 %v3376_v18 }
 0x122   : > { %1233 = vmatmul.bf16.vlgmr.msra.gmra.mxu1 %v1063_v40  ;;  %v1709_v40 = vrot.slane %v3934_v23, 4 }
 0x128   : > { %v948_v41 = vpop.permute.xlu1 %947 }
 0x129   : > { %v1050_v47 = vsel %vm1048_vm6, %v3728_v30, %v948_v41  ;;  %v1710_v41 = vrot.slane %v3934_v23, 6 }
 0x12a   : > { %v1053_v43 = vsel %vm1051_vm8, %v1050_v47, %v963_v37  ;;  %v1708_v37 = vrot.slane %v3934_v23, 2 }
 0x12b   : > { %v1056_v46 = vsel %vm1054_vm15, %v1053_v43, %v978_v42  ;;  %v1714_v43 = vrot.slane %v3939_v31, 2 }
 0x12c   : > { %1219 = vmatmul.bf16.vlgmr.msra.gmra.mxu0 %v1056_v46  ;;  %v1715_v46 = vrot.slane %v3939_v31, 4 }
 0x132   : > { %3200 = vmatmul.msk.bf16.vlgmr.msrb.gmra.mxu1 %vm1048_vm6, %v1047_v44  ;;  %v3958_v44 = vmul.f32 0.1875, %v1315_v12 }
 0x19f   : > { %v1234_v30 = vpop.f32.mrf.mxu1 }
 0x1a7   : > { %v1236_v49 = vpop.f32.mrf.mxu1 }
 0x1a9   : > { %v1220_v50 = vpop.f32.mrf.mxu0 }
 0x1aa   : > { %v1235_v51 = vadd.f32 %v1234_v30, %v1220_v50 }
 0x1af   : > { %v1248_v53 = vpop.f32.mrf.mxu1 }
 0x1b0   : > { %v1249_v54 = vadd.f32 %v1248_v53, %v1235_v51  ;;  %v1711_v53 = vrot.slane %v3945_v36, 2 }
 0x1b1   : > { %v1222_v63 = vpop.f32.mrf.mxu0 }
 0x1b2   : > { %v1257_v62 = vmul.f32 %v3436_v52, %v1249_v54  ;;  %v1237_v1 = vadd.f32 %v1236_v49, %v1222_v63  ;;  %v1712_v54 = vrot.slane %v3945_v36, 4 }
 0x1b4   : > { %v1263_v22 = vadd.f32 %v3437_v60, %v1257_v62 }
 0x1b6   : > { %v1265_v0 = vmax.f32 %v1263_v22, 0.0  ;;  %v1713_v22 = vrot.slane %v3945_v36, 6 }
 0x1b7   : > { %v1250_v2 = vpop.f32.mrf.mxu1 }
 0x1b8   : > { %v1269_v3 = vrot.slane %v1265_v0, 4  ;;  %1295 = vst.msk [vmem:[#allocation3 + $0x18] sm:$0xf] %vm1294_vm3, %v1265_v0  ;;  %v1251_v4 = vadd.f32 %v1250_v2, %v1237_v1  ;;  %v1299_v56 = vmul.f32 0.5625, %v1265_v0  ;;  %v1717_v0 = vrot.slane %v3952_v39, 2 }
 0x1ba   : > { %1296 = vst.msk [vmem:[#allocation3 + $0x28] sm:$0xf] %vm1294_vm3, %v1269_v3  ;;  %v1258_v7 = vmul.f32 %v3436_v52, %v1251_v4  ;;  %v3927_v15 = vmul.f32 0.5625, %v1269_v3  ;;  %v1368_v21 = vadd.f32 %v1307_v11, %v1299_v56  ;;  %v1718_v4 = vrot.slane %v3952_v39, 4 }
 0x1bc   : > { %v1264_v10 = vadd.f32 %v3437_v60, %v1258_v7  ;;  %v1716_v60 = vrot.slane %v3939_v31, 6 }
 0x1be   : > { %v3930_v55 = vmax.f32 %v1264_v10, 0.0 }
 0x1bf   : > { %v1304_v14 = vld [vmem:[#allocation3 + $0x18] sm:$0xf] }
 0x1c0   : > { %v1320_v57 = vld [vmem:[#allocation3 + $0x17] sm:$0xf]  ;;  %v1308_v16 = vmul.f32 0.1875, %v1304_v14  ;;  %v1270_v19 = vrot.slane %v3930_v55, 4  ;;  %1297 = vst.msk [vmem:[#allocation3 + $0x38] sm:$0xf] %vm1294_vm3, %v3930_v55 }
 0x1c1   : > { %v1328_v58 = vld [vmem:[#allocation3 + $0x19] sm:$0xf]  ;;  %v1324_v17 = vmul.f32 0.1875, %v1320_v57  ;;  %v1312_v59 = vld [vmem:[#allocation3 + $0x28] sm:$0xf]  ;;  %v3973_v9 = vmul.f32 0.5625, %v3930_v55 }
 0x1c2   : > { %v1332_v28 = vmul.f32 0.1875, %v1328_v58  ;;  %v1321_v20 = vld [vmem:[#allocation3 + $0x27] sm:$0xf]  ;;  %v1316_v25 = vmul.f32 0.1875, %v1312_v59  ;;  %v1369_v8 = vadd.f32 %v1308_v16, %v3927_v15  ;;  %v1345_v33 = vld [vmem:[#allocation3 + $0x19] sm:$0xf] }
 0x1c3   : > { %v1329_v61 = vld [vmem:[#allocation3 + $0x29] sm:$0xf]  ;;  %v1372_v27 = vadd.f32 %v1368_v21, %v1324_v17  ;;  %v3941_v32 = vmul.f32 0.1875, %v1321_v20  ;;  %1298 = vst.msk [vmem:[#allocation3 + $0x48] sm:$0xf] %vm1294_vm3, %v1270_v19  ;;  %v1349_v5 = vmul.f32 0.0625, %v1345_v33 }
 0x1c4   : > { %v3936_v26 = vmul.f32 0.1875, %v1329_v61  ;;  %v1380_v29 = vadd.f32 %v1368_v21, %v1332_v28  ;;  %v1388_v35 = vadd.f32 %v1316_v25, %v1299_v56  ;;  %v1337_v42 = vld [vmem:[#allocation3 + $0x17] sm:$0xf]  ;;  %v1352_v30 = vld [vmem:[#allocation3 + $0x27] sm:$0xf]  ;;  %v3984_v61 = vmul.f32 0.5625, %v1270_v19 }
 0x1c5   : > { %v1376_v47 = vadd.f32 %v1372_v27, %v1340_v45  ;;  %v1360_v49 = vld [vmem:[#allocation3 + $0x29] sm:$0xf]  ;;  %v1373_v50 = vadd.f32 %v1369_v8, %v3941_v32  ;;  %v1341_v62 = vmul.f32 0.0625, %v1337_v42  ;;  %v1356_v1 = vmul.f32 0.0625, %v1352_v30 }
 0x1c6   : > { %v1384_v34 = vadd.f32 %v1380_v29, %v1348_v48  ;;  %v1381_v38 = vadd.f32 %v1369_v8, %v3936_v26  ;;  %v1392_v52 = vadd.f32 %v1388_v35, %v1324_v17  ;;  %v1364_v2 = vmul.f32 0.0625, %v1360_v49  ;;  %v1305_v48 = vld [vmem:[#allocation3 + $0x28] sm:$0xf] }
 0x1c7   : > { %v1412_v3 = vrot.slane %v1376_v47, 3  ;;  %v3969_v6 = vadd.f32 %v1373_v50, %v1341_v62  ;;  %v1400_v7 = vadd.f32 %v1388_v35, %v1332_v28  ;;  %v3986_v21 = vmul.f32 0.1875, %v1305_v48 }
 0x1c8   : > { %v1468_v51 = vrot.slane %v1384_v34, 3  ;;  %v3964_v63 = vadd.f32 %v1381_v38, %v1349_v5  ;;  %v1396_v10 = vadd.f32 %v1392_v52, %v1356_v1 }
 0x1c9   : > { %v1419_v16 = vsel %vm1418_vm7, %v1376_v47, %v1412_v3  ;;  %v1422_v17 = vsel %vm1421_vm9, %v1376_v47, %v1412_v3  ;;  %v1425_v28 = vsel %vm1424_vm11, %v1376_v47, %v1412_v3  ;;  %v1404_v59 = vadd.f32 %v1400_v7, %v1364_v2 }
 0x1ca   : > { %v1472_v24 = vsel %vm1416_vm4, %v1384_v34, %v1468_v51  ;;  %v1473_v56 = vsel %vm1418_vm7, %v1384_v34, %v1468_v51  ;;  %v1475_v11 = vsel %vm1421_vm9, %v1384_v34, %v1468_v51  ;;  %v1477_v45 = vsel %vm1424_vm11, %v1384_v34, %v1468_v51 }
 0x1cb   : > { %v1469_v13 = vrot.slane %v3964_v63, 3  ;;  %v1474_v14 = vrot.slane %v1473_v56, 1  ;;  %v1476_v57 = vrot.slane %v1475_v11, 2  ;;  %v1478_v58 = vrot.slane %v1477_v45, 3 }
 0x1cc   : > { %v1500_v18 = vperm.slane %v1472_v24, 0  ;;  %v3989_v25 = vrot.slane %v3969_v6, 3  ;;  %v1417_v8 = vsel %vm1416_vm4, %v1376_v47, %v1412_v3  ;;  %v1420_v12 = vrot.slane %v1419_v16, 1 }
 0x1cd   : > { %v1501_v20 = vperm.slane %v1474_v14, 0  ;;  %v1502_v27 = vperm.slane %v1476_v57, 0  ;;  %v1503_v29 = vperm.slane %v1478_v58, 0  ;;  %v1423_v33 = vrot.slane %v1422_v17, 2 }
 0x1ce   : > { %v1426_v34 = vrot.slane %v1425_v28, 3  ;;  %v3994_v35 = vsel %vm1418_vm7, %v3964_v63, %v1469_v13  ;;  %v3998_v55 = vsel %vm1421_vm9, %v3964_v63, %v1469_v13  ;;  %v4002_v19 = vsel %vm1424_vm11, %v3964_v63, %v1469_v13 }
 0x1cf   : > { %v1532_v38 = vsel %vm1416_vm4, %v1417_v8, %v1500_v18  ;;  %v1552_v42 = vrot.slane %v1396_v10, 3  ;;  %v1533_v47 = vsel %vm1416_vm4, %v1420_v12, %v1501_v20  ;;  %v1534_v5 = vsel %vm1416_vm4, %v1423_v33, %v1502_v27  ;;  %v1306_v18 = vld [vmem:[#allocation3 + $0x38] sm:$0xf] }
 0x1d0   : > { %v1535_v30 = vsel %vm1416_vm4, %v1426_v34, %v1503_v29  ;;  %v1604_v49 = vrot.slane %v1404_v59, 3  ;;  %v1756_v58 = vadd.f32 %v3934_v23, %v1532_v38  ;;  %v1758_v17 = vadd.f32 %v1709_v40, %v1534_v5  ;;  %v1323_v23 = vld [vmem:[#allocation3 + $0x47] sm:$0xf] }
 0x1d1   : > { %v1556_v50 = vsel %vm1416_vm4, %v1396_v10, %v1552_v42  ;;  %v1557_v51 = vsel %vm1418_vm7, %v1396_v10, %v1552_v42  ;;  %v1559_v52 = vsel %vm1421_vm9, %v1396_v10, %v1552_v42  ;;  %v1561_v62 = vsel %vm1424_vm11, %v1396_v10, %v1552_v42  ;;  %v1313_v42 = vld [vmem:[#allocation3 + $0x38] sm:$0xf]  ;;  %v1331_v5 = vld [vmem:[#allocation3 + $0x49] sm:$0xf] }
 0x1d2   : > { %v1558_v1 = vrot.slane %v1557_v51, 1  ;;  %v1560_v2 = vrot.slane %v1559_v52, 2  ;;  %v1562_v3 = vrot.slane %v1561_v62, 3  ;;  %v1608_v7 = vsel %vm1416_vm4, %v1404_v59, %v1604_v49  ;;  %1895 = vst [vmem:[#allocation1] ss:$4 sm:$0xff] %v1756_v58 }
 0x1d3   : > { %v1609_v24 = vsel %vm1418_vm7, %v1404_v59, %v1604_v49  ;;  %v1611_v56 = vsel %vm1421_vm9, %v1404_v59, %v1604_v49  ;;  %v1613_v11 = vsel %vm1424_vm11, %v1404_v59, %v1604_v49  ;;  %v1636_v45 = vperm.slane %v1608_v7, 0  ;;  %1899 = vst [vmem:[#allocation1 + $0x2] ss:$4 sm:$0xff] %v1758_v17  ;;  %v1339_v52 = vld [vmem:[#allocation3 + $0x37] sm:$0xf] }
 0x1d4   : > { %v1610_v48 = vrot.slane %v1609_v24, 1  ;;  %v1612_v14 = vrot.slane %v1611_v56, 2  ;;  %v1614_v57 = vrot.slane %v1613_v11, 3  ;;  %v1757_v10 = vadd.f32 %v1708_v37, %v1533_v47  ;;  %v1314_v47 = vld [vmem:[#allocation3 + $0x48] sm:$0xf] }
 0x1d5   : > { %v1668_v16 = vsel %vm1416_vm4, %v1556_v50, %v1636_v45  ;;  %v1759_v28 = vadd.f32 %v1710_v41, %v1535_v30  ;;  %v1428_v29 = vsel %vm1418_vm7, %v3969_v6, %v3989_v25  ;;  %v1479_v37 = vsel %vm1416_vm4, %v3964_v63, %v1469_v13  ;;  %v1330_v30 = vld [vmem:[#allocation3 + $0x39] sm:$0xf] }
 0x1d6   : > { %v1637_v20 = vperm.slane %v1610_v48, 0  ;;  %v1638_v59 = vperm.slane %v1612_v14, 0  ;;  %v1639_v8 = vperm.slane %v1614_v57, 0  ;;  %v1760_v27 = vadd.f32 %v3945_v36, %v1668_v16  ;;  %1897 = vst [vmem:[#allocation1 + $0x1] ss:$4 sm:$0xff] %v1757_v10 }
 0x1d7   : > { %v1481_v12 = vrot.slane %v3994_v35, 1  ;;  %v1483_v40 = vrot.slane %v3998_v55, 2  ;;  %v1485_v41 = vrot.slane %v4002_v19, 3  ;;  %v1310_v55 = vmul.f32 0.1875, %v1306_v18  ;;  %v1322_v19 = vld [vmem:[#allocation3 + $0x37] sm:$0xf] }
 0x1d8   : > { %v1669_v33 = vsel %vm1416_vm4, %v1558_v1, %v1637_v20  ;;  %v1670_v34 = vsel %vm1416_vm4, %v1560_v2, %v1638_v59  ;;  %v1671_v38 = vsel %vm1416_vm4, %v1562_v3, %v1639_v8  ;;  %1904 = vst [vmem:[#allocation1 + $0x20] ss:$4 sm:$0xff] %v1760_v27  ;;  %v1429_v49 = vrot.slane %v1428_v29, 1  ;;  %v1347_v62 = vld [vmem:[#allocation3 + $0x39] sm:$0xf] }
 0x1d9   : > { %v1761_v63 = vadd.f32 %v1711_v53, %v1669_v33  ;;  %v1762_v13 = vadd.f32 %v1712_v54, %v1670_v34  ;;  %v1763_v35 = vadd.f32 %v1713_v22, %v1671_v38  ;;  %v1430_v50 = vsel %vm1421_vm9, %v3969_v6, %v3989_v25  ;;  %1901 = vst [vmem:[#allocation1 + $0x3] ss:$4 sm:$0xff] %v1759_v28  ;;  %v1338_v57 = vld [vmem:[#allocation3 + $0x27] sm:$0xf]  ;;  %v1353_v27 = vld [vmem:[#allocation3 + $0x37] sm:$0xf] }
 0x1da   : > { %v1504_v51 = vperm.slane %v1479_v37, 0  ;;  %v1427_v53 = vsel %vm1416_vm4, %v3969_v6, %v3989_v25  ;;  %v1432_v36 = vsel %vm1424_vm11, %v3969_v6, %v3989_v25  ;;  %v1327_v54 = vmul.f32 0.1875, %v1323_v23  ;;  %v1346_v16 = vld [vmem:[#allocation3 + $0x29] sm:$0xf] }
 0x1db   : > { %1906 = vst [vmem:[#allocation1 + $0x21] ss:$4 sm:$0xff] %v1761_v63  ;;  %v4051_v22 = vmul.f32 0.1875, %v1331_v5  ;;  %v1505_v1 = vperm.slane %v1481_v12, 0  ;;  %v1506_v2 = vperm.slane %v1483_v40, 0  ;;  %v1507_v3 = vperm.slane %v1485_v41, 0 }
 0x1dc   : > { %1908 = vst [vmem:[#allocation1 + $0x22] ss:$4 sm:$0xff] %v1762_v13  ;;  %v4053_v7 = vmul.f32 0.1875, %v1330_v30  ;;  %v1431_v24 = vrot.slane %v1430_v50, 2  ;;  %v1317_v56 = vmul.f32 0.1875, %v1313_v42  ;;  %v1318_v11 = vmul.f32 0.1875, %v1314_v47 }
 0x1dd   : > { %1910 = vst [vmem:[#allocation1 + $0x23] ss:$4 sm:$0xff] %v1763_v35  ;;  %v1371_v45 = vadd.f32 %v1310_v55, %v3984_v61  ;;  %v1433_v48 = vrot.slane %v1432_v36, 3  ;;  %v1536_v6 = vsel %vm1416_vm4, %v1427_v53, %v1504_v51  ;;  %v1326_v25 = vmul.f32 0.1875, %v1322_v19  ;;  %v1354_v34 = vld [vmem:[#allocation3 + $0x47] sm:$0xf] }
 0x1de   : > { %v1370_v14 = vadd.f32 %v3986_v21, %v3973_v9  ;;  %v1343_v58 = vmul.f32 0.0625, %v1339_v52  ;;  %v1351_v10 = vmul.f32 0.0625, %v1347_v62  ;;  %v1537_v18 = vsel %vm1416_vm4, %v1429_v49, %v1505_v1  ;;  %v1355_v47 = vld [vmem:[#allocation3 + $0x57] sm:$0xf]  ;;  %v1362_v49 = vld [vmem:[#allocation3 + $0x49] sm:$0xf] }
 0x1df   : > { %v1375_v17 = vadd.f32 %v1371_v45, %v1327_v54  ;;  %v1383_v28 = vadd.f32 %v1371_v45, %v4051_v22  ;;  %v1538_v20 = vsel %vm1416_vm4, %v1431_v24, %v1506_v2  ;;  %v1539_v59 = vsel %vm1416_vm4, %v1433_v48, %v1507_v3  ;;  %v1361_v5 = vld [vmem:[#allocation3 + $0x39] sm:$0xf] }
 0x1e0   : > { %v1382_v8 = vadd.f32 %v1370_v14, %v4053_v7  ;;  %v1389_v21 = vadd.f32 %v1317_v56, %v3927_v15  ;;  %v1390_v12 = vadd.f32 %v1318_v11, %v3973_v9  ;;  %v1719_v40 = vrot.slane %v3952_v39, 6  ;;  %v1363_v35 = vld [vmem:[#allocation3 + $0x59] sm:$0xf] }
 0x1e1   : > { %v1379_v29 = vadd.f32 %v1375_v17, %v1343_v58  ;;  %v1387_v37 = vadd.f32 %v1383_v28, %v1351_v10  ;;  %v1764_v23 = vadd.f32 %v3939_v31, %v1536_v6  ;;  %v1342_v41 = vmul.f32 0.0625, %v1338_v57 }
 0x1e2   : > { %v1350_v33 = vmul.f32 0.0625, %v1346_v16  ;;  %v1765_v38 = vadd.f32 %v1714_v43, %v1537_v18  ;;  %v1766_v42 = vadd.f32 %v1715_v46, %v1538_v20  ;;  %v1374_v63 = vadd.f32 %v1370_v14, %v1326_v25  ;;  %v4078_v46 = vld [vmem:[%s3925_s20 + $0x10] sm:$0xff]   ;;  %v4096_v14 = vld.sshfl [vmem:[#allocation1] sm:$0xff pattern:$0x73625140] }
 0x1e3   : > { %v1415_v15 = vrot.slane %v1379_v29, 3  ;;  %v1767_v9 = vadd.f32 %v1716_v60, %v1539_v59  ;;  %v1357_v13 = vmul.f32 0.0625, %v1353_v27  ;;  %v1391_v19 = vadd.f32 %v3958_v44, %v3984_v61  ;;  %1912 = vst [vmem:[#allocation1] ss:$4 sm:$0xff] %v1764_v23 }
 0x1e4   : > { %v1386_v55 = vadd.f32 %v1382_v8, %v1350_v33  ;;  %v1358_v30 = vmul.f32 0.0625, %v1354_v34  ;;  %v1393_v43 = vadd.f32 %v1389_v21, %v3941_v32  ;;  %v1394_v50 = vadd.f32 %v1390_v12, %v1326_v25  ;;  %1913 = vst [vmem:[#allocation1 + $0x1] ss:$4 sm:$0xff] %v1765_v38 }
 0x1e5   : > { %v1471_v51 = vrot.slane %v1387_v37, 3  ;;  %v1359_v52 = vmul.f32 0.0625, %v1355_v47  ;;  %v1365_v53 = vmul.f32 0.0625, %v1361_v5  ;;  %v1395_v36 = vadd.f32 %v1391_v19, %v1327_v54  ;;  %1914 = vst [vmem:[#allocation1 + $0x2] ss:$4 sm:$0xff] %v1766_v42 }
 0x1e6   : > { %v1441_v31 = vsel %vm1416_vm4, %v1379_v29, %v1415_v15  ;;  %v1378_v60 = vadd.f32 %v1374_v63, %v1342_v41  ;;  %v1442_v62 = vsel %vm1418_vm7, %v1379_v29, %v1415_v15  ;;  %v1444_v1 = vsel %vm1421_vm9, %v1379_v29, %v1415_v15  ;;  %1915 = vst [vmem:[#allocation1 + $0x3] ss:$4 sm:$0xff] %v1767_v9 }
 0x1e7   : > { %v1446_v44 = vsel %vm1424_vm11, %v1379_v29, %v1415_v15  ;;  %v1366_v61 = vmul.f32 0.0625, %v1362_v49  ;;  %v1367_v2 = vmul.f32 0.0625, %v1363_v35  ;;  %v1470_v3 = vrot.slane %v1386_v55, 3 }
 0x1e8   : > { %v4085_v32 = vunpack.c.l.bf16 %v4078_v46  ;;  %v4087_v24 = vadd.f32 %v1393_v43, %v1357_v13  ;;  %v4089_v56 = vadd.f32 %v1394_v50, %v1358_v30  ;;  %v1401_v54 = vadd.f32 %v1389_v21, %v3936_v26 }
 0x1e9   : > { %v1493_v11 = vsel %vm1416_vm4, %v1387_v37, %v1471_v51  ;;  %v1399_v45 = vadd.f32 %v1395_v36, %v1359_v52  ;;  %v1402_v48 = vadd.f32 %v1390_v12, %v4053_v7  ;;  %v1403_v6 = vadd.f32 %v1391_v19, %v4051_v22 }
 0x1ea   : > { %v1494_v25 = vsel %vm1418_vm7, %v1387_v37, %v1471_v51  ;;  %v1414_v57 = vrot.slane %v1378_v60, 3  ;;  %v1496_v16 = vsel %vm1421_vm9, %v1387_v37, %v1471_v51  ;;  %v1498_v10 = vsel %vm1424_vm11, %v1387_v37, %v1471_v51 }
 0x1eb   : > { %v1495_v58 = vrot.slane %v1494_v25, 1  ;;  %v1487_v17 = vsel %vm1418_vm7, %v1386_v55, %v1470_v3  ;;  %v1489_v26 = vsel %vm1421_vm9, %v1386_v55, %v1470_v3  ;;  %v1497_v28 = vrot.slane %v1496_v16, 2 }
 0x1ec   : > { %v1499_v18 = vrot.slane %v1498_v10, 3  ;;  %v1443_v7 = vrot.slane %v1442_v62, 1  ;;  %v1445_v20 = vrot.slane %v1444_v1, 2  ;;  %v1512_v22 = vperm.slane %v1493_v11, 0 }
 0x1ed   : > { %v1513_v59 = vperm.slane %v1495_v58, 0  ;;  %v1447_v8 = vrot.slane %v1446_v44, 3  ;;  %v1491_v27 = vsel %vm1424_vm11, %v1386_v55, %v1470_v3  ;;  %v1514_v29 = vperm.slane %v1497_v28, 0 }
 0x1ee   : > { %v1515_v21 = vperm.slane %v1499_v18, 0  ;;  %v1488_v12 = vrot.slane %v1487_v17, 1  ;;  %v1490_v37 = vrot.slane %v1489_v26, 2  ;;  %v4104_v41 = vsel %vm1416_vm4, %v1441_v31, %v1512_v22 }
 0x1ef   : > { %v4107_v33 = vsel %vm1416_vm4, %v1443_v7, %v1513_v59  ;;  %v1486_v23 = vsel %vm1416_vm4, %v1386_v55, %v1470_v3  ;;  %v4111_v34 = vsel %vm1416_vm4, %v1445_v20, %v1514_v29  ;;  %v1555_v47 = vrot.slane %v1399_v45, 3 }
 0x1f0   : > { %v4114_v38 = vsel %vm1416_vm4, %v1447_v8, %v1515_v21  ;;  %v1405_v5 = vadd.f32 %v1401_v54, %v1365_v53  ;;  %v4116_v42 = vadd.f32 %v1402_v48, %v1366_v61  ;;  %v1435_v63 = vsel %vm1418_vm7, %v1378_v60, %v1414_v57  ;;  %v3358_v48 = vld [vmem:[%s4844_s5 + $0x40] sm:$0xff] }
 0x1f1   : > { %v1553_v15 = vrot.slane %v4087_v24, 3  ;;  %v1407_v13 = vadd.f32 %v1403_v6, %v1367_v2  ;;  %v1437_v35 = vsel %vm1421_vm9, %v1378_v60, %v1414_v57  ;;  %v4122_v9 = vsel %vm1424_vm11, %v1378_v60, %v1414_v57  ;;  %2947 = vmatpush.bf16.msra.mxu2 %v3358_v48 }
 0x1f2   : > { %v1492_v55 = vrot.slane %v1491_v27, 3  ;;  %v1508_v19 = vperm.slane %v1486_v23, 0  ;;  %v1509_v30 = vperm.slane %v1488_v12, 0  ;;  %v1510_v49 = vperm.slane %v1490_v37, 0 }
 0x1f3   : > { %v1577_v43 = vsel %vm1416_vm4, %v1399_v45, %v1555_v47  ;;  %v1434_v50 = vsel %vm1416_vm4, %v1378_v60, %v1414_v57  ;;  %v1436_v51 = vrot.slane %v1435_v63, 1  ;;  %v1578_v52 = vsel %vm1418_vm7, %v1399_v45, %v1555_v47 }
 0x1f4   : > { %v1580_v53 = vsel %vm1421_vm9, %v1399_v45, %v1555_v47  ;;  %v1438_v36 = vrot.slane %v1437_v35, 2  ;;  %v1564_v31 = vsel %vm1418_vm7, %v4087_v24, %v1553_v15  ;;  %v1582_v62 = vsel %vm1424_vm11, %v1399_v45, %v1555_v47 }
 0x1f5   : > { %v1605_v1 = vrot.slane %v1405_v5, 3  ;;  %v1440_v44 = vrot.slane %v4122_v9, 3  ;;  %v4132_v61 = vperm.slane %v1492_v55, 0  ;;  %v1566_v2 = vsel %vm1421_vm9, %v4087_v24, %v1553_v15 }
 0x1f6   : > { %v1607_v60 = vrot.slane %v1407_v13, 3  ;;  %v4137_v3 = vsel %vm1416_vm4, %v1434_v50, %v1508_v19  ;;  %v4140_v54 = vsel %vm1416_vm4, %v1436_v51, %v1509_v30  ;;  %v4143_v11 = vsel %vm1416_vm4, %v1438_v36, %v1510_v49  ;;  %v3378_v50 = vld [vmem:[%s3925_s20 + $0x18] sm:$0xff]  }
 0x1f7   : > { %v1568_v45 = vsel %vm1424_vm11, %v4087_v24, %v1553_v15  ;;  %v4151_v6 = vrot.slane %v4089_v56, 3  ;;  %v1563_v25 = vsel %vm1416_vm4, %v4087_v24, %v1553_v15  ;;  %v1565_v57 = vrot.slane %v1564_v31, 1 }
 0x1f8   : > { %v1616_v58 = vsel %vm1418_vm7, %v1405_v5, %v1605_v1  ;;  %v1567_v16 = vrot.slane %v1566_v2, 2  ;;  %v1618_v10 = vsel %vm1421_vm9, %v1405_v5, %v1605_v1  ;;  %v1620_v17 = vsel %vm1424_vm11, %v1405_v5, %v1605_v1 }
 0x1f9   : > { %v1629_v26 = vsel %vm1416_vm4, %v1407_v13, %v1607_v60  ;;  %v1569_v28 = vrot.slane %v1568_v45, 3  ;;  %v1606_v18 = vrot.slane %v4116_v42, 3  ;;  %v1615_v7 = vsel %vm1416_vm4, %v1405_v5, %v1605_v1 }
 0x1fa   : > { %v1630_v20 = vsel %vm1418_vm7, %v1407_v13, %v1607_v60  ;;  %v1617_v22 = vrot.slane %v1616_v58, 1  ;;  %v1632_v59 = vsel %vm1421_vm9, %v1407_v13, %v1607_v60  ;;  %v1634_v8 = vsel %vm1424_vm11, %v1407_v13, %v1607_v60 }
 0x1fb   : > { %v1631_v24 = vrot.slane %v1630_v20, 1  ;;  %v1619_v27 = vrot.slane %v1618_v10, 2  ;;  %v1621_v29 = vrot.slane %v1620_v17, 3  ;;  %v1633_v21 = vrot.slane %v1632_v59, 2 }
 0x1fc   : > { %v1635_v12 = vrot.slane %v1634_v8, 3  ;;  %v4167_v37 = vsel %vm1418_vm7, %v4089_v56, %v4151_v6  ;;  %v4172_v23 = vsel %vm1421_vm9, %v4089_v56, %v4151_v6  ;;  %v1579_v47 = vrot.slane %v1578_v52, 1 }
 0x1fd   : > { %v1581_v5 = vrot.slane %v1580_v53, 2  ;;  %v1640_v63 = vperm.slane %v1615_v7, 0  ;;  %v1648_v15 = vperm.slane %v1629_v26, 0  ;;  %v1649_v13 = vperm.slane %v1631_v24, 0 }
 0x1fe   : > { %v1650_v35 = vperm.slane %v1633_v21, 0  ;;  %v1583_v55 = vrot.slane %v1582_v62, 3  ;;  %v4176_v19 = vsel %vm1416_vm4, %v4116_v42, %v1606_v18  ;;  %v1641_v30 = vperm.slane %v1617_v22, 0  ;;  %v1911_v22 = vld.sshfl [vmem:[#allocation1 + $0x20] sm:$0xff pattern:$0x73625140] }
 0x1ff   : > { %v1651_v49 = vperm.slane %v1635_v12, 0  ;;  %v1623_v51 = vsel %vm1418_vm7, %v4116_v42, %v1606_v18  ;;  %v1625_v36 = vsel %vm1421_vm9, %v4116_v42, %v1606_v18  ;;  %v1642_v52 = vperm.slane %v1619_v27, 0  ;;  %vm4271_vm7 = vmand %vm1801_vm14, %vm339_vm5 }
 0x200   : > { %v1643_v53 = vperm.slane %v1621_v29, 0  ;;  %v1627_v31 = vsel %vm1424_vm11, %v4116_v42, %v1606_v18  ;;  %v1680_v62 = vsel %vm1416_vm4, %v1577_v43, %v1648_v15  ;;  %v1681_v1 = vsel %vm1416_vm4, %v1579_v47, %v1649_v13  ;;  %vm4324_vm5 = vmor %vm2096_vm0, %vm2097_vm1 }
 0x201   : > { %v1682_v2 = vsel %vm1416_vm4, %v1581_v5, %v1650_v35  ;;  %v1672_v60 = vsel %vm1416_vm4, %v1563_v25, %v1640_v63  ;;  %v1683_v45 = vsel %vm1416_vm4, %v1583_v55, %v1651_v49  ;;  %v3374_v48 = vunpack.c.l.bf16 %v3378_v50 }
 0x202   : > { %v3375_v58 = vunpack.c.h.bf16 %v3378_v50  ;;  %v1624_v10 = vrot.slane %v1623_v51, 1  ;;  %v1626_v17 = vrot.slane %v1625_v36, 2  ;;  %v1673_v26 = vsel %vm1416_vm4, %v1565_v57, %v1641_v30 }
 0x203   : > { %v4192_v7 = vunpack.c.h.bf16 %v4078_v46  ;;  %v1628_v42 = vrot.slane %v1627_v31, 3  ;;  %v1644_v43 = vperm.slane %v4176_v19, 0  ;;  %v1674_v18 = vsel %vm1416_vm4, %v1567_v16, %v1642_v52  ;;  %v1839_v19 = vld [vmem:[#allocation4 + $0x20] sm:$0x1]  ;;  %v1842_v52 = vld [vmem:[#allocation4 + $0x2c] sm:$0x1] }
 0x204   : > { %v1675_v20 = vsel %vm1416_vm4, %v1569_v28, %v1643_v53  ;;  %v1726_v25 = vrot.slane %v3374_v48, 2  ;;  %v1727_v24 = vrot.slane %v3374_v48, 4  ;;  %v1728_v59 = vrot.slane %v3374_v48, 6  ;;  %v4256_v53 = vld [vmem:[#allocation4 + $0x24] sm:$0x8] }
 0x205   : > { %v1768_v8 = vadd.f32 %v3952_v39, %v1672_v60  ;;  %v1729_v27 = vrot.slane %v3375_v58, 2  ;;  %v1730_v29 = vrot.slane %v3375_v58, 4  ;;  %v1731_v21 = vrot.slane %v3375_v58, 6  ;;  %v4259_v31 = vld [vmem:[#allocation4 + $0x38] sm:$0x1] }
 0x206   : > { %v1769_v46 = vadd.f32 %v1717_v0, %v1673_v26  ;;  %v1645_v57 = vperm.slane %v1624_v10, 0  ;;  %v1720_v12 = vrot.slane %v4085_v32, 2  ;;  %v1721_v47 = vrot.slane %v4085_v32, 4  ;;  %v1916_v0 = vld.sshfl [vmem:[#allocation1] sm:$0xff pattern:$0x73625140] }
 0x207   : > { %v1770_v16 = vadd.f32 %v1718_v4, %v1674_v18  ;;  %1917 = vst [vmem:[#allocation1 + $0x20] ss:$4 sm:$0xff] %v1768_v8  ;;  %v1722_v28 = vrot.slane %v4085_v32, 6  ;;  %v1771_v5 = vadd.f32 %v1719_v40, %v1675_v20  ;;  %v1772_v63 = vadd.f32 %v4085_v32, %v4137_v3  ;;  %v4264_v60 = vld [vmem:[#allocation4 + $0x30] sm:$0x8] }
 0x208   : > { %v4210_v15 = vadd.f32 %v3374_v48, %v4104_v41  ;;  %1918 = vst [vmem:[#allocation1 + $0x21] ss:$4 sm:$0xff] %v1769_v46  ;;  %v4213_v13 = vadd.f32 %v1726_v25, %v4107_v33  ;;  %v4216_v35 = vadd.f32 %v1727_v24, %v4111_v34  ;;  %v4219_v4 = vadd.f32 %v1728_v59, %v4114_v38  ;;  %v1818_v59 = vld [vmem:[#allocation4 + $0x3c] sm:$0x8]  ;;  %v4291_v46 = vld [vmem:[#allocation4 + $0x48] sm:$0x8] }
 0x209   : > { %v4221_v55 = vadd.f32 %v3375_v58, %v1680_v62  ;;  %1919 = vst [vmem:[#allocation1 + $0x22] ss:$4 sm:$0xff] %v1770_v16  ;;  %v4223_v39 = vadd.f32 %v1729_v27, %v1681_v1  ;;  %v4225_v40 = vadd.f32 %v1730_v29, %v1682_v2  ;;  %v4227_v32 = vadd.f32 %v1731_v21, %v1683_v45 }
 0x20a   : > { %v1951_v41 = vpack.c.bf16 %v1911_v22, %v1911_v22  ;;  %1920 = vst [vmem:[#allocation1 + $0x23] ss:$4 sm:$0xff] %v1771_v5  ;;  %v1543_v33 = vsel %vm1416_vm4, %v1440_v44, %v4132_v61  ;;  %v1570_v34 = vsel %vm1416_vm4, %v4089_v56, %v4151_v6  ;;  %v1575_v38 = vsel %vm1424_vm11, %v4089_v56, %v4151_v6 }
 0x20b   : > { %v1952_v3 = vpack.c.bf16 %v1916_v0, %v1916_v0  ;;  %1922 = vst [vmem:[#allocation1] ss:$4 sm:$0xff] %v1772_v63  ;;  %v1572_v30 = vrot.slane %v4167_v37, 1  ;;  %v1574_v49 = vrot.slane %v4172_v23, 2  ;;  %v1646_v50 = vperm.slane %v1626_v17, 0 }
 0x20c   : > { %v1773_v9 = vadd.f32 %v1720_v12, %v4140_v54  ;;  %1960 = vst.msk [vmem:[#allocation4 + $0x1c] sm:$0xf] %vm1294_vm3, %v1951_v41  ;;  %v1647_v44 = vperm.slane %v1628_v42, 0  ;;  %v1676_v61 = vsel %vm1416_vm4, %v1570_v34, %v1644_v43  ;;  %v1723_v51 = vrot.slane %v4192_v7, 2 }
 0x20d   : > { %v1774_v36 = vadd.f32 %v1721_v47, %v4143_v11  ;;  %1961 = vst.msk [vmem:[#allocation4 + $0x28] sm:$0xf] %vm1294_vm3, %v1952_v3  ;;  %v1576_v6 = vrot.slane %v1575_v38, 3  ;;  %v1677_v54 = vsel %vm1416_vm4, %v1572_v30, %v1645_v57  ;;  %v1775_v37 = vadd.f32 %v1722_v28, %v1543_v33 }
 0x20e   : > { %1923 = vst [vmem:[#allocation1 + $0x1] ss:$4 sm:$0xff] %v1773_v9  ;;  %v1840_v23 = vsel %vm4249_vm12, 0, %v1839_v19  ;;  %v1724_v11 = vrot.slane %v4192_v7, 4  ;;  %v1678_v62 = vsel %vm1416_vm4, %v1574_v49, %v1646_v50  ;;  %v1725_v1 = vrot.slane %v4192_v7, 6 }
 0x20f   : > { %1924 = vst [vmem:[#allocation1 + $0x2] ss:$4 sm:$0xff] %v1774_v36  ;;  %v1776_v2 = vadd.f32 %v4192_v7, %v1676_v61  ;;  %v1679_v45 = vsel %vm1416_vm4, %v1576_v6, %v1647_v44  ;;  %v1777_v48 = vadd.f32 %v1723_v51, %v1677_v54  ;;  %v1843_v17 = vsel %vm4249_vm12, 0, %v1842_v52  ;;  %vm4366_vm4 = vmor %vm425_vm10, %vm428_vm13 }
 0x210   : > { %1925 = vst [vmem:[#allocation1 + $0x3] ss:$4 sm:$0xff] %v1775_v37  ;;  %v1846_v7 = vsel %vm4249_vm12, 0, %v4259_v31  ;;  %v1778_v42 = vadd.f32 %v1724_v11, %v1678_v62  ;;  %v1813_v18 = vsel %vm4271_vm7, 0, %v4256_v53  ;;  %v1816_v20 = vsel %vm4271_vm7, 0, %v4264_v60 }
 0x211   : > { %v1921_v58 = vld.sshfl [vmem:[#allocation1 + $0x20] sm:$0xff pattern:$0x73625140]  ;;  %1841 = vst [vmem:[#allocation4 + $0x20] sm:$0x1] %v1840_v23  ;;  %v1779_v22 = vadd.f32 %v1725_v1, %v1679_v45  ;;  %v1819_v3 = vsel %vm4271_vm7, 0, %v1818_v59 }
 0x212   : > { %v1953_v10 = vpack.c.bf16 %v1921_v58, %v1921_v58  ;;  %1927 = vst [vmem:[#allocation1 + $0x20] ss:$4 sm:$0xff] %v1776_v2  ;;  %v1822_v49 = vsel %vm4271_vm7, 0, %v4291_v46  ;;  %vm2780_vm10 = vcmask 392192   ;;  %vm2797_vm13 = vcmask 654336  }
 0x213   : > { %1928 = vst [vmem:[#allocation1 + $0x21] ss:$4 sm:$0xff] %v1777_v48  ;;  %v4278_v43 = vld [vmem:[#allocation4 + $0x1c] sm:$0xf]  ;;  %vm2814_vm9 = vcmask 916480  }
 0x214   : > { %v3231_v25 = vld [vmem:[#allocation4 + $0x1c] sm:$0xf]  ;;  %v3339_v24 = vld [vmem:[#allocation4 + $0x24] sm:$0xf0]  ;;  %1962 = vst.msk [vmem:[#allocation4 + $0x34] sm:$0xf] %vm1294_vm3, %v1953_v10 }
 0x215   : > { %v3232_v8 = vor.u32 %v3339_v24, %v3231_v25  ;;  %1929 = vst [vmem:[#allocation1 + $0x22] ss:$4 sm:$0xff] %v1778_v42  ;;  %v4287_v27 = vld [vmem:[#allocation4 + $0x28] sm:$0xf]  ;;  %v2394_v29 = vshrl.u32 %v4278_v43, 16  ;;  %v2397_v21 = vshll.u32 %v4278_v43, 16 }
 0x216   : > { %1930 = vst [vmem:[#allocation1 + $0x23] ss:$4 sm:$0xff] %v1779_v22  ;;  %v2407_v57 = vshrl.u32 %v4287_v27, 16  ;;  %v2410_v12 = vshll.u32 %v4287_v27, 16  ;;  %v4295_v47 = vld [vmem:[#allocation4 + $0x28] sm:$0xf] }
 0x217   : > { %2606 = vrot.lane.b32.xlu0 %v3232_v8, %s3509_s24  ;;  %v1926_v16 = vld.sshfl [vmem:[#allocation1] sm:$0xff pattern:$0x73625140]  ;;  %1844 = vst [vmem:[#allocation4 + $0x2c] sm:$0x1] %v1843_v17  ;;  %v2500_v28 = vrot.slane %v2394_v29, 4 }
 0x218   : > { %v1954_v5 = vpack.c.bf16 %v1926_v16, %v1926_v16  ;;  %1932 = vst [vmem:[#allocation1] ss:$4 sm:$0xff] %v4210_v15  ;;  %v2492_v63 = vld [vmem:[#allocation4 + $0x20] sm:$0x1]  ;;  %v2501_v0 = vrot.slane %v2397_v21, 5  ;;  %v2509_v41 = vrot.slane %v2407_v57, 4 }
 0x219   : > { %1933 = vst [vmem:[#allocation1 + $0x1] ss:$4 sm:$0xff] %v4213_v13  ;;  %v2505_v33 = vshll.u32 %v2492_v63, 16  ;;  %v2510_v34 = vrot.slane %v2410_v12, 5  ;;  %v2219_v38 = vshrl.u32 %v4295_v47, 16  ;;  %v2222_v30 = vshll.u32 %v4295_v47, 16 }
 0x21a   : > { %v3247_v19 = vld [vmem:[#allocation4 + $0x28] sm:$0xf]  ;;  %1963 = vst.msk [vmem:[#allocation4 + $0x40] sm:$0xf] %vm1294_vm3, %v1954_v5  ;;  %v2502_v15 = vor.u32 %v2501_v0, %v2500_v28  ;;  %v4317_v9 = vld [vmem:[#allocation4 + $0x1c] sm:$0xf] }
 0x21b   : > { %v3343_v13 = vld [vmem:[#allocation4 + $0x30] sm:$0xf0]  ;;  %1934 = vst [vmem:[#allocation1 + $0x2] ss:$4 sm:$0xff] %v4216_v35  ;;  %v2511_v50 = vor.u32 %v2510_v34, %v2509_v41  ;;  %v2507_v61 = vrot.slane %v2505_v33, 5  ;;  %v2221_v35 = vrot.slane %v2219_v38, 7 }
 0x21c   : > { %1935 = vst [vmem:[#allocation1 + $0x3] ss:$4 sm:$0xff] %v4219_v4  ;;  %v2503_v44 = vrot.slane %v2502_v15, 4  ;;  %v4320_v51 = vld [vmem:[#allocation4 + $0x34] sm:$0xf]  ;;  %v3248_v36 = vor.u32 %v3343_v13, %v3247_v19  ;;  %v2016_v45 = vshrl.u32 %v4317_v9, 16 }
 0x21d   : > { %1814 = vst [vmem:[#allocation4 + $0x24] sm:$0x8] %v1813_v18  ;;  %v2232_v54 = vshrl.u32 %v4320_v51, 16  ;;  %v4331_v37 = vld [vmem:[#allocation4 + $0x28] sm:$0xf]  ;;  %v2512_v52 = vrot.slane %v2511_v50, 4 }
 0x21e   : > { %v2493_v4 = vld [vmem:[#allocation4 + $0x2c] sm:$0x1]  ;;  %v2508_v23 = vsel %vm4324_vm5, %v2503_v44, %v2507_v61  ;;  %1817 = vst [vmem:[#allocation4 + $0x30] sm:$0x8] %v1816_v20  ;;  %v2235_v53 = vshll.u32 %v4320_v51, 16  ;;  %v2019_v48 = vshll.u32 %v4317_v9, 16  ;;  %v2224_v20 = vor.u32 %v2222_v30, %v2221_v35 }
 0x21f   : > { %2674 = vrot.lane.b32.xlu0 %v3248_v36, %s3505_s22  ;;  %v3235_v11 = vld [vmem:[#allocation4 + $0x34] sm:$0xf]  ;;  %v2514_v62 = vshll.u32 %v2493_v4, 16  ;;  %v2234_v1 = vrot.slane %v2232_v54, 7  ;;  %v2090_v2 = vld [vmem:[#allocation4 + $0x20] sm:$0x1]  ;;  %v2748_v18 = vunpack.c.l.b16 %v2508_v23 }
 0x220   : > { %v2091_v60 = vld [vmem:[#allocation4 + $0x2c] sm:$0x1]  ;;  %v2029_v58 = vshrl.u32 %v4331_v37, 16  ;;  %v2032_v10 = vshll.u32 %v4331_v37, 16  ;;  %1820 = vst [vmem:[#allocation4 + $0x3c] sm:$0x8] %v1819_v3 }
 0x221   : > { %v3340_v17 = vld [vmem:[#allocation4 + $0x3c] sm:$0xf0]  ;;  %v2516_v42 = vrot.slane %v2514_v62, 5  ;;  %v2122_v25 = vshll.u32 %v2090_v2, 16  ;;  %v2237_v59 = vor.u32 %v2235_v53, %v2234_v1  ;;  %v3263_v8 = vld [vmem:[#allocation4 + $0x34] sm:$0xf] }
 0x222   : > { %v3347_v22 = vld [vmem:[#allocation4 + $0x3c] sm:$0xf0]  ;;  %v3236_v24 = vor.u32 %v3340_v17, %v3235_v11  ;;  %v2117_v16 = vrot.slane %v2016_v45, 4  ;;  %v2118_v28 = vrot.slane %v2019_v48, 5  ;;  %v2126_v41 = vrot.slane %v2029_v58, 4 }
 0x223   : > { %v1931_v5 = vld.sshfl [vmem:[#allocation1 + $0x20] sm:$0xff pattern:$0x73625140]  ;;  %v2517_v63 = vsel %vm4324_vm5, %v2512_v52, %v2516_v42  ;;  %v2124_v0 = vrot.slane %v2122_v25, 5  ;;  %v2127_v33 = vrot.slane %v2032_v10, 5  ;;  %v2131_v13 = vshll.u32 %v2091_v60, 16 }
 0x224   : > { %v1936_v34 = vld.sshfl [vmem:[#allocation1] sm:$0xff pattern:$0x73625140]  ;;  %2608 = vrot.lane.b32.xlu1 %v3236_v24, %s3509_s24  ;;  %v2749_v3 = vunpack.c.l.b16 %v2517_v63  ;;  %v2175_v19 = vld [vmem:[#allocation4 + $0x24] sm:$0x8]  ;;  %v2119_v15 = vor.u32 %v2118_v28, %v2117_v16  ;;  %v1955_v50 = vpack.c.bf16 %v1931_v5, %v1931_v5  ;;  %v3264_v35 = vor.u32 %v3347_v22, %v3263_v8 }
 0x225   : > { %1937 = vst [vmem:[#allocation1 + $0x20] ss:$4 sm:$0xff] %v4221_v55  ;;  %v1848_v44 = vld [vmem:[#allocation4 + $0x44] sm:$0x1]  ;;  %v2177_v61 = vld [vmem:[#allocation4 + $0x30] sm:$0x8]  ;;  %v2128_v4 = vor.u32 %v2127_v33, %v2126_v41  ;;  %v1956_v23 = vpack.c.bf16 %v1936_v34, %v1936_v34 }
 0x226   : > { %v2214_v36 = vshrl.u32 %v2175_v19, 16  ;;  %1938 = vst [vmem:[#allocation1 + $0x21] ss:$4 sm:$0xff] %v4223_v39  ;;  %v2756_v52 = vpack.c.b16 %v2749_v3, %v2748_v18  ;;  %v2227_v11 = vshrl.u32 %v2177_v61, 16  ;;  %v2120_v62 = vrot.slane %v2119_v15, 4 }
 0x227   : > { %v2133_v1 = vrot.slane %v2131_v13, 5  ;;  %1964 = vst.msk [vmem:[#allocation4 + $0x4c] sm:$0xf] %vm1294_vm3, %v1955_v50  ;;  %2742 = vrot.lane.b32.xlu0 %v3264_v35, %s3510_s25  ;;  %v2129_v60 = vrot.slane %v2128_v4, 4  ;;  %v2179_v55 = vld [vmem:[#allocation4 + $0x3c] sm:$0x8] }
 0x228   : > { %v3211_v2 = vrot.slane %v2214_v36, 11  ;;  %1965 = vst.msk [vmem:[#allocation4 + $0x58] sm:$0xf] %vm1294_vm3, %v1956_v23  ;;  %3309 = vmatmul.msk.bf16.vlgmr.msra.gmra.mxu2 %vm1273_vm2, %v2756_v52  ;;  %v3212_v17 = vrot.slane %v2227_v11, 11  ;;  %v2125_v42 = vsel %vm4324_vm5, %v2120_v62, %v2124_v0  ;;  %v4373_v18 = vld [vmem:[#allocation4 + $0x40] sm:$0xf]  ;;  %v1950_v36 = vpack.c.bf16 %v4096_v14, %v4096_v14 }
 0x229   : > { %1939 = vst [vmem:[#allocation1 + $0x22] ss:$4 sm:$0xff] %v4225_v40  ;;  %v2240_v22 = vshrl.u32 %v2179_v55, 16  ;;  %v2134_v24 = vsel %vm4324_vm5, %v2129_v60, %v2133_v1  ;;  %v2245_v8 = vshrl.u32 %v4373_v18, 16  ;;  %v1849_v16 = vsel %vm4249_vm12, 0, %v1848_v44 }
 0x22a   : > { %v2225_v25 = vsel %vm4366_vm4, %v3211_v2, %v2224_v20  ;;  %1940 = vst [vmem:[#allocation1 + $0x23] ss:$4 sm:$0xff] %v4227_v32  ;;  %v2238_v28 = vsel %vm4366_vm4, %v3212_v17, %v2237_v59  ;;  %v2614_v40 = vunpack.c.l.b16 %v2125_v42  ;;  %v2615_v5 = vunpack.c.l.b16 %v2134_v24  ;;  %v2377_v63 = vld [vmem:[#allocation4 + $0x34] sm:$0xf]  ;;  %v2379_v59 = vld [vmem:[#allocation4 + $0x40] sm:$0xf] }
 0x22b   : > { %1823 = vst [vmem:[#allocation4 + $0x48] sm:$0x8] %v1822_v49  ;;  %v3213_v20 = vrot.slane %v2240_v22, 11  ;;  %v2634_v0 = vunpack.c.l.b16 %v2225_v25  ;;  %v2635_v41 = vunpack.c.l.b16 %v2238_v28  ;;  %v2247_v32 = vrot.slane %v2245_v8, 7  ;;  %v3251_v3 = vld [vmem:[#allocation4 + $0x40] sm:$0xf] }
 0x22c   : > { %v2248_v33 = vshll.u32 %v4373_v18, 16  ;;  %1847 = vst [vmem:[#allocation4 + $0x38] sm:$0x1] %v1846_v7  ;;  %v2621_v34 = vpack.c.b16 %v2615_v5, %v2614_v40  ;;  %v2420_v46 = vshrl.u32 %v2377_v63, 16  ;;  %v2423_v49 = vshll.u32 %v2377_v63, 16 }
 0x22d   : > { %1850 = vst [vmem:[#allocation4 + $0x44] sm:$0x1] %v1849_v16  ;;  %v2433_v19 = vshrl.u32 %v2379_v59, 16  ;;  %v2641_v15 = vpack.c.b16 %v2635_v41, %v2634_v0  ;;  %v2436_v4 = vshll.u32 %v2379_v59, 16  ;;  %v2317_v23 = vrot.slane %v2219_v38, 4 }
 0x22e   : > { %v3239_v13 = vld [vmem:[#allocation4 + $0x4c] sm:$0xf]  ;;  %v2250_v44 = vor.u32 %v2248_v33, %v2247_v32  ;;  %2626 = vrot.lane.b32.xlu1 %v2621_v34, %s3507_s12  ;;  %v2518_v62 = vrot.slane %v2420_v46, 4  ;;  %v2519_v1 = vrot.slane %v2423_v49, 5  ;;  %v2376_v2 = vld [vmem:[#allocation4 + $0x30] sm:$0x8] }
 0x22f   : > { %v4396_v50 = vld [vmem:[#allocation4 + $0x4c] sm:$0xf]  ;;  %v3341_v31 = vld [vmem:[#allocation4 + $0x54] sm:$0xf0]  ;;  %2646 = vrot.lane.b32.xlu2 %v2641_v15, %s3511_s26  ;;  %v2378_v14 = vld [vmem:[#allocation4 + $0x3c] sm:$0x8] }
 0x230   : > { %v3344_v61 = vld [vmem:[#allocation4 + $0x48] sm:$0xf0]  ;;  %v2258_v7 = vshrl.u32 %v4396_v50, 16  ;;  %v2261_v35 = vshll.u32 %v4396_v50, 16  ;;  %v3240_v52 = vor.u32 %v3341_v31, %v3239_v13  ;;  %v2251_v60 = vsel %vm4366_vm4, %v3213_v20, %v2250_v44  ;;  %1959 = vst.msk [vmem:[#allocation4 + $0x10] sm:$0xf] %vm1294_vm3, %v1950_v36 }
 0x231   : > { %v3252_v11 = vor.u32 %v3344_v61, %v3251_v3  ;;  %v2527_v17 = vrot.slane %v2433_v19, 4  ;;  %v2528_v42 = vrot.slane %v2436_v4, 5  ;;  %v1941_v22 = vld.sshfl [vmem:[#allocation1 + $0x20] sm:$0xff pattern:$0x73625140]  ;;  %v2520_v38 = vor.u32 %v2519_v1, %v2518_v62 }
 0x232   : > { %v2260_v55 = vrot.slane %v2258_v7, 7  ;;  %v2181_v25 = vld [vmem:[#allocation4 + $0x48] sm:$0x8]  ;;  %v2415_v24 = vshrl.u32 %v2376_v2, 16  ;;  %v2422_v16 = vrot.slane %v2420_v46, 7  ;;  %v2428_v28 = vshrl.u32 %v2378_v14, 16 }
 0x233   : > { %v2253_v40 = vshrl.u32 %v2181_v25, 16  ;;  %v2494_v63 = vld [vmem:[#allocation4 + $0x38] sm:$0x1]  ;;  %v2529_v0 = vor.u32 %v2528_v42, %v2527_v17  ;;  %v2435_v41 = vrot.slane %v2433_v19, 7  ;;  %v2521_v20 = vrot.slane %v2520_v38, 4 }
 0x234   : > { %v2263_v5 = vor.u32 %v2261_v35, %v2260_v55  ;;  %v2495_v32 = vld [vmem:[#allocation4 + $0x44] sm:$0x1]  ;;  %v2523_v59 = vshll.u32 %v2494_v63, 16  ;;  %v3219_v34 = vrot.slane %v2415_v24, 11  ;;  %v2425_v3 = vor.u32 %v2423_v49, %v2422_v16  ;;  %v2293_v31 = vld [vmem:[#allocation4 + $0x2c] sm:$0x1] }
 0x235   : > { %v3214_v15 = vrot.slane %v2253_v40, 11  ;;  %v2530_v13 = vrot.slane %v2529_v0, 4  ;;  %v2532_v44 = vshll.u32 %v2495_v32, 16  ;;  %v3220_v61 = vrot.slane %v2428_v28, 11  ;;  %v2294_v42 = vld [vmem:[#allocation4 + $0x38] sm:$0x1] }
 0x236   : > { %v2636_v62 = vunpack.c.l.b16 %v2251_v60  ;;  %v2525_v46 = vrot.slane %v2523_v59, 5  ;;  %v2438_v1 = vor.u32 %v2436_v4, %v2435_v41  ;;  %v1957_v2 = vpack.c.bf16 %v1941_v22, %v1941_v22  ;;  %2676 = vrot.lane.b32.xlu1 %v3252_v11, %s3505_s22  ;;  %v2092_v32 = vld [vmem:[#allocation4 + $0x38] sm:$0x1]  ;;  %v1977_v9 = vld [vmem:[#allocation4 + $0x3c] sm:$0x8] }
 0x237   : > { %v2264_v14 = vsel %vm4366_vm4, %v3214_v15, %v2263_v5  ;;  %v2534_v19 = vrot.slane %v2532_v44, 5  ;;  %v2426_v55 = vsel %vm4366_vm4, %v3219_v34, %v2425_v3  ;;  %v2318_v49 = vrot.slane %v2222_v30, 5  ;;  %2610 = vrot.lane.b32.xlu2 %v3240_v52, %s3509_s24  ;;  %v4429_v30 = vld [vmem:[#allocation4 + $0x34] sm:$0xf]  ;;  %v4431_v52 = vld [vmem:[#allocation4 + $0x40] sm:$0xf] }
 0x238   : > { %v2637_v17 = vunpack.c.l.b16 %v2264_v14  ;;  %v2526_v60 = vsel %vm4324_vm5, %v2521_v20, %v2525_v46  ;;  %v2439_v4 = vsel %vm4366_vm4, %v3220_v61, %v2438_v1  ;;  %1966 = vst.msk [vmem:[#allocation4 + $0x64] sm:$0xf] %vm1294_vm3, %v1957_v2  ;;  %v2322_v11 = vshll.u32 %v2293_v31, 16  ;;  %v2093_v34 = vld [vmem:[#allocation4 + $0x44] sm:$0x1] }
 0x239   : > { %v2535_v22 = vsel %vm4324_vm5, %v2530_v13, %v2534_v19  ;;  %v2750_v25 = vunpack.c.l.b16 %v2526_v60  ;;  %v2703_v38 = vunpack.c.l.b16 %v2439_v4  ;;  %v2319_v47 = vor.u32 %v2318_v49, %v2317_v23  ;;  %v3349_v3 = vld [vmem:[#allocation4 + $0x6c] sm:$0xf0]  ;;  %v1854_v46 = vld [vmem:[#allocation4 + $0x5c] sm:$0x1]  ;;  %v4455_v4 = vld [vmem:[#allocation4 + $0x4c] sm:$0xf] }
 0x23a   : > { %v2642_v24 = vpack.c.b16 %v2637_v17, %v2636_v62  ;;  %v2751_v16 = vunpack.c.l.b16 %v2535_v22  ;;  %v2324_v28 = vrot.slane %v2322_v11, 5  ;;  %v2326_v40 = vrot.slane %v2232_v54, 4 }
 0x23b   : > { %v2702_v5 = vunpack.c.l.b16 %v2426_v55  ;;  %v2320_v63 = vrot.slane %v2319_v47, 4  ;;  %v2327_v0 = vrot.slane %v2235_v53, 5  ;;  %v2331_v41 = vshll.u32 %v2294_v42, 16  ;;  %v1851_v53 = vld [vmem:[#allocation4 + $0x50] sm:$0x1] }
 0x23c   : > { %2648 = vrot.lane.b32.xlu0 %v2642_v24, %s3511_s26  ;;  %v2757_v23 = vpack.c.b16 %v2751_v16, %v2750_v25  ;;  %v4850_v20 = vshrl.u32 %v4429_v30, 16  ;;  %v4848_v36 = vshll.u32 %v4429_v30, 16  ;;  %v4851_v59 = vshrl.u32 %v4431_v52, 16  ;;  %v4457_v42 = vld [vmem:[#allocation4 + $0x58] sm:$0xf] }
 0x23d   : > { %v2325_v54 = vsel %vm4324_vm5, %v2320_v63, %v2324_v28  ;;  %v2328_v15 = vor.u32 %v2327_v0, %v2326_v40  ;;  %v2333_v13 = vrot.slane %v2331_v41, 5  ;;  %v4849_v51 = vshll.u32 %v4431_v52, 16  ;;  %v1792_v47 = vld [vmem:[#allocation4 + $0x8] sm:$0x1] }
 0x23e   : > { %3310 = vmatmul.msk.bf16.gmra.mxu2 %vm1273_vm2, %v2757_v23  ;;  %v2709_v44 = vpack.c.b16 %v2703_v38, %v2702_v5  ;;  %v2135_v61 = vrot.slane %v4850_v20, 4  ;;  %v2136_v31 = vrot.slane %v4848_v36, 5  ;;  %v2140_v62 = vshll.u32 %v2092_v32, 16  ;;  %v1836_v5 = vld [vmem:[#allocation4 + $0x14] sm:$0x1] }
 0x23f   : > { %v3271_v1 = vld [vmem:[#allocation4 + $0x64] sm:$0xf]  ;;  %v2329_v2 = vrot.slane %v2328_v15, 4  ;;  %v2144_v14 = vrot.slane %v4851_v59, 4  ;;  %v2145_v19 = vrot.slane %v4849_v51, 5  ;;  %v2149_v55 = vshll.u32 %v2093_v34, 16 }
 0x240   : > { %2714 = vrot.lane.b32.xlu2 %v2709_v44, %s3506_s23  ;;  %v2682_v49 = vunpack.c.l.b16 %v2325_v54  ;;  %v2137_v17 = vor.u32 %v2136_v31, %v2135_v61  ;;  %v2142_v60 = vrot.slane %v2140_v62, 5  ;;  %v3272_v11 = vor.u32 %v3349_v3, %v3271_v1  ;;  %v3342_v3 = vld [vmem:[#allocation4 + $0x18] sm:$0xf0]  ;;  %v4472_v15 = vld [vmem:[#allocation4 + $0x4] sm:$0xf] }
 0x241   : > { %v2334_v22 = vsel %vm4324_vm5, %v2329_v2, %v2333_v13  ;;  %v2146_v25 = vor.u32 %v2145_v19, %v2144_v14  ;;  %v2151_v38 = vrot.slane %v2149_v55, 5  ;;  %v1852_v28 = vsel %vm4249_vm12, 0, %v1851_v53  ;;  %v4476_v31 = vld [vmem:[#allocation4 + $0x10] sm:$0xf]  ;;  %v1824_v62 = vld [vmem:[#allocation4 + $0x54] sm:$0x8] }
 0x242   : > { %v2683_v24 = vunpack.c.l.b16 %v2334_v22  ;;  %v2138_v16 = vrot.slane %v2137_v17, 4  ;;  %v1855_v40 = vsel %vm4249_vm12, 0, %v1854_v46  ;;  %1853 = vst [vmem:[#allocation4 + $0x50] sm:$0x1] %v1852_v28  ;;  %v2446_v0 = vshrl.u32 %v4455_v4, 16 }
 0x243   : > { %v2147_v63 = vrot.slane %v2146_v25, 4  ;;  %v2449_v41 = vshll.u32 %v4455_v4, 16  ;;  %v2459_v32 = vshrl.u32 %v4457_v42, 16  ;;  %1856 = vst [vmem:[#allocation4 + $0x5c] sm:$0x1] %v1855_v40  ;;  %v2462_v54 = vshll.u32 %v4457_v42, 16 }
 0x244   : > { %2746 = vrot.lane.b32.xlu0 %v3272_v11, %s3510_s25  ;;  %v2689_v23 = vpack.c.b16 %v2683_v24, %v2682_v49  ;;  %v2143_v34 = vsel %vm4324_vm5, %v2138_v16, %v2142_v60  ;;  %v2536_v44 = vrot.slane %v2446_v0, 4  ;;  %v3348_v1 = vld [vmem:[#allocation4 + $0x54] sm:$0xf0]  ;;  %v1793_v19 = vsel %vm4249_vm12, 0, %v1792_v47  ;;  %v2380_v55 = vld [vmem:[#allocation4 + $0x48] sm:$0x8] }
 0x245   : > { %v2152_v13 = vsel %vm4324_vm5, %v2147_v63, %v2151_v38  ;;  %v2616_v53 = vunpack.c.l.b16 %v2143_v34  ;;  %v2537_v61 = vrot.slane %v2449_v41, 5  ;;  %v2545_v2 = vrot.slane %v2459_v32, 4  ;;  %1794 = vst [vmem:[#allocation4 + $0x8] sm:$0x1] %v1793_v19  ;;  %v3243_v22 = vld [vmem:[#allocation4 + $0x10] sm:$0xf] }
 0x246   : > { %2694 = vrot.lane.b32.xlu1 %v2689_v23, %s3512_s10  ;;  %v2617_v46 = vunpack.c.l.b16 %v2152_v13  ;;  %v2546_v14 = vrot.slane %v2462_v54, 5  ;;  %v1837_v17 = vsel %vm4249_vm12, 0, %v1836_v5  ;;  %v1990_v60 = vshrl.u32 %v4472_v15, 16  ;;  %v3267_v25 = vld [vmem:[#allocation4 + $0x4c] sm:$0xf] }
 0x247   : > { %v2538_v49 = vor.u32 %v2537_v61, %v2536_v44  ;;  %v1993_v4 = vshll.u32 %v4472_v15, 16  ;;  %1838 = vst [vmem:[#allocation4 + $0x14] sm:$0x1] %v1837_v17  ;;  %v2003_v24 = vshrl.u32 %v4476_v31, 16  ;;  %v2006_v16 = vshll.u32 %v4476_v31, 16  ;;  %v3352_v15 = vld [vmem:[%s4844_s5 + $0x10] sm:$0xff] }
 0x248   : > { %v2622_v11 = vpack.c.b16 %v2617_v46, %v2616_v53  ;;  %v2547_v38 = vor.u32 %v2546_v14, %v2545_v2  ;;  %v3244_v47 = vor.u32 %v3342_v3, %v3243_v22  ;;  %v3345_v28 = vld [vmem:[#allocation4 + $0x60] sm:$0xf0]  ;;  %v2099_v40 = vrot.slane %v1990_v60, 4  ;;  %v3255_v13 = vld [vmem:[#allocation4 + $0x58] sm:$0xf] }
 0x249   : > { %v2100_v5 = vrot.slane %v1993_v4, 5  ;;  %v1825_v63 = vsel %vm4271_vm7, 0, %v1824_v62  ;;  %v2496_v23 = vld [vmem:[#allocation4 + $0x50] sm:$0x1]  ;;  %v2539_v34 = vrot.slane %v2538_v49, 4  ;;  %v2108_v53 = vrot.slane %v2003_v24, 4 }
 0x24a   : > { %2628 = vrot.lane.b32.xlu2 %v2622_v11, %s3507_s12  ;;  %v2109_v3 = vrot.slane %v2006_v16, 5  ;;  %v2441_v44 = vshrl.u32 %v2380_v55, 16  ;;  %v3268_v61 = vor.u32 %v3348_v1, %v3267_v25  ;;  %v2497_v46 = vld [vmem:[#allocation4 + $0x5c] sm:$0x1]  ;;  %v2541_v2 = vshll.u32 %v2496_v23, 16 }
 0x24b   : > { %v2101_v14 = vor.u32 %v2100_v5, %v2099_v40  ;;  %1826 = vst [vmem:[#allocation4 + $0x54] sm:$0x8] %v1825_v63  ;;  %v2448_v19 = vrot.slane %v2446_v0, 7  ;;  %v2548_v62 = vrot.slane %v2547_v38, 4  ;;  %v2550_v17 = vshll.u32 %v2497_v46, 16 }
 0x24c   : > { %2672 = vrot.lane.b32.xlu0 %v3244_v47, %s3505_s22  ;;  %v2110_v11 = vor.u32 %v2109_v3, %v2108_v53  ;;  %v3221_v49 = vrot.slane %v2441_v44, 11  ;;  %v2295_v22 = vld [vmem:[#allocation4 + $0x44] sm:$0x1]  ;;  %v2543_v36 = vrot.slane %v2541_v2, 5  ;;  %v3256_v51 = vor.u32 %v3345_v28, %v3255_v13  ;;  %v2296_v59 = vld [vmem:[#allocation4 + $0x50] sm:$0x1] }
 0x24d   : > { %v2451_v20 = vor.u32 %v2449_v41, %v2448_v19  ;;  %v2335_v55 = vrot.slane %v2245_v8, 4  ;;  %v1827_v1 = vld [vmem:[#allocation4 + $0x60] sm:$0x8]  ;;  %v2552_v25 = vrot.slane %v2550_v17, 5  ;;  %v1833_v40 = vld [vmem:[#allocation4 + $0x8] sm:$0x1] }
 0x24e   : > { %2744 = vrot.lane.b32.xlu1 %v3268_v61, %s3510_s25  ;;  %v4506_v0 = vrot.slane %v2101_v14, 4  ;;  %v2461_v38 = vrot.slane %v2459_v32, 7  ;;  %v2336_v47 = vrot.slane %v2248_v33, 5  ;;  %v2544_v41 = vsel %vm4324_vm5, %v2539_v34, %v2543_v36  ;;  %v2089_v8 = vld [vmem:[#allocation4 + $0x14] sm:$0x1] }
 0x24f   : > { %v1834_v28 = vsel %vm4249_vm12, 0, %v1833_v40  ;;  %v2111_v5 = vrot.slane %v2110_v11, 4  ;;  %v2340_v63 = vshll.u32 %v2295_v22, 16  ;;  %v2553_v23 = vsel %vm4324_vm5, %v2548_v62, %v2552_v25  ;;  %v4522_v34 = vld [vmem:[#allocation4 + $0x58] sm:$0xf] }
 0x250   : > { %v2752_v13 = vunpack.c.l.b16 %v2544_v41  ;;  %1835 = vst [vmem:[#allocation4 + $0x8] sm:$0x1] %v1834_v28  ;;  %v2113_v53 = vshll.u32 %v2089_v8, 16  ;;  %v2452_v32 = vsel %vm4366_vm4, %v3221_v49, %v2451_v20  ;;  %v2753_v18 = vunpack.c.l.b16 %v2553_v23  ;;  %v4531_v22 = vld [vmem:[#allocation4 + $0x64] sm:$0xf] }
 0x251   : > { %v2337_v33 = vor.u32 %v2336_v47, %v2335_v55  ;;  %v2342_v3 = vrot.slane %v2340_v63, 5  ;;  %v2344_v36 = vrot.slane %v2258_v7, 4  ;;  %v2345_v46 = vrot.slane %v2261_v35, 5  ;;  %v4542_v47 = vld [vmem:[#allocation4 + $0x58] sm:$0xf] }
 0x252   : > { %2678 = vrot.lane.b32.xlu2 %v3256_v51, %s3505_s22  ;;  %v2115_v44 = vrot.slane %v2113_v53, 5  ;;  %v2382_v61 = vld [vmem:[#allocation4 + $0x54] sm:$0x8]  ;;  %v2349_v2 = vshll.u32 %v2296_v59, 16  ;;  %v1828_v14 = vsel %vm4271_vm7, 0, %v1827_v1  ;;  %v2758_v20 = vpack.c.b16 %v2753_v18, %v2752_v13 }
 0x253   : > { %v2454_v19 = vshrl.u32 %v2382_v61, 16  ;;  %v2464_v62 = vor.u32 %v2462_v54, %v2461_v38  ;;  %v2338_v17 = vrot.slane %v2337_v33, 4  ;;  %1829 = vst [vmem:[#allocation4 + $0x60] sm:$0x8] %v1828_v14  ;;  %v2183_v7 = vld [vmem:[#allocation4 + $0x54] sm:$0x8]  ;;  %v2704_v11 = vunpack.c.l.b16 %v2452_v32 }
 0x254   : > { %v2346_v49 = vor.u32 %v2345_v46, %v2344_v36  ;;  %v2351_v51 = vrot.slane %v2349_v2, 5  ;;  %v2266_v55 = vshrl.u32 %v2183_v7, 16  ;;  %3311 = vmatmul.msk.bf16.gmra.mxu2 %vm1273_vm2, %v2758_v20  ;;  %v2116_v50 = vsel %vm4324_vm5, %v2111_v5, %v2115_v44  ;;  %v4539_v54 = vld [vmem:[#allocation4 + $0x4c] sm:$0xf]  ;;  %v2094_v44 = vld [vmem:[#allocation4 + $0x50] sm:$0x1] }
 0x255   : > { %v3222_v35 = vrot.slane %v2454_v19, 11  ;;  %v2343_v59 = vsel %vm4324_vm5, %v2338_v17, %v2342_v3  ;;  %v2271_v42 = vshrl.u32 %v4522_v34, 16  ;;  %v2274_v38 = vshll.u32 %v4522_v34, 16 }
 0x256   : > { %v2347_v1 = vrot.slane %v2346_v49, 4  ;;  %v2684_v25 = vunpack.c.l.b16 %v2343_v59  ;;  %v3215_v40 = vrot.slane %v2266_v55, 11  ;;  %v2284_v5 = vshrl.u32 %v4531_v22, 16  ;;  %v2095_v49 = vld [vmem:[#allocation4 + $0x5c] sm:$0x1] }
 0x257   : > { %v2088_v41 = vld [vmem:[#allocation4 + $0x8] sm:$0x1]  ;;  %v2465_v28 = vsel %vm4366_vm4, %v3222_v35, %v2464_v62  ;;  %v2273_v8 = vrot.slane %v2271_v42, 7  ;;  %v2287_v63 = vshll.u32 %v4531_v22, 16  ;;  %v2068_v32 = vshrl.u32 %v4539_v54, 16 }
 0x258   : > { %v2104_v23 = vshll.u32 %v2088_v41, 16  ;;  %v2705_v13 = vunpack.c.l.b16 %v2465_v28  ;;  %v2352_v53 = vsel %vm4324_vm5, %v2347_v1, %v2351_v51  ;;  %v2286_v3 = vrot.slane %v2284_v5, 7  ;;  %v1798_v51 = vld [vmem:[#allocation4 + $0x74] sm:$0x1]  ;;  %v1857_v59 = vld [vmem:[#allocation4 + $0x68] sm:$0x1] }
 0x259   : > { %v2685_v18 = vunpack.c.l.b16 %v2352_v53  ;;  %v2276_v33 = vor.u32 %v2274_v38, %v2273_v8  ;;  %v2071_v36 = vshll.u32 %v4539_v54, 16  ;;  %v2081_v14 = vshrl.u32 %v4542_v47, 16  ;;  %v2385_v1 = vld [vmem:[#allocation4 + $0x64] sm:$0xf]  ;;  %v4575_v8 = vld [vmem:[#allocation4 + $0x70] sm:$0xf] }
 0x25a   : > { %v2106_v61 = vrot.slane %v2104_v23, 5  ;;  %v2710_v46 = vpack.c.b16 %v2705_v13, %v2704_v11  ;;  %v2185_v2 = vld [vmem:[#allocation4 + $0x60] sm:$0x8]  ;;  %v2084_v20 = vshll.u32 %v4542_v47, 16  ;;  %v2613_v19 = vunpack.c.l.b16 %v2116_v50 }
 0x25b   : > { %v2690_v62 = vpack.c.b16 %v2685_v18, %v2684_v25  ;;  %v2279_v17 = vshrl.u32 %v2185_v2, 16  ;;  %v2289_v7 = vor.u32 %v2287_v63, %v2286_v3  ;;  %v2277_v11 = vsel %vm4366_vm4, %v3215_v40, %v2276_v33  ;;  %v3227_v18 = vld [vmem:[#allocation4 + $0x4] sm:$0xf] }
 0x25c   : > { %v2107_v55 = vsel %vm4324_vm5, %v4506_v0, %v2106_v61  ;;  %2716 = vrot.lane.b32.xlu0 %v2710_v46, %s3506_s23  ;;  %v2153_v35 = vrot.slane %v2068_v32, 4  ;;  %v2154_v50 = vrot.slane %v2071_v36, 5  ;;  %v2158_v28 = vshll.u32 %v2094_v44, 16  ;;  %v3338_v46 = vld [vmem:[#allocation4 + $0xc] sm:$0xf0] }
 0x25d   : > { %v2612_v25 = vunpack.c.l.b16 %v2107_v55  ;;  %2696 = vrot.lane.b32.xlu2 %v2690_v62, %s3512_s10  ;;  %v3216_v41 = vrot.slane %v2279_v17, 11  ;;  %v2162_v0 = vrot.slane %v2081_v14, 4  ;;  %v2163_v40 = vrot.slane %v2084_v20, 5 }
 0x25e   : > { %v2155_v23 = vor.u32 %v2154_v50, %v2153_v35  ;;  %v2167_v13 = vshll.u32 %v2095_v49, 16  ;;  %v1799_v53 = vsel %vm4249_vm12, 0, %v1798_v51  ;;  %v2160_v61 = vrot.slane %v2158_v28, 5  ;;  %v1830_v49 = vld [vmem:[#allocation4 + $0x6c] sm:$0x8] }
 0x25f   : > { %v2620_v33 = vpack.c.b16 %v2613_v19, %v2612_v25  ;;  %v2290_v3 = vsel %vm4366_vm4, %v3216_v41, %v2289_v7  ;;  %1800 = vst [vmem:[#allocation4 + $0x74] sm:$0x1] %v1799_v53  ;;  %v1858_v44 = vsel %vm4249_vm12, 0, %v1857_v59  ;;  %v2638_v2 = vunpack.c.l.b16 %v2277_v11  ;;  %v2384_v50 = vld [vmem:[#allocation4 + $0x60] sm:$0x8] }
 0x260   : > { %v2156_v62 = vrot.slane %v2155_v23, 4  ;;  %v2164_v17 = vor.u32 %v2163_v40, %v2162_v0  ;;  %v2169_v55 = vrot.slane %v2167_v13, 5  ;;  %1859 = vst [vmem:[#allocation4 + $0x68] sm:$0x1] %v1858_v44  ;;  %v2472_v51 = vshrl.u32 %v2385_v1, 16 }
 0x261   : > { %2624 = vrot.lane.b32.xlu1 %v2620_v33, %s3507_s12  ;;  %v2475_v35 = vshll.u32 %v2385_v1, 16  ;;  %v2485_v19 = vshrl.u32 %v4575_v8, 16  ;;  %v2488_v7 = vshll.u32 %v4575_v8, 16  ;;  %v2639_v25 = vunpack.c.l.b16 %v2290_v3 }
 0x262   : > { %v2161_v59 = vsel %vm4324_vm5, %v2156_v62, %v2160_v61  ;;  %v2165_v41 = vrot.slane %v2164_v17, 4  ;;  %v3228_v11 = vor.u32 %v3338_v46, %v3227_v18  ;;  %v2554_v0 = vrot.slane %v2472_v51, 4  ;;  %v2297_v18 = vld [vmem:[#allocation4 + $0x5c] sm:$0x1] }
 0x263   : > { %v2618_v28 = vunpack.c.l.b16 %v2161_v59  ;;  %v2555_v23 = vrot.slane %v2475_v35, 5  ;;  %v2563_v40 = vrot.slane %v2485_v19, 4  ;;  %v2564_v53 = vrot.slane %v2488_v7, 5 }
 0x264   : > { %v2170_v13 = vsel %vm4324_vm5, %v2165_v41, %v2169_v55  ;;  %v1831_v1 = vsel %vm4271_vm7, 0, %v1830_v49  ;;  %v2467_v33 = vshrl.u32 %v2384_v50, 16  ;;  %v2474_v3 = vrot.slane %v2472_v51, 7  ;;  %v1806_v41 = vld [vmem:[#allocation4 + $0xc] sm:$0x8] }
 0x265   : > { %v2619_v8 = vunpack.c.l.b16 %v2170_v13  ;;  %v2556_v44 = vor.u32 %v2555_v23, %v2554_v0  ;;  %2604 = vrot.lane.b32.xlu2 %v3228_v11, %s3509_s24  ;;  %1832 = vst [vmem:[#allocation4 + $0x6c] sm:$0x8] %v1831_v1  ;;  %v2487_v61 = vrot.slane %v2485_v19, 7  ;;  %v2565_v62 = vor.u32 %v2564_v53, %v2563_v40  ;;  %v1809_v49 = vld [vmem:[#allocation4 + $0x18] sm:$0x8] }
 0x266   : > { %v1860_v46 = vld [vmem:[#allocation4 + $0x74] sm:$0x1]  ;;  %v3223_v17 = vrot.slane %v2467_v33, 11  ;;  %v2353_v59 = vrot.slane %v2271_v42, 4  ;;  %v2354_v55 = vrot.slane %v2274_v38, 5  ;;  %v2643_v50 = vpack.c.b16 %v2639_v25, %v2638_v2 }
 0x267   : > { %v2623_v13 = vpack.c.b16 %v2619_v8, %v2618_v28  ;;  %v1861_v11 = vsel %vm4249_vm12, 0, %v1860_v46  ;;  %v2498_v0 = vld [vmem:[#allocation4 + $0x68] sm:$0x1]  ;;  %v2477_v51 = vor.u32 %v2475_v35, %v2474_v3  ;;  %v2557_v23 = vrot.slane %v2556_v44, 4  ;;  %v2172_v2 = vld [vmem:[#allocation4 + $0x10] sm:$0xf] }
 0x268   : > { %v2298_v19 = vld [vmem:[#allocation4 + $0x68] sm:$0x1]  ;;  %1862 = vst [vmem:[#allocation4 + $0x74] sm:$0x1] %v1861_v11  ;;  %v2559_v40 = vshll.u32 %v2498_v0, 16  ;;  %v4601_v53 = vrot.slane %v2565_v62, 4  ;;  %v2355_v1 = vor.u32 %v2354_v55, %v2353_v59  ;;  %v2490_v25 = vor.u32 %v2488_v7, %v2487_v61 }
 0x269   : > { %2650 = vrot.lane.b32.xlu1 %v2643_v50, %s3511_s26  ;;  %2630 = vrot.lane.b32.xlu0 %v2623_v13, %s3507_s12  ;;  %v2478_v34 = vsel %vm4366_vm4, %v3223_v17, %v2477_v51  ;;  %v2358_v42 = vshll.u32 %v2297_v18, 16  ;;  %v2362_v56 = vrot.slane %v2284_v5, 4  ;;  %v2363_v38 = vrot.slane %v2287_v63, 5  ;;  %v2174_v18 = vld [vmem:[#allocation4 + $0x1c] sm:$0xf] }
 0x26a   : > { %v2561_v35 = vrot.slane %v2559_v40, 5  ;;  %v2356_v28 = vrot.slane %v2355_v1, 4  ;;  %v2367_v33 = vshll.u32 %v2298_v19, 16  ;;  %v1807_v3 = vsel %vm4271_vm7, 0, %v1806_v41  ;;  %v2291_v11 = vld [vmem:[#allocation4 + $0x14] sm:$0x1] }
 0x26b   : > { %v2360_v8 = vrot.slane %v2358_v42, 5  ;;  %v2364_v44 = vor.u32 %v2363_v38, %v2362_v56  ;;  %v1810_v46 = vsel %vm4271_vm7, 0, %v1809_v49  ;;  %v2706_v22 = vunpack.c.l.b16 %v2478_v34  ;;  %1808 = vst [vmem:[#allocation4 + $0xc] sm:$0x8] %v1807_v3  ;;  %v2292_v38 = vld [vmem:[#allocation4 + $0x20] sm:$0x1] }
 0x26c   : > { %v2562_v5 = vsel %vm4324_vm5, %v2557_v23, %v2561_v35  ;;  %v2386_v62 = vld [vmem:[#allocation4 + $0x6c] sm:$0x8]  ;;  %v2369_v63 = vrot.slane %v2367_v33, 5  ;;  %v2193_v17 = vshrl.u32 %v2172_v2, 16  ;;  %1811 = vst [vmem:[#allocation4 + $0x18] sm:$0x8] %v1810_v46 }
 0x26d   : > { %v4617_v7 = vunpack.c.l.b16 %v2562_v5  ;;  %v2480_v61 = vshrl.u32 %v2386_v62, 16  ;;  %v2361_v59 = vsel %vm4324_vm5, %v2356_v28, %v2360_v8  ;;  %v2365_v55 = vrot.slane %v2364_v44, 4 }
 0x26e   : > { %v2686_v41 = vunpack.c.l.b16 %v2361_v59  ;;  %v2195_v50 = vrot.slane %v2193_v17, 7  ;;  %v2196_v49 = vshll.u32 %v2172_v2, 16  ;;  %v2206_v13 = vshrl.u32 %v2174_v18, 16 }
 0x26f   : > { %v2499_v0 = vld [vmem:[#allocation4 + $0x74] sm:$0x1]  ;;  %v3224_v51 = vrot.slane %v2480_v61, 11  ;;  %v2370_v19 = vsel %vm4324_vm5, %v2365_v55, %v2369_v63  ;;  %v2209_v23 = vshll.u32 %v2174_v18, 16  ;;  %v2299_v40 = vrot.slane %v2193_v17, 4  ;;  %v3357_v61 = vld [vmem:[%s4844_s5 + $0x38] sm:$0xff] }
 0x270   : > { %v2568_v1 = vshll.u32 %v2499_v0, 16  ;;  %v2687_v34 = vunpack.c.l.b16 %v2370_v19  ;;  %v2198_v42 = vor.u32 %v2196_v49, %v2195_v50  ;;  %v2208_v56 = vrot.slane %v2206_v13, 7  ;;  %v3346_v19 = vld [vmem:[#allocation4 + $0x24] sm:$0xf0]  ;;  %3379 = vmatpush.bf16.msra.mxu3 %v3357_v61  ;;  %2911 = vmatpush.bf16.msrb.mxu0 %v3357_v61 }
 0x271   : > { %v2491_v35 = vsel %vm4366_vm4, %v3224_v51, %v2490_v25  ;;  %v2300_v28 = vrot.slane %v2196_v49, 5  ;;  %v2304_v33 = vshll.u32 %v2291_v11, 16  ;;  %v2308_v2 = vrot.slane %v2206_v13, 4 }
 0x272   : > { %v2570_v8 = vrot.slane %v2568_v1, 5  ;;  %v2707_v44 = vunpack.c.l.b16 %v2491_v35  ;;  %v2691_v3 = vpack.c.b16 %v2687_v34, %v2686_v41  ;;  %v2211_v46 = vor.u32 %v2209_v23, %v2208_v56  ;;  %v2171_v5 = vld [vmem:[#allocation4 + $0xc] sm:$0x8] }
 0x273   : > { %v2301_v62 = vor.u32 %v2300_v28, %v2299_v40  ;;  %v2306_v63 = vrot.slane %v2304_v33, 5  ;;  %v2309_v18 = vrot.slane %v2209_v23, 5  ;;  %v2313_v17 = vshll.u32 %v2292_v38, 16  ;;  %v2173_v55 = vld [vmem:[#allocation4 + $0x18] sm:$0x8] }
 0x274   : > { %v2571_v25 = vsel %vm4324_vm5, %v4601_v53, %v2570_v8  ;;  %v2711_v59 = vpack.c.b16 %v2707_v44, %v2706_v22  ;;  %2698 = vrot.lane.b32.xlu0 %v2691_v3, %s3512_s10  ;;  %v2188_v50 = vshrl.u32 %v2171_v5, 16  ;;  %v2372_v41 = vld [vmem:[#allocation4 + $0x18] sm:$0x8]  ;;  %v2396_v49 = vrot.slane %v2394_v29, 7  ;;  %v2374_v23 = vld [vmem:[#allocation4 + $0x24] sm:$0x8] }
 0x275   : > { %v2755_v13 = vunpack.c.l.b16 %v2571_v25  ;;  %v2201_v11 = vshrl.u32 %v2173_v55, 16  ;;  %v2302_v0 = vrot.slane %v2301_v62, 4  ;;  %v2310_v51 = vor.u32 %v2309_v18, %v2308_v2  ;;  %v3259_v38 = vld [vmem:[#allocation4 + $0x1c] sm:$0xf]  ;;  %v1979_v8 = vld [vmem:[#allocation4 + $0x48] sm:$0x8] }
 0x276   : > { %2718 = vrot.lane.b32.xlu1 %v2711_v59, %s3506_s23  ;;  %v3209_v53 = vrot.slane %v2188_v50, 11  ;;  %v2315_v22 = vrot.slane %v2313_v17, 5  ;;  %v2389_v40 = vshrl.u32 %v2372_v41, 16  ;;  %v3260_v28 = vor.u32 %v3346_v19, %v3259_v38  ;;  %v1981_v62 = vld [vmem:[#allocation4 + $0x54] sm:$0x8] }
 0x277   : > { %v2759_v1 = vpack.c.b16 %v2755_v13, %v4617_v7  ;;  %v3210_v34 = vrot.slane %v2201_v11, 11  ;;  %v2307_v56 = vsel %vm4324_vm5, %v2302_v0, %v2306_v63  ;;  %v2311_v29 = vrot.slane %v2310_v51, 4  ;;  %v3355_v50 = vld [vmem:[%s4844_s5 + $0x28] sm:$0xff]  ;;  %v1803_v11 = vld [vmem:[#allocation4] sm:$0x8] }
 0x278   : > { %v2199_v35 = vsel %vm4366_vm4, %v3209_v53, %v2198_v42  ;;  %v2399_v33 = vor.u32 %v2397_v21, %v2396_v49  ;;  %v2402_v2 = vshrl.u32 %v2374_v23, 16  ;;  %v2680_v3 = vunpack.c.l.b16 %v2307_v56  ;;  %v3356_v21 = vld [vmem:[%s4844_s5 + $0x30] sm:$0xff] }
 0x279   : > { %3312 = vmatmul.msk.bf16.gmra.mxu2 %vm1273_vm2, %v2759_v1  ;;  %v2212_v7 = vsel %vm4366_vm4, %v3210_v34, %v2211_v46  ;;  %v2316_v44 = vsel %vm4324_vm5, %v2311_v29, %v2315_v22  ;;  %v2409_v5 = vrot.slane %v2407_v57, 7  ;;  %v2632_v42 = vunpack.c.l.b16 %v2199_v35  ;;  %3380 = vmatpush.bf16.msra.mxu3 %v3356_v21  ;;  %v3354_v22 = vld [vmem:[%s4844_s5 + $0x20] sm:$0xff]  ;;  %v3353_v34 = vld [vmem:[%s4844_s5 + $0x18] sm:$0xff] }
 0x27a   : > { %v2633_v63 = vunpack.c.l.b16 %v2212_v7  ;;  %v2681_v18 = vunpack.c.l.b16 %v2316_v44  ;;  %v3218_v43 = vrot.slane %v2402_v2, 11  ;;  %v3217_v17 = vrot.slane %v2389_v40, 11  ;;  %2912 = vmatpush.bf16.msrb.mxu0 %v3356_v21  ;;  %v3350_v44 = vld [vmem:[%s4844_s5] sm:$0xff] }
 0x27b   : > { %v2412_v46 = vor.u32 %v2410_v12, %v2409_v5  ;;  %v2063_v61 = vshrl.u32 %v1979_v8, 16  ;;  %v2070_v6 = vrot.slane %v2068_v32, 7  ;;  %v2076_v57 = vshrl.u32 %v1981_v62, 16  ;;  %v1973_v62 = vld [vmem:[#allocation4 + $0x24] sm:$0x8] }
 0x27c   : > { %v2640_v25 = vpack.c.b16 %v2633_v63, %v2632_v42  ;;  %v2688_v59 = vpack.c.b16 %v2681_v18, %v2680_v3  ;;  %2740 = vrot.lane.b32.xlu0 %v3260_v28, %s3510_s25  ;;  %v2083_v55 = vrot.slane %v2081_v14, 7  ;;  %v2400_v49 = vsel %vm4366_vm4, %v3217_v17, %v2399_v33  ;;  %v1971_v42 = vld [vmem:[#allocation4 + $0x18] sm:$0x8]  ;;  %s311_s25 = sand.u32 1, %s3494_s28  }
 0x27d   : > { %v2413_v27 = vsel %vm4366_vm4, %v3218_v43, %v2412_v46  ;;  %v3207_v12 = vrot.slane %v2063_v61, 11  ;;  %v2073_v32 = vor.u32 %v2071_v36, %v2070_v6  ;;  %v3208_v41 = vrot.slane %v2076_v57, 11  ;;  %3381 = vmatpush.bf16.msra.mxu3 %v3355_v50 }
 0x27e   : > { %2644 = vrot.lane.b32.xlu2 %v2640_v25, %s3511_s26  ;;  %2692 = vrot.lane.b32.xlu1 %v2688_v59, %s3512_s10  ;;  %v2086_v14 = vor.u32 %v2084_v20, %v2083_v55  ;;  %v2701_v0 = vunpack.c.l.b16 %v2413_v27  ;;  %v2700_v19 = vunpack.c.l.b16 %v2400_v49  ;;  %v1804_v47 = vsel %vm4271_vm7, 0, %v1803_v11  ;;  %v1969_v20 = vld [vmem:[#allocation4 + $0xc] sm:$0x8]  ;;  %s3111_s26 = sshll.u32 %s311_s25, 5  ;;  %s3359_s10 = sshll.u32 %s3580_s9, 5 }
 0x27f   : > { %v2074_v13 = vsel %vm4366_vm4, %v3207_v12, %v2073_v32  ;;  %2913 = vmatpush.bf16.msrb.mxu0 %v3355_v50  ;;  %1805 = vst [vmem:[#allocation4] sm:$0x8] %v1804_v47  ;;  %v1992_v40 = vrot.slane %v1990_v60, 7  ;;  %v1998_v1 = vshrl.u32 %v1969_v20, 16  ;;  %v2005_v26 = vrot.slane %v2003_v24, 7  ;;  %s3029_s18 = scalar_lea.hbm %s4847_s8, %s3359_s10  ;;  %s3018_s9 = scalar_lea.sflag [#allocation6], %s311_s25 }
 0x280   : > { %v2087_v54 = vsel %vm4366_vm4, %v3208_v41, %v2086_v14  ;;  %v4676_v36 = vunpack.c.l.b16 %v2074_v13  ;;  %v2708_v53 = vpack.c.b16 %v2701_v0, %v2700_v19  ;;  %v2024_v63 = vshrl.u32 %v1973_v62, 16  ;;  %v1975_v14 = vld [vmem:[#allocation4 + $0x30] sm:$0x8]  ;;  %s3032_s20 = sshll.u32 %s3029_s18, 4  ;;  %s3460_s10 = scalar_lea.hbm %s4847_s8, 64  ;;  %s3033_s20 = int_to_ptr.hbm [resolvable:$true] %s3032_s20 }
 0x281   : > { %v4678_v51 = vunpack.c.l.b16 %v2087_v54  ;;  %3382 = vmatpush.bf16.msra.mxu3 %v3354_v22  ;;  %v1995_v56 = vor.u32 %v1993_v4, %v1992_v40  ;;  %v3202_v29 = vrot.slane %v1998_v1, 11  ;;  %v2008_v38 = vor.u32 %v2006_v16, %v2005_v26  ;;  %v3351_v16 = vld [vmem:[%s4844_s5 + $0x8] sm:$0xff]  ;;  %s3454_s17 = sshra.s32 %s3033_s20, 4  ;;  %s3455_s17 = int_to_ptr.hbm [resolvable:$true] %s3454_s17 }
 0x282   : > { %v2031_v18 = vrot.slane %v2029_v58, 7  ;;  %v2011_v43 = vshrl.u32 %v1971_v42, 16  ;;  %v2018_v21 = vrot.slane %v2016_v45, 7  ;;  %v3204_v46 = vrot.slane %v2024_v63, 11  ;;  %s3456_s21 = scalar_lea.hbm %s3455_s17, 32  ;;  %p3461_p0 = scmp.lt.s32.totalorder %s3455_s17, %s4847_s8 }
 0x283   : > { %v2583_v23 = vpack.c.b16 %v4678_v51, %v4676_v36  ;;  %2914 = vmatpush.bf16.msrb.mxu0 %v3354_v22  ;;  %v2009_v28 = vsel %vm4366_vm4, %v3202_v29, %v2008_v38  ;;  %v2050_v49 = vshrl.u32 %v1977_v9, 16  ;;  %v4872_v13 = vshrl.u32 %v4431_v52, 16  ;;  %p3457_p11 = scmp.ne.s32.totalorder %s3455_s17, %s3456_s21  ;;  %p3462_p1 = scmp.lt.s32.totalorder %s3460_s10, %s3456_s21 }
 0x284   : > { %v4701_v33 = vunpack.c.l.b16 %v2009_v28  ;;  %v2034_v61 = vor.u32 %v2032_v10, %v2031_v18  ;;  %v3203_v25 = vrot.slane %v2011_v43, 11  ;;  %v2021_v59 = vor.u32 %v2019_v48, %v2018_v21 }
 0x285   : > { %3383 = vmatpush.bf16.msra.mxu3 %v3353_v34  ;;  %v2057_v11 = vrot.slane %v4872_v13, 7  ;;  %v2037_v47 = vshrl.u32 %v1975_v14, 16  ;;  %v4873_v20 = vshrl.u32 %v4429_v30, 16  ;;  %v3206_v26 = vrot.slane %v2050_v49, 11  ;;  %v3438_v14 = vld [vmem:[%s4845_s6] ss:$0 sm:$0xff]  ;;  %p3458_p12 = pnand %p3457_p11, %p3597_p5  ;;  %p3463_p2 = por %p3462_p1, %p3461_p0 }
 0x286   : > { %2712 = vrot.lane.b32.xlu2 %v2708_v53, %s3506_s23  ;;  %v1967_v60 = vld [vmem:[#allocation4] sm:$0x8]  ;;  %v2035_v55 = vsel %vm4366_vm4, %v3204_v46, %v2034_v61  ;;  %v2022_v58 = vsel %vm4366_vm4, %v3203_v25, %v2021_v59  ;;  %s4785_s23 = scalar_lea.vmem [#allocation5], %s3111_s26 }
 0x287   : > { %v1985_v35 = vshrl.u32 %v1967_v60, 16  ;;  %2915 = vmatpush.bf16.msrb.mxu0 %v3353_v34  ;;  %v2575_v50 = vunpack.c.l.b16 %v2035_v55  ;;  %v2574_v27 = vunpack.c.l.b16 %v2022_v58  ;;  %v2044_v53 = vrot.slane %v4873_v20, 7  ;;  %s3030_s19 = sshll.u32 %s4785_s23, 4  ;;  %p3459_p13 = pneg %p3458_p12  ;;  %s3031_s19 = int_to_ptr.vmem [resolvable:$true] %s3030_s19 }
 0x288   : > { %v4874_v34 = vshll.u32 %v4431_v52, 16  ;;  %v3205_v38 = vrot.slane %v2037_v47, 11  ;;  %v4875_v60 = vshll.u32 %v4429_v30, 16 }
 0x289   : > { %v3201_v24 = vrot.slane %v1985_v35, 11  ;;  %v2607_v31 = vpop.permute.xlu0 %2606  ;;  %3384 = vmatpush.bf16.msra.mxu3 %v3352_v15  ;;  %v2647_v7 = vpop.permute.xlu2 %2646  ;;  %v2581_v32 = vpack.c.b16 %v2575_v50, %v2574_v27  ;;  %p3464_p3 = pnand %p3463_p2, %p3459_p13 }
 0x28a   : > { %v2047_v35 = vor.u32 %v4875_v60, %v2044_v53 }
 0x28b   : > { %v1996_v2 = vsel %vm4366_vm4, %v3201_v24, %v1995_v56  ;;  %2916 = vmatpush.bf16.msrb.mxu0 %v3352_v15  ;;  %v2765_v37 = vsel %vm1273_vm2, %v2581_v32, %v2607_v31  ;;  %v2060_v56 = vor.u32 %v4874_v34, %v2057_v11  ;;  %v3439_v11 = vld [vmem:[%s4846_s7] ss:$0 sm:$0xff] }
 0x28c   : > { %v4708_v4 = vunpack.c.l.b16 %v1996_v2  ;;  %v2048_v24 = vsel %vm4366_vm4, %v3205_v38, %v2047_v35 }
 0x28d   : > { %3385 = vmatpush.bf16.msra.mxu3 %v3351_v16  ;;  %v2061_v28 = vsel %vm4366_vm4, %v3206_v26, %v2060_v56  ;;  %v2576_v31 = vunpack.c.l.b16 %v2048_v24 }
 0x28e   : > { %v2580_v8 = vpack.c.b16 %v4701_v33, %v4708_v4  ;;  %v2577_v15 = vunpack.c.l.b16 %v2061_v28 }
 0x28f   : > { %2917 = vmatpush.bf16.msrb.mxu0 %v3351_v16 }
 0x291   : > { %3386 = vmatpush.bf16.msra.mxu3 %v3350_v44  ;;  %v2675_v5 = vpop.permute.xlu0 %2674  ;;  %v2611_v17 = vpop.permute.xlu2 %2610 }
 0x293   : > { %2918 = vmatpush.bf16.msrb.mxu0 %v3350_v44 }
 0x296   : > { %v2609_v3 = vpop.permute.xlu1 %2608 }
 0x299   : > { %v2743_v57 = vpop.permute.xlu0 %2742 }
 0x29a   : > { %v2715_v45 = vpop.permute.xlu2 %2714 }
 0x2a0   : > { %v2627_v6 = vpop.permute.xlu1 %2626 }
 0x2a1   : > { %v2775_v10 = vsel %vm1048_vm6, %v2765_v37, %v2627_v6  ;;  %v2771_v6 = vsel %vm1273_vm2, %v2583_v23, %v2611_v17 }
 0x2a2   : > { %v2784_v48 = vsel %vm2780_vm10, %v2775_v10, %v2647_v7  ;;  %v2582_v7 = vpack.c.b16 %v2577_v15, %v2576_v31 }
 0x2a3   : > { %v2792_v54 = vsel %vm1051_vm8, %v2784_v48, %v2675_v5 }
 0x2a4   : > { %v2629_v0 = vpop.permute.xlu2 %2628  ;;  %v2768_v52 = vsel %vm1273_vm2, %v2582_v7, %v2609_v3 }
 0x2a5   : > { %v2777_v44 = vsel %vm1048_vm6, %v2768_v52, %v2629_v0 }
 0x2a8   : > { %v2677_v12 = vpop.permute.xlu1 %2676 }
 0x2ab   : > { %v2949_v10 = vpop.f32.mrf.mxu2 }
 0x2ac   : > { %v2679_v2 = vpop.permute.xlu2 %2678 }
 0x2ae   : > { %v2649_v41 = vpop.permute.xlu0 %2648 }
 0x2af   : > { %v2786_v5 = vsel %vm2780_vm10, %v2777_v44, %v2649_v41 }
 0x2b0   : > { %v2794_v42 = vsel %vm1051_vm8, %v2786_v5, %v2677_v12 }
 0x2b3   : > { %v2951_v9 = vpop.f32.mrf.mxu2 }
 0x2b6   : > { %v2747_v40 = vpop.permute.xlu0 %2746 }
 0x2b7   : > { %v2697_v30 = vpop.permute.xlu2 %2696 }
 0x2b8   : > { %v2695_v19 = vpop.permute.xlu1 %2694  ;;  %v2803_v63 = vsel %vm2797_vm13, %v2794_v42, %v2697_v30 }
 0x2b9   : > { %v2801_v22 = vsel %vm2797_vm13, %v2792_v54, %v2695_v19 }
 0x2ba   : > { %v2809_v1 = vsel %vm1054_vm15, %v2801_v22, %v2715_v45 }
 0x2bb   : > { %v2819_v29 = vsel %vm2814_vm9, %v2809_v1, %v2743_v57 }
 0x2bc   : > { %2924 = vmatmul.bf16.vlgmr.msra.gmra.mxu3 %v2819_v29 }
 0x2be   : > { %v2673_v16 = vpop.permute.xlu0 %2672 }
 0x2bf   : > { %v2605_v61 = vpop.permute.xlu2 %2604 }
 0x2c0   : > { %v2745_v62 = vpop.permute.xlu1 %2744  ;;  %v2762_v45 = vsel %vm1273_vm2, %v2580_v8, %v2605_v61 }
 0x2c1   : > { %v2954_v48 = vpop.f32.mrf.mxu2 }
 0x2c9   : > { %v2956_v47 = vpop.f32.mrf.mxu2 }
 0x2ce   : > { %v2717_v18 = vpop.permute.xlu0 %2716 }
 0x2cf   : > { %v2811_v39 = vsel %vm1054_vm15, %v2803_v63, %v2717_v18 }
 0x2d0   : > { %v2822_v43 = vsel %vm2814_vm9, %v2811_v39, %v2745_v62 }
 0x2d1   : > { %2929 = vmatmul.bf16.gmra.mxu3 %v2822_v43 }
 0x2d3   : > { %v2625_v21 = vpop.permute.xlu1 %2624 }
 0x2d4   : > { %v2773_v51 = vsel %vm1048_vm6, %v2762_v45, %v2625_v21 }
 0x2d7   : > { %v2959_v56 = vpop.f32.mrf.mxu2 }
 0x2d8   : > { %v2645_v58 = vpop.permute.xlu2 %2644 }
 0x2d9   : > { %v2782_v17 = vsel %vm2780_vm10, %v2773_v51, %v2645_v58 }
 0x2da   : > { %v2790_v32 = vsel %vm1051_vm8, %v2782_v17, %v2673_v16 }
 0x2db   : > { %v2631_v46 = vpop.permute.xlu0 %2630  ;;  %v2651_v3 = vpop.permute.xlu1 %2650 }
 0x2dc   : > { %v2779_v25 = vsel %vm1048_vm6, %v2771_v6, %v2631_v46 }
 0x2dd   : > { %v2788_v59 = vsel %vm2780_vm10, %v2779_v25, %v2651_v3 }
 0x2de   : > { %v2796_v55 = vsel %vm1051_vm8, %v2788_v59, %v2679_v2 }
 0x2df   : > { %v2961_v24 = vpop.f32.mrf.mxu2 }
 0x2e0   : > { %v2713_v41 = vpop.permute.xlu2 %2712 }
 0x2e6   : > { %v2699_v57 = vpop.permute.xlu0 %2698 }
 0x2e7   : > { %v2805_v50 = vsel %vm2797_vm13, %v2796_v55, %v2699_v57 }
 0x2e8   : > { %v2719_v27 = vpop.permute.xlu1 %2718 }
 0x2e9   : > { %v2813_v36 = vsel %vm1054_vm15, %v2805_v50, %v2719_v27 }
 0x2ea   : > { %v2825_v23 = vsel %vm2814_vm9, %v2813_v36, %v2747_v40 }
 0x2eb   : > { %2934 = vmatmul.bf16.gmra.mxu3 %v2825_v23 }
 0x2ee   : > { %v2741_v33 = vpop.permute.xlu0 %2740 }
 0x2f0   : > { %v2693_v12 = vpop.permute.xlu1 %2692 }
 0x2f1   : > { %v2799_v37 = vsel %vm2797_vm13, %v2790_v32, %v2693_v12 }
 0x2f2   : > { %v2807_v4 = vsel %vm1054_vm15, %v2799_v37, %v2713_v41 }
 0x2f3   : > { %v2816_v8 = vsel %vm2814_vm9, %v2807_v4, %v2741_v33 }
 0x2f4   : > { %2919 = vmatmul.bf16.vlgmr.msrb.gmra.mxu0 %v2816_v8 }
 0x2fc   : > { %v2964_v5 = vpop.f32.mrf.mxu2 }
 0x304   : > { %v2966_v46 = vpop.f32.mrf.mxu2 }
 0x33f   : > { %v2925_v49 = vpop.f32.mrf.mxu3 }
 0x340   : > { %v2955_v13 = vadd.f32 %v2954_v48, %v2925_v49 }
 0x342   : > { %v2975_v0 = vmul.f32 %v3438_v14, %v2955_v13 }
 0x344   : > { %v2987_v54 = vadd.f32 %v3439_v11, %v2975_v0 }
 0x346   : > { %v2995_v19 = vmax.f32 %v2987_v54, 0.0 }
 0x347   : > { %v2927_v20 = vpop.f32.mrf.mxu3 }
 0x348   : > { %v3003_v53 = vpack.c.bf16 %v2995_v19, %v2995_v19  ;;  %v2957_v22 = vadd.f32 %v2956_v47, %v2927_v20 }
 0x34a   : > { %3011 = vst.msk [vmem:[%s4785_s23 + $0x8] sm:$0xf] %vm1294_vm3, %v3003_v53  ;;  %v2976_v40 = vmul.f32 %v3438_v14, %v2957_v22 }
 0x34c   : > { %v2988_v1 = vadd.f32 %v3439_v11, %v2976_v40 }
 0x34e   : > { %v2996_v26 = vmax.f32 %v2988_v1, 0.0 }
 0x350   : > { %v3004_v34 = vpack.c.bf16 %v2996_v26, %v2996_v26 }
 0x352   : > { %3012 = vst.msk [vmem:[%s4785_s23 + $0xc] sm:$0xf] %vm1294_vm3, %v3004_v34 }
 0x354   : > { %v2930_v29 = vpop.f32.mrf.mxu3 }
 0x355   : > { %v2960_v38 = vadd.f32 %v2959_v56, %v2930_v29 }
 0x357   : > { %v2977_v60 = vmul.f32 %v3438_v14, %v2960_v38 }
 0x359   : > { %v2989_v35 = vadd.f32 %v3439_v11, %v2977_v60 }
 0x35b   : > { %v2997_v28 = vmax.f32 %v2989_v35, 0.0 }
 0x35c   : > { %v2932_v2 = vpop.f32.mrf.mxu3 }
 0x35d   : > { %v3005_v15 = vpack.c.bf16 %v2997_v28, %v2997_v28  ;;  %v2962_v31 = vadd.f32 %v2961_v24, %v2932_v2 }
 0x35f   : > { %3013 = vst.msk [vmem:[%s4785_s23 + $0x10] sm:$0xf] %vm1294_vm3, %v3005_v15  ;;  %v2978_v16 = vmul.f32 %v3438_v14, %v2962_v31 }
 0x361   : > { %v2990_v7 = vadd.f32 %v3439_v11, %v2978_v16 }
 0x363   : > { %v2998_v52 = vmax.f32 %v2990_v7, 0.0 }
 0x365   : > { %v3006_v44 = vpack.c.bf16 %v2998_v52, %v2998_v52 }
 0x367   : > { %3014 = vst.msk [vmem:[%s4785_s23 + $0x14] sm:$0xf] %vm1294_vm3, %v3006_v44 }
 0x36e   : > { %v2935_v62 = vpop.f32.mrf.mxu3 }
 0x36f   : > { %v2965_v30 = vadd.f32 %v2964_v5, %v2935_v62 }
 0x371   : > { %v2979_v42 = vmul.f32 %v3438_v14, %v2965_v30  ;;  %v2920_v63 = vpop.f32.mrf.mxu0 }
 0x372   : > { %v2950_v18 = vadd.f32 %v2949_v10, %v2920_v63 }
 0x373   : > { %v2991_v39 = vadd.f32 %v3439_v11, %v2979_v42 }
 0x374   : > { %v2973_v43 = vmul.f32 %v3438_v14, %v2950_v18 }
 0x375   : > { %v2999_v21 = vmax.f32 %v2991_v39, 0.0 }
 0x376   : > { %v2985_v61 = vadd.f32 %v3439_v11, %v2973_v43  ;;  %v2937_v3 = vpop.f32.mrf.mxu3 }
 0x377   : > { %v3007_v6 = vpack.c.bf16 %v2999_v21, %v2999_v21  ;;  %v2967_v25 = vadd.f32 %v2966_v46, %v2937_v3 }
 0x378   : > { %v2993_v59 = vmax.f32 %v2985_v61, 0.0 }
 0x379   : > { %3015 = vst.msk [vmem:[%s4785_s23 + $0x18] sm:$0xf] %vm1294_vm3, %v3007_v6  ;;  %v2980_v57 = vmul.f32 %v3438_v14, %v2967_v25  ;;  %v2922_v55 = vpop.f32.mrf.mxu0 }
 0x37a   : > { %v3001_v58 = vpack.c.bf16 %v2993_v59, %v2993_v59  ;;  %v2952_v50 = vadd.f32 %v2951_v9, %v2922_v55 }
 0x37b   : > { %v2992_v27 = vadd.f32 %v3439_v11, %v2980_v57 }
 0x37c   : > { %3009 = vst.msk [vmem:[%s4785_s23] sm:$0xf] %vm1294_vm3, %v3001_v58  ;;  %v2974_v45 = vmul.f32 %v3438_v14, %v2952_v50 }
 0x37d   : > { %v3000_v36 = vmax.f32 %v2992_v27, 0.0 }
 0x37e   : > { %v2986_v51 = vadd.f32 %v3439_v11, %v2974_v45 }
 0x37f   : > { %v3008_v23 = vpack.c.bf16 %v3000_v36, %v3000_v36 }
 0x380   : > { %v2994_v17 = vmax.f32 %v2986_v51, 0.0 }
 0x381   : > { %3016 = vst.msk [vmem:[%s4785_s23 + $0x1c] sm:$0xf] %vm1294_vm3, %v3008_v23 }
 0x382   : > { %v3002_v12 = vpack.c.bf16 %v2994_v17, %v2994_v17 }
 0x384   : > { %3010 = vst.msk [vmem:[%s4785_s23 + $0x4] sm:$0xf] %vm1294_vm3, %v3002_v12 }
 0x385   : > { %3467 = shalt.err (!%p3464_p3)
}
 0x386   : > { %s3513_s25 = smov 4  }
 0x387   : > { %3387 = dma.vmem_to_hbm [thread:$0]  (%p3597_p5), %s3031_s19, 512, %s3033_s20, %s3018_s9, %s3505_s22, %s3505_s22, %s3513_s25  }
 0x388 PF: > { %p3393_p4 = scmp.ge.s32.totalorder %s3502_s30, 2  ;;  %s3047_s23 = sand.u32 1, %s3490_s27  }
 0x389   : > { %s3048_s18 = scalar_lea.sflag [#allocation6], %s3047_s23 }
 0x38a   : > { %p3390_p7 = pnand %p3393_p4, %p3601_p6 }
 0x38c   : > { %p3391_p8 = pneg %p3390_p7 }
 0x38e   : > { %3485 = dma.done.wait (%p3391_p8), %s3048_s18, 512  }
 0x38f   : > { %3487 = vsyncadd (%p3391_p8), %s3048_s18, 4294966784  ;;  %p18_p9 = scmp.ge.s32.totalorder %s3584_s11, 4   ;;  %s4876_s27 = smov %s3494_s28 }
 0x390   : > { %s4877_s28 = smov %s3498_s29  ;;  %s4878_s29 = smov %s3595_s14 }
 0x391   : > { %s4879_s30 = smov %s3584_s11  ;;  %20 = sbr.rel (!%p18_p9) target bundleno = 3 (0x3), region = 145 }
 0x396   :  { %3054 = vsyncpa [#allocation6], 1 }
 0x397   :  { %3056 = vsyncpa [#allocation6 + $0x1], 1 }

</bundles_post_ra>
